<compile_context>
chip_gen: v5e
topology: v5e:2x2
jax: 0.10.0
libtpu: 0.0.40
codegen_flags: <defaults>
</compile_context>

<pallas_src>
import functools

import jax
import jax.numpy as jnp
from jax import lax
from jax.experimental import pallas as pl
from jax.experimental.pallas import tpu as pltpu


# ----------------------------------------------------------------------------
# Kernel
# ----------------------------------------------------------------------------
def _conv_bn_relu_kernel(x_hbm, w_ref, b_ref, o_ref, xbuf, sem, *,
                         KH, KW, stride, TRo, Wout, SH, im2col, flatten):
    """One (batch, row-group, row-tile) grid step.

    x_hbm : (N, Hp, Wp, Cin) in HBM (manual halo-slab DMA)
    w_ref : (KH*KW*Cin, Cout) if im2col else (KH*KW, Cin, Cout)   [VMEM]
    b_ref : (1, Cout) folded BN bias (f32)                        [VMEM]
    o_ref : (TRo, Wout, Cout)
    xbuf  : (2, SH, Wp, Cin) double-buffered input slab scratch
    sem   : DMA semaphores, shape (2,)
    """
    n = pl.program_id(0)
    g = pl.program_id(1)
    r = pl.program_id(2)
    R = pl.num_programs(2)
    rt = g * R + r                       # global output-row-tile index
    slot = r % 2

    def slab_copy(row_tile, buf_slot):
        r0 = row_tile * (TRo * stride)
        return pltpu.make_async_copy(
            x_hbm.at[n, pl.ds(r0, SH), :, :],     # (SH, Wp, Cin) halo slab
            xbuf.at[buf_slot],
            sem.at[buf_slot])

    # Prime this (n, g) prefetch chain on its first row tile.
    @pl.when(r == 0)
    def _():
        slab_copy(rt, slot).start()

    # Prefetch the next slab while this one is being computed on.
    @pl.when(r + 1 < R)
    def _():
        slab_copy(rt + 1, (r + 1) % 2).start()

    slab_copy(rt, slot).wait()

    Cin = xbuf.shape[-1]
    Cout = o_ref.shape[-1]
    M = TRo * Wout

    def tap(kh, kw):
        if stride == 1:
            t = xbuf[slot, pl.ds(kh, TRo), pl.ds(kw, Wout), :]
        else:
            t = xbuf[slot, pl.ds(kh, TRo, stride), pl.ds(kw, Wout, stride), :]
        return t.reshape(M, Cin) if flatten else t

    lhs_c = 1 if flatten else 2
    dims = (((lhs_c,), (0,)), ((), ()))
    bias = b_ref[...].astype(jnp.float32)                    # (1, Cout)

    if im2col:
        # Small Cin: deepen K by concatenating taps along the lane axis, then
        # one deep matmul.  (1x1 convs are a single pointwise matmul here.)
        taps = [tap(kh, kw) for kh in range(KH) for kw in range(KW)]
        patch = taps[0] if len(taps) == 1 else jnp.concatenate(taps, axis=-1)
        acc = lax.dot_general(patch, w_ref[...], dimension_numbers=dims,
                              preferred_element_type=jnp.float32)
        acc = acc + (bias if flatten else bias[None])
    else:
        # Cin >= 128: per-tap MXU accumulation (K per tap already fills the
        # contraction depth); accumulator starts as the broadcast bias.
        shape = (M, Cout) if flatten else (TRo, Wout, Cout)
        acc = jnp.broadcast_to(bias if flatten else bias[None], shape)
        t_idx = 0
        for kh in range(KH):
            for kw in range(KW):
                acc = acc + lax.dot_general(
                    tap(kh, kw), w_ref[t_idx], dimension_numbers=dims,
                    preferred_element_type=jnp.float32)
                t_idx += 1

    out = jnp.maximum(acc, 0.0)
    if flatten:
        out = out.reshape(TRo, Wout, Cout)
    o_ref[...] = out.astype(o_ref.dtype)


# ----------------------------------------------------------------------------
# Wrapper
# ----------------------------------------------------------------------------
def _fold_bn(w_hwio, gamma, beta, mean, var, eps):
    s = gamma / jnp.sqrt(var + eps)
    return w_hwio * s, beta - mean * s


def _pick_row_tile(Hout, Wout, est_fn, *, target_m=512, cap_m=4096,
                   budget_bytes=24 << 20, min_tiles=1):
    """Pick TRo (divisor of Hout) under a VMEM budget, M = TRo*Wout ~ target."""
    divs = [d for d in range(1, Hout + 1) if Hout % d == 0]
    feas = [d for d in divs
            if est_fn(d) <= budget_bytes and Hout // d >= min_tiles]
    if not feas:
        # TODO(synk): ceil-division + masked edge tiles (or Hout padding) when
        # no divisor fits the VMEM budget (e.g. prime Hout with huge Wp*Cin).
        feas = [d for d in divs if Hout // d >= min_tiles][:1] or divs[:1]
    for d in feas:                                   # ascending
        if target_m <= d * Wout <= cap_m:
            return d
    under = [d for d in feas if d * Wout <= cap_m]
    return (under or feas)[-1]


def basic_conv2d(x_nchw, w_hwio, bn, *, stride=1, padding=0,
                 compute_dtype=jnp.bfloat16, out_dtype=jnp.float32):
    """relu(batchnorm(conv2d(x))) — BN folded, single fused Pallas kernel."""
    gamma, beta, mean, var, eps = bn
    w, b = _fold_bn(w_hwio.astype(jnp.float32), gamma, beta, mean, var, eps)

    N, Cin, H, W = x_nchw.shape
    KH, KW, _, Cout = w_hwio.shape

    # Module-boundary layout work (NCHW -> NHWC) + zero padding, once.
    x = jnp.transpose(x_nchw, (0, 2, 3, 1)).astype(compute_dtype)
    xp = jnp.pad(x, ((0, 0), (padding, padding), (padding, padding), (0, 0)))
    Hp, Wp = H + 2 * padding, W + 2 * padding
    Hout = (Hp - KH) // stride + 1
    Wout = (Wp - KW) // stride + 1

    im2col = (KH * KW == 1) or (Cin < 128)     # inverted heuristic (review)
    flatten = (Wout % 8 == 0)                  # free (M, K) layout collapse

    x_isz = jax.dtypes.canonicalize_dtype(compute_dtype).itemsize
    o_isz = jax.dtypes.canonicalize_dtype(out_dtype).itemsize
    K_total = KH * KW * Cin

    def est_vmem(tro):
        sh = (tro - 1) * stride + KH
        m = tro * Wout
        xb = 2 * sh * Wp * Cin * x_isz                      # manual slab x2
        ob = 2 * tro * Wout * Cout * o_isz                  # out, 2 pipe bufs
        wb = 2 * K_total * Cout * x_isz + 2 * Cout * 4      # w + b, 2 bufs
        tmp = m * Cout * 4 + m * (K_total if im2col else Cin) * x_isz
        return xb + ob + wb + tmp

    TRo = _pick_row_tile(Hout, Wout, est_vmem,
                         min_tiles=2 if (N == 1 and Hout > 1) else 1)
    SH = (TRo - 1) * stride + KH
    n_row_tiles = Hout // TRo
    # Megacore: when batch can't provide 2 parallel steps, split row tiles
    # onto an extra parallel axis.
    G = 2 if (N == 1 and n_row_tiles >= 2 and n_row_tiles % 2 == 0) else 1
    R = n_row_tiles // G

    if im2col:
        w_k = w.reshape(K_total, Cout).astype(compute_dtype)
        w_spec = pl.BlockSpec((K_total, Cout), lambda n_, g_, r_: (0, 0))
    else:
        w_k = w.reshape(KH * KW, Cin, Cout).astype(compute_dtype)
        w_spec = pl.BlockSpec((KH * KW, Cin, Cout),
                              lambda n_, g_, r_: (0, 0, 0))
    b_k = b.reshape(1, Cout).astype(jnp.float32)

    kernel = functools.partial(
        _conv_bn_relu_kernel, KH=KH, KW=KW, stride=stride,
        TRo=TRo, Wout=Wout, SH=SH, im2col=im2col, flatten=flatten)

    vmem_limit = int(min(max(2 * est_vmem(TRo), 48 << 20), 126 << 20))

    out = pl.pallas_call(
        kernel,
        out_shape=jax.ShapeDtypeStruct((N, Hout, Wout, Cout), out_dtype),
        grid_spec=pltpu.PrefetchScalarGridSpec(
            num_scalar_prefetch=0,
            grid=(N, G, R),
            in_specs=[
                pl.BlockSpec(memory_space=pl.ANY),        # x stays in HBM
                w_spec,                                   # VMEM-resident
                pl.BlockSpec((1, Cout), lambda n_, g_, r_: (0, 0)),
            ],
            out_specs=pl.BlockSpec((None, TRo, Wout, Cout),
                                   lambda n_, g_, r_: (n_, g_ * R + r_, 0, 0)),
            scratch_shapes=[
                pltpu.VMEM((2, SH, Wp, Cin), compute_dtype),   # slab x2
                pltpu.SemaphoreType.DMA((2,)),
            ]),
        compiler_params=pltpu.CompilerParams(
            dimension_semantics=("parallel", "parallel", "arbitrary"),
            vmem_limit_bytes=vmem_limit),
    )(xp, w_k, b_k)

    return jnp.transpose(out, (0, 3, 1, 2))                # back to NCHW


# ----------------------------------------------------------------------------
# Pure-JAX reference (conv + BN + ReLU, matching PyTorch eval mode)
# ----------------------------------------------------------------------------
def basic_conv2d_reference(x_nchw, w_hwio, bn, *, stride=1, padding=0):
    gamma, beta, mean, var, eps = bn
    x = jnp.transpose(x_nchw, (0, 2, 3, 1)).astype(jnp.float32)
    y = lax.conv_general_dilated(
        x, w_hwio.astype(jnp.float32), (stride, stride),
        [(padding, padding), (padding, padding)],
        dimension_numbers=("NHWC", "HWIO", "NHWC"))
    y = (y - mean) / jnp.sqrt(var + eps) * gamma + beta
    y = jnp.maximum(y, 0.0)
    return jnp.transpose(y, (0, 3, 1, 2))


# ----------------------------------------------------------------------------
# Deterministic synthetic parameters
# ----------------------------------------------------------------------------
def make_params(key, Cin, Cout, KH, KW):
    k1, k2, k3, k4, k5 = jax.random.split(key, 5)
    w = jax.random.normal(k1, (KH, KW, Cin, Cout), jnp.float32) * 0.05
    gamma = 0.5 + jax.random.uniform(k2, (Cout,), jnp.float32)
    beta = jax.random.normal(k3, (Cout,), jnp.float32) * 0.1
    mean = jax.random.normal(k4, (Cout,), jnp.float32) * 0.1
    var = 0.5 + jax.random.uniform(k5, (Cout,), jnp.float32)
    return w, (gamma, beta, mean, var, 1e-3)


# ----------------------------------------------------------------------------
if __name__ == "__main__":
    root = jax.random.PRNGKey(0)

    def run_case(key, N, Cin, H, W, Cout, ksize, stride, padding, *,
                 compute_dtype=jnp.float32, out_dtype=jnp.float32,
                 atol=1e-3, rtol=1e-3):
        kx, kp = jax.random.split(key)
        x = jax.random.normal(kx, (N, Cin, H, W), jnp.float32)
        w, bn = make_params(kp, Cin, Cout, ksize, ksize)
        out = jax.block_until_ready(basic_conv2d(
            x, w, bn, stride=stride, padding=padding,
            compute_dtype=compute_dtype, out_dtype=out_dtype))
        ref = jax.block_until_ready(basic_conv2d_reference(
            x, w, bn, stride=stride, padding=padding))
        o32 = out.astype(jnp.float32)
        assert out.shape == ref.shape, (out.shape, ref.shape)
        assert bool(jnp.all(jnp.isfinite(o32)))
        err = float(jnp.max(jnp.abs(o32 - ref)))
        assert bool(jnp.allclose(o32, ref, atol=atol, rtol=rtol)), err

    keys = jax.random.split(root, 6)
    # 3x3 s1 p1, Cin=Cout=128: per-tap path, 2 row tiles/batch element
    # (exercises double-buffered slab prefetch), flattened M=512 matmuls.
    run_case(keys[0], 2, 128, 32, 32, 128, 3, 1, 1, compute_dtype=jnp.float32)
    # Same shape on the default bf16 compute path (v6e/v7x MXU), bf16 out.
    run_case(keys[1], 2, 128, 32, 32, 128, 3, 1, 1,
             compute_dtype=jnp.bfloat16, out_dtype=jnp.bfloat16,
             atol=2e-1, rtol=1e-1)
    # 1x1 s1: single pointwise matmul path.
    run_case(keys[2], 2, 128, 16, 16, 64, 1, 1, 0, compute_dtype=jnp.float32)
    # 3x3 s2 p0: strided taps, rank-3 fallback (Wout=7 not 8-aligned).
    run_case(keys[3], 2, 128, 15, 15, 128, 3, 2, 0, compute_dtype=jnp.float32)
    # Small Cin: concatenated-tap im2col path (deep K), bf16.
    run_case(keys[4], 2, 32, 16, 16, 64, 3, 1, 1,
             compute_dtype=jnp.bfloat16, out_dtype=jnp.bfloat16,
             atol=1e-1, rtol=1e-1)
    # N=1: row tiles split onto the extra parallel axis (G=2) for megacore.
    run_case(keys[5], 1, 128, 16, 16, 128, 3, 1, 1, compute_dtype=jnp.float32)

    print("KERNEL_OK")
</pallas_src>

<mosaic_0001>
module attributes {stable_mosaic.version = 11 : i64} {
  func.func @_conv_bn_relu_kernel(%arg0: i32, %arg1: i32, %arg2: i32, %arg3: memref<2x34x34x128xf32, #tpu.memory_space<any>>, %arg4: memref<9x128x128xf32, #tpu.memory_space<vmem>>, %arg5: memref<1x128xf32, #tpu.memory_space<vmem>>, %arg6: memref<1x16x32x128xf32, #tpu.memory_space<vmem>>, %arg7: memref<2x18x34x128xf32, #tpu.memory_space<vmem>>, %arg8: memref<2x!tpu.dma_semaphore, #tpu.memory_space<semaphore_mem>>) attributes {dimension_semantics = [#tpu.dimension_semantics<parallel>, #tpu.dimension_semantics<parallel>, #tpu.dimension_semantics<arbitrary>], iteration_bounds = array<i64: 2, 1, 2>, scalar_prefetch = 0 : i64, scratch_operands = 2 : i64, tpu.core_type = #tpu.core_type<tc>, window_params = [{}, {pipeline_mode = #tpu.pipeline_mode<synchronous>, transform_indices = @transform_1, window_bounds = array<i64: 9, 128, 128>}, {pipeline_mode = #tpu.pipeline_mode<synchronous>, transform_indices = @transform_2, window_bounds = array<i64: 1, 128>}, {transform_indices = @transform_3, window_bounds = array<i64: 1, 16, 32, 128>}]} {
    %c2_i32 = arith.constant 2 : i32
    %0 = arith.muli %arg1, %c2_i32 : i32
    %1 = arith.addi %0, %arg2 : i32
    %c2_i32_0 = arith.constant 2 : i32
    %c0_i32 = arith.constant 0 : i32
    %2 = arith.cmpi eq, %c2_i32_0, %c0_i32 : i32
    %c1_i32 = arith.constant 1 : i32
    %3 = arith.select %2, %c1_i32, %c2_i32_0 : i32
    %4 = arith.remsi %arg2, %3 : i32
    %c0_i32_1 = arith.constant 0 : i32
    %5 = arith.cmpi ne, %4, %c0_i32_1 : i32
    %c0_i32_2 = arith.constant 0 : i32
    %6 = arith.cmpi slt, %4, %c0_i32_2 : i32
    %c0_i32_3 = arith.constant 0 : i32
    %7 = arith.cmpi slt, %3, %c0_i32_3 : i32
    %8 = arith.xori %6, %7 : i1
    %9 = arith.andi %8, %5 : i1
    %10 = arith.addi %4, %3 : i32
    %11 = arith.select %9, %10, %4 : i32
    %c0_i32_4 = arith.constant 0 : i32
    %12 = arith.cmpi eq, %arg2, %c0_i32_4 : i32
    %13 = arith.extui %12 : i1 to i32
    %c0_i32_5 = arith.constant 0 : i32
    %14 = arith.cmpi ne, %13, %c0_i32_5 : i32
    scf.if %14 {
      %c16_i32_74 = arith.constant 16 : i32
      %107 = arith.muli %1, %c16_i32_74 : i32
      %c0_i32_75 = arith.constant 0 : i32
      %c0_i32_76 = arith.constant 0 : i32
      %108 = tpu.memref_slice %arg3[%arg0, %107, %c0_i32_75, %c0_i32_76] : memref<2x34x34x128xf32, #tpu.memory_space<any>> -> memref<1x18x34x128xf32, #tpu.memory_space<any>>
      %109 = tpu.memref_squeeze %108 : memref<1x18x34x128xf32, #tpu.memory_space<any>> -> memref<18x34x128xf32, #tpu.memory_space<any>>
      %c0_i32_77 = arith.constant 0 : i32
      %c0_i32_78 = arith.constant 0 : i32
      %c0_i32_79 = arith.constant 0 : i32
      %110 = tpu.memref_slice %arg7[%11, %c0_i32_77, %c0_i32_78, %c0_i32_79] : memref<2x18x34x128xf32, #tpu.memory_space<vmem>> -> memref<1x18x34x128xf32, #tpu.memory_space<vmem>>
      %111 = tpu.memref_squeeze %110 : memref<1x18x34x128xf32, #tpu.memory_space<vmem>> -> memref<18x34x128xf32, #tpu.memory_space<vmem>>
      %112 = tpu.memref_slice %arg8[%11] : memref<2x!tpu.dma_semaphore, #tpu.memory_space<semaphore_mem>> -> memref<1x!tpu.dma_semaphore, #tpu.memory_space<semaphore_mem>>
      %113 = tpu.memref_squeeze %112 : memref<1x!tpu.dma_semaphore, #tpu.memory_space<semaphore_mem>> -> memref<!tpu.dma_semaphore, #tpu.memory_space<semaphore_mem>>
      tpu.enqueue_dma source(%109 : memref<18x34x128xf32, #tpu.memory_space<any>>) target(%111 : memref<18x34x128xf32, #tpu.memory_space<vmem>>) target_semaphore(%113 : memref<!tpu.dma_semaphore, #tpu.memory_space<semaphore_mem>>)
    } else {
    }
    %c1_i32_6 = arith.constant 1 : i32
    %15 = arith.addi %arg2, %c1_i32_6 : i32
    %c2_i32_7 = arith.constant 2 : i32
    %16 = arith.cmpi slt, %15, %c2_i32_7 : i32
    %17 = arith.extui %16 : i1 to i32
    %c0_i32_8 = arith.constant 0 : i32
    %18 = arith.cmpi ne, %17, %c0_i32_8 : i32
    scf.if %18 {
      %c1_i32_74 = arith.constant 1 : i32
      %107 = arith.addi %1, %c1_i32_74 : i32
      %c1_i32_75 = arith.constant 1 : i32
      %108 = arith.addi %arg2, %c1_i32_75 : i32
      %c2_i32_76 = arith.constant 2 : i32
      %c0_i32_77 = arith.constant 0 : i32
      %109 = arith.cmpi eq, %c2_i32_76, %c0_i32_77 : i32
      %c1_i32_78 = arith.constant 1 : i32
      %110 = arith.select %109, %c1_i32_78, %c2_i32_76 : i32
      %111 = arith.remsi %108, %110 : i32
      %c0_i32_79 = arith.constant 0 : i32
      %112 = arith.cmpi ne, %111, %c0_i32_79 : i32
      %c0_i32_80 = arith.constant 0 : i32
      %113 = arith.cmpi slt, %111, %c0_i32_80 : i32
      %c0_i32_81 = arith.constant 0 : i32
      %114 = arith.cmpi slt, %110, %c0_i32_81 : i32
      %115 = arith.xori %113, %114 : i1
      %116 = arith.andi %115, %112 : i1
      %117 = arith.addi %111, %110 : i32
      %118 = arith.select %116, %117, %111 : i32
      %c16_i32_82 = arith.constant 16 : i32
      %119 = arith.muli %107, %c16_i32_82 : i32
      %c0_i32_83 = arith.constant 0 : i32
      %c0_i32_84 = arith.constant 0 : i32
      %120 = tpu.memref_slice %arg3[%arg0, %119, %c0_i32_83, %c0_i32_84] : memref<2x34x34x128xf32, #tpu.memory_space<any>> -> memref<1x18x34x128xf32, #tpu.memory_space<any>>
      %121 = tpu.memref_squeeze %120 : memref<1x18x34x128xf32, #tpu.memory_space<any>> -> memref<18x34x128xf32, #tpu.memory_space<any>>
      %c0_i32_85 = arith.constant 0 : i32
      %c0_i32_86 = arith.constant 0 : i32
      %c0_i32_87 = arith.constant 0 : i32
      %122 = tpu.memref_slice %arg7[%118, %c0_i32_85, %c0_i32_86, %c0_i32_87] : memref<2x18x34x128xf32, #tpu.memory_space<vmem>> -> memref<1x18x34x128xf32, #tpu.memory_space<vmem>>
      %123 = tpu.memref_squeeze %122 : memref<1x18x34x128xf32, #tpu.memory_space<vmem>> -> memref<18x34x128xf32, #tpu.memory_space<vmem>>
      %124 = tpu.memref_slice %arg8[%118] : memref<2x!tpu.dma_semaphore, #tpu.memory_space<semaphore_mem>> -> memref<1x!tpu.dma_semaphore, #tpu.memory_space<semaphore_mem>>
      %125 = tpu.memref_squeeze %124 : memref<1x!tpu.dma_semaphore, #tpu.memory_space<semaphore_mem>> -> memref<!tpu.dma_semaphore, #tpu.memory_space<semaphore_mem>>
      tpu.enqueue_dma source(%121 : memref<18x34x128xf32, #tpu.memory_space<any>>) target(%123 : memref<18x34x128xf32, #tpu.memory_space<vmem>>) target_semaphore(%125 : memref<!tpu.dma_semaphore, #tpu.memory_space<semaphore_mem>>)
    } else {
    }
    %c16_i32 = arith.constant 16 : i32
    %19 = arith.muli %1, %c16_i32 : i32
    %c0_i32_9 = arith.constant 0 : i32
    %c0_i32_10 = arith.constant 0 : i32
    %20 = tpu.memref_slice %arg3[%arg0, %19, %c0_i32_9, %c0_i32_10] : memref<2x34x34x128xf32, #tpu.memory_space<any>> -> memref<1x18x34x128xf32, #tpu.memory_space<any>>
    %21 = tpu.memref_squeeze %20 : memref<1x18x34x128xf32, #tpu.memory_space<any>> -> memref<18x34x128xf32, #tpu.memory_space<any>>
    %c0_i32_11 = arith.constant 0 : i32
    %c0_i32_12 = arith.constant 0 : i32
    %c0_i32_13 = arith.constant 0 : i32
    %22 = tpu.memref_slice %arg7[%11, %c0_i32_11, %c0_i32_12, %c0_i32_13] : memref<2x18x34x128xf32, #tpu.memory_space<vmem>> -> memref<1x18x34x128xf32, #tpu.memory_space<vmem>>
    %23 = tpu.memref_squeeze %22 : memref<1x18x34x128xf32, #tpu.memory_space<vmem>> -> memref<18x34x128xf32, #tpu.memory_space<vmem>>
    %24 = tpu.memref_slice %arg8[%11] : memref<2x!tpu.dma_semaphore, #tpu.memory_space<semaphore_mem>> -> memref<1x!tpu.dma_semaphore, #tpu.memory_space<semaphore_mem>>
    %25 = tpu.memref_squeeze %24 : memref<1x!tpu.dma_semaphore, #tpu.memory_space<semaphore_mem>> -> memref<!tpu.dma_semaphore, #tpu.memory_space<semaphore_mem>>
    tpu.wait_dma2 semaphore(%25 : memref<!tpu.dma_semaphore, #tpu.memory_space<semaphore_mem>>) src(%21 : memref<18x34x128xf32, #tpu.memory_space<any>>) dst(%23 : memref<18x34x128xf32, #tpu.memory_space<vmem>>)
    %c0 = arith.constant 0 : index
    %c0_14 = arith.constant 0 : index
    %26 = vector.load %arg5[%c0, %c0_14] : memref<1x128xf32, #tpu.memory_space<vmem>>, vector<1x128xf32>
    %27 = vector.shape_cast %26 : vector<1x128xf32> to vector<1x128xf32>
    %28 = vector.broadcast %27 : vector<1x128xf32> to vector<512x128xf32>
    %29 = arith.index_cast %11 : i32 to index
    %c0_15 = arith.constant 0 : index
    %c0_16 = arith.constant 0 : index
    %c0_17 = arith.constant 0 : index
    %30 = vector.load %arg7[%29, %c0_15, %c0_16, %c0_17] : memref<2x18x34x128xf32, #tpu.memory_space<vmem>>, vector<1x16x32x128xf32>
    %31 = vector.shape_cast %30 : vector<1x16x32x128xf32> to vector<16x32x128xf32>
    %32 = vector.shape_cast %31 : vector<16x32x128xf32> to vector<512x128xf32>
    %c0_18 = arith.constant 0 : index
    %c0_19 = arith.constant 0 : index
    %c0_20 = arith.constant 0 : index
    %33 = vector.load %arg4[%c0_18, %c0_19, %c0_20] : memref<9x128x128xf32, #tpu.memory_space<vmem>>, vector<1x128x128xf32>
    %34 = vector.shape_cast %33 : vector<1x128x128xf32> to vector<128x128xf32>
    %cst = arith.constant dense<0.000000e+00> : vector<512x128xf32>
    %35 = tpu.matmul %32, %34, %cst {dimension_numbers = #tpu.dot_dimension_numbers<[1], [0], [0], [1], [0, 0, 1, 1], [], []>} : vector<512x128xf32>, vector<128x128xf32>, vector<512x128xf32> -> vector<512x128xf32>
    %36 = arith.addf %28, %35 : vector<512x128xf32>
    %37 = arith.index_cast %11 : i32 to index
    %c0_21 = arith.constant 0 : index
    %c1 = arith.constant 1 : index
    %c0_22 = arith.constant 0 : index
    %38 = vector.load %arg7[%37, %c0_21, %c1, %c0_22] : memref<2x18x34x128xf32, #tpu.memory_space<vmem>>, vector<1x16x32x128xf32>
    %39 = vector.shape_cast %38 : vector<1x16x32x128xf32> to vector<16x32x128xf32>
    %40 = vector.shape_cast %39 : vector<16x32x128xf32> to vector<512x128xf32>
    %c1_23 = arith.constant 1 : index
    %c0_24 = arith.constant 0 : index
    %c0_25 = arith.constant 0 : index
    %41 = vector.load %arg4[%c1_23, %c0_24, %c0_25] : memref<9x128x128xf32, #tpu.memory_space<vmem>>, vector<1x128x128xf32>
    %42 = vector.shape_cast %41 : vector<1x128x128xf32> to vector<128x128xf32>
    %cst_26 = arith.constant dense<0.000000e+00> : vector<512x128xf32>
    %43 = tpu.matmul %40, %42, %cst_26 {dimension_numbers = #tpu.dot_dimension_numbers<[1], [0], [0], [1], [0, 0, 1, 1], [], []>} : vector<512x128xf32>, vector<128x128xf32>, vector<512x128xf32> -> vector<512x128xf32>
    %44 = arith.addf %36, %43 : vector<512x128xf32>
    %45 = arith.index_cast %11 : i32 to index
    %c0_27 = arith.constant 0 : index
    %c2 = arith.constant 2 : index
    %c0_28 = arith.constant 0 : index
    %46 = vector.load %arg7[%45, %c0_27, %c2, %c0_28] : memref<2x18x34x128xf32, #tpu.memory_space<vmem>>, vector<1x16x32x128xf32>
    %47 = vector.shape_cast %46 : vector<1x16x32x128xf32> to vector<16x32x128xf32>
    %48 = vector.shape_cast %47 : vector<16x32x128xf32> to vector<512x128xf32>
    %c2_29 = arith.constant 2 : index
    %c0_30 = arith.constant 0 : index
    %c0_31 = arith.constant 0 : index
    %49 = vector.load %arg4[%c2_29, %c0_30, %c0_31] : memref<9x128x128xf32, #tpu.memory_space<vmem>>, vector<1x128x128xf32>
    %50 = vector.shape_cast %49 : vector<1x128x128xf32> to vector<128x128xf32>
    %cst_32 = arith.constant dense<0.000000e+00> : vector<512x128xf32>
    %51 = tpu.matmul %48, %50, %cst_32 {dimension_numbers = #tpu.dot_dimension_numbers<[1], [0], [0], [1], [0, 0, 1, 1], [], []>} : vector<512x128xf32>, vector<128x128xf32>, vector<512x128xf32> -> vector<512x128xf32>
    %52 = arith.addf %44, %51 : vector<512x128xf32>
    %53 = arith.index_cast %11 : i32 to index
    %c1_33 = arith.constant 1 : index
    %c0_34 = arith.constant 0 : index
    %c0_35 = arith.constant 0 : index
    %54 = vector.load %arg7[%53, %c1_33, %c0_34, %c0_35] : memref<2x18x34x128xf32, #tpu.memory_space<vmem>>, vector<1x16x32x128xf32>
    %55 = vector.shape_cast %54 : vector<1x16x32x128xf32> to vector<16x32x128xf32>
    %56 = vector.shape_cast %55 : vector<16x32x128xf32> to vector<512x128xf32>
    %c3 = arith.constant 3 : index
    %c0_36 = arith.constant 0 : index
    %c0_37 = arith.constant 0 : index
    %57 = vector.load %arg4[%c3, %c0_36, %c0_37] : memref<9x128x128xf32, #tpu.memory_space<vmem>>, vector<1x128x128xf32>
    %58 = vector.shape_cast %57 : vector<1x128x128xf32> to vector<128x128xf32>
    %cst_38 = arith.constant dense<0.000000e+00> : vector<512x128xf32>
    %59 = tpu.matmul %56, %58, %cst_38 {dimension_numbers = #tpu.dot_dimension_numbers<[1], [0], [0], [1], [0, 0, 1, 1], [], []>} : vector<512x128xf32>, vector<128x128xf32>, vector<512x128xf32> -> vector<512x128xf32>
    %60 = arith.addf %52, %59 : vector<512x128xf32>
    %61 = arith.index_cast %11 : i32 to index
    %c1_39 = arith.constant 1 : index
    %c1_40 = arith.constant 1 : index
    %c0_41 = arith.constant 0 : index
    %62 = vector.load %arg7[%61, %c1_39, %c1_40, %c0_41] : memref<2x18x34x128xf32, #tpu.memory_space<vmem>>, vector<1x16x32x128xf32>
    %63 = vector.shape_cast %62 : vector<1x16x32x128xf32> to vector<16x32x128xf32>
    %64 = vector.shape_cast %63 : vector<16x32x128xf32> to vector<512x128xf32>
    %c4 = arith.constant 4 : index
    %c0_42 = arith.constant 0 : index
    %c0_43 = arith.constant 0 : index
    %65 = vector.load %arg4[%c4, %c0_42, %c0_43] : memref<9x128x128xf32, #tpu.memory_space<vmem>>, vector<1x128x128xf32>
    %66 = vector.shape_cast %65 : vector<1x128x128xf32> to vector<128x128xf32>
    %cst_44 = arith.constant dense<0.000000e+00> : vector<512x128xf32>
    %67 = tpu.matmul %64, %66, %cst_44 {dimension_numbers = #tpu.dot_dimension_numbers<[1], [0], [0], [1], [0, 0, 1, 1], [], []>} : vector<512x128xf32>, vector<128x128xf32>, vector<512x128xf32> -> vector<512x128xf32>
    %68 = arith.addf %60, %67 : vector<512x128xf32>
    %69 = arith.index_cast %11 : i32 to index
    %c1_45 = arith.constant 1 : index
    %c2_46 = arith.constant 2 : index
    %c0_47 = arith.constant 0 : index
    %70 = vector.load %arg7[%69, %c1_45, %c2_46, %c0_47] : memref<2x18x34x128xf32, #tpu.memory_space<vmem>>, vector<1x16x32x128xf32>
    %71 = vector.shape_cast %70 : vector<1x16x32x128xf32> to vector<16x32x128xf32>
    %72 = vector.shape_cast %71 : vector<16x32x128xf32> to vector<512x128xf32>
    %c5 = arith.constant 5 : index
    %c0_48 = arith.constant 0 : index
    %c0_49 = arith.constant 0 : index
    %73 = vector.load %arg4[%c5, %c0_48, %c0_49] : memref<9x128x128xf32, #tpu.memory_space<vmem>>, vector<1x128x128xf32>
    %74 = vector.shape_cast %73 : vector<1x128x128xf32> to vector<128x128xf32>
    %cst_50 = arith.constant dense<0.000000e+00> : vector<512x128xf32>
    %75 = tpu.matmul %72, %74, %cst_50 {dimension_numbers = #tpu.dot_dimension_numbers<[1], [0], [0], [1], [0, 0, 1, 1], [], []>} : vector<512x128xf32>, vector<128x128xf32>, vector<512x128xf32> -> vector<512x128xf32>
    %76 = arith.addf %68, %75 : vector<512x128xf32>
    %77 = arith.index_cast %11 : i32 to index
    %c2_51 = arith.constant 2 : index
    %c0_52 = arith.constant 0 : index
    %c0_53 = arith.constant 0 : index
    %78 = vector.load %arg7[%77, %c2_51, %c0_52, %c0_53] : memref<2x18x34x128xf32, #tpu.memory_space<vmem>>, vector<1x16x32x128xf32>
    %79 = vector.shape_cast %78 : vector<1x16x32x128xf32> to vector<16x32x128xf32>
    %80 = vector.shape_cast %79 : vector<16x32x128xf32> to vector<512x128xf32>
    %c6 = arith.constant 6 : index
    %c0_54 = arith.constant 0 : index
    %c0_55 = arith.constant 0 : index
    %81 = vector.load %arg4[%c6, %c0_54, %c0_55] : memref<9x128x128xf32, #tpu.memory_space<vmem>>, vector<1x128x128xf32>
    %82 = vector.shape_cast %81 : vector<1x128x128xf32> to vector<128x128xf32>
    %cst_56 = arith.constant dense<0.000000e+00> : vector<512x128xf32>
    %83 = tpu.matmul %80, %82, %cst_56 {dimension_numbers = #tpu.dot_dimension_numbers<[1], [0], [0], [1], [0, 0, 1, 1], [], []>} : vector<512x128xf32>, vector<128x128xf32>, vector<512x128xf32> -> vector<512x128xf32>
    %84 = arith.addf %76, %83 : vector<512x128xf32>
    %85 = arith.index_cast %11 : i32 to index
    %c2_57 = arith.constant 2 : index
    %c1_58 = arith.constant 1 : index
    %c0_59 = arith.constant 0 : index
    %86 = vector.load %arg7[%85, %c2_57, %c1_58, %c0_59] : memref<2x18x34x128xf32, #tpu.memory_space<vmem>>, vector<1x16x32x128xf32>
    %87 = vector.shape_cast %86 : vector<1x16x32x128xf32> to vector<16x32x128xf32>
    %88 = vector.shape_cast %87 : vector<16x32x128xf32> to vector<512x128xf32>
    %c7 = arith.constant 7 : index
    %c0_60 = arith.constant 0 : index
    %c0_61 = arith.constant 0 : index
    %89 = vector.load %arg4[%c7, %c0_60, %c0_61] : memref<9x128x128xf32, #tpu.memory_space<vmem>>, vector<1x128x128xf32>
    %90 = vector.shape_cast %89 : vector<1x128x128xf32> to vector<128x128xf32>
    %cst_62 = arith.constant dense<0.000000e+00> : vector<512x128xf32>
    %91 = tpu.matmul %88, %90, %cst_62 {dimension_numbers = #tpu.dot_dimension_numbers<[1], [0], [0], [1], [0, 0, 1, 1], [], []>} : vector<512x128xf32>, vector<128x128xf32>, vector<512x128xf32> -> vector<512x128xf32>
    %92 = arith.addf %84, %91 : vector<512x128xf32>
    %93 = arith.index_cast %11 : i32 to index
    %c2_63 = arith.constant 2 : index
    %c2_64 = arith.constant 2 : index
    %c0_65 = arith.constant 0 : index
    %94 = vector.load %arg7[%93, %c2_63, %c2_64, %c0_65] : memref<2x18x34x128xf32, #tpu.memory_space<vmem>>, vector<1x16x32x128xf32>
    %95 = vector.shape_cast %94 : vector<1x16x32x128xf32> to vector<16x32x128xf32>
    %96 = vector.shape_cast %95 : vector<16x32x128xf32> to vector<512x128xf32>
    %c8 = arith.constant 8 : index
    %c0_66 = arith.constant 0 : index
    %c0_67 = arith.constant 0 : index
    %97 = vector.load %arg4[%c8, %c0_66, %c0_67] : memref<9x128x128xf32, #tpu.memory_space<vmem>>, vector<1x128x128xf32>
    %98 = vector.shape_cast %97 : vector<1x128x128xf32> to vector<128x128xf32>
    %cst_68 = arith.constant dense<0.000000e+00> : vector<512x128xf32>
    %99 = tpu.matmul %96, %98, %cst_68 {dimension_numbers = #tpu.dot_dimension_numbers<[1], [0], [0], [1], [0, 0, 1, 1], [], []>} : vector<512x128xf32>, vector<128x128xf32>, vector<512x128xf32> -> vector<512x128xf32>
    %100 = arith.addf %92, %99 : vector<512x128xf32>
    %cst_69 = arith.constant 0.000000e+00 : f32
    %101 = vector.broadcast %cst_69 : f32 to vector<512x128xf32>
    %102 = arith.maximumf %100, %101 : vector<512x128xf32>
    %103 = vector.shape_cast %102 : vector<512x128xf32> to vector<16x32x128xf32>
    %c0_70 = arith.constant 0 : index
    %c0_71 = arith.constant 0 : index
    %c0_72 = arith.constant 0 : index
    %c0_73 = arith.constant 0 : index
    %104 = vector.load %arg6[%c0_70, %c0_71, %c0_72, %c0_73] : memref<1x16x32x128xf32, #tpu.memory_space<vmem>>, vector<1x16x32x128xf32>
    %105 = vector.shape_cast %104 : vector<1x16x32x128xf32> to vector<16x32x128xf32>
    %106 = vector.shape_cast %103 : vector<16x32x128xf32> to vector<1x16x32x128xf32>
    tpu.vector_store %arg6[%c0_70, %c0_71, %c0_72, %c0_73], %106 {strides = array<i32>} : memref<1x16x32x128xf32, #tpu.memory_space<vmem>>, vector<1x16x32x128xf32>,
    return
  }
  func.func @transform_1(%arg0: i32, %arg1: i32, %arg2: i32) -> (i32, i32, i32) {
    %c0_i32 = arith.constant 0 : i32
    %c0_i32_0 = arith.constant 0 : i32
    %c0_i32_1 = arith.constant 0 : i32
    %c0_i32_2 = arith.constant 0 : i32
    return %c0_i32, %c0_i32_0, %c0_i32_1 : i32, i32, i32
  }
  func.func @transform_2(%arg0: i32, %arg1: i32, %arg2: i32) -> (i32, i32) {
    %c0_i32 = arith.constant 0 : i32
    %c0_i32_0 = arith.constant 0 : i32
    %c0_i32_1 = arith.constant 0 : i32
    return %c0_i32, %c0_i32_0 : i32, i32
  }
  func.func @transform_3(%arg0: i32, %arg1: i32, %arg2: i32) -> (i32, i32, i32, i32) {
    %c2_i32 = arith.constant 2 : i32
    %0 = arith.muli %arg1, %c2_i32 : i32
    %1 = arith.addi %0, %arg2 : i32
    %c0_i32 = arith.constant 0 : i32
    %c0_i32_0 = arith.constant 0 : i32
    %c0_i32_1 = arith.constant 0 : i32
    return %arg0, %1, %c0_i32, %c0_i32_0 : i32, i32, i32, i32
  }
}

</mosaic_0001>

<bundles_post_ra>
// kernel: tpu_custom_call.1
= control target key start
LH: loop header
LB: loop body
LE: loop exit
PB: predicated region body
PF: predicated region fallthrough
CT: control target
= control target key end

     0   :  { %8 = vsyncpa [#allocation5], 0  ;;  %s7176_s0 = inlined_call_operand.vmem [shape: f32[2,34,34,128], index: 0, kind: input, shape index: {}]   ;;  %s7177_s1 = inlined_call_operand.vmem [shape: f32[9,128,128], index: 1, kind: input, shape index: {}]   ;;  %s7178_s2 = inlined_call_operand.vmem [shape: f32[1,128], index: 2, kind: input, shape index: {}]   ;;  %s7179_s3 = inlined_call_operand.hbm [shape: f32[2,32,32,128], index: 3, kind: output, shape index: {}]  }
   0x1   :  { %10 = vsyncpa [#allocation5 + $0x1], 0  ;;  %s5016_s12 = smov 0   ;;  %s5018_s13 = smov 0  }
   0x2   :  { %s5020_s14 = smov 0   ;;  %s5022_s15 = smov 0  }
   0x3   :  { %s5024_s16 = smov 0   ;;  %s5026_s17 = smov 0  }
   0x4   :  { %s5028_s18 = smov 0   ;;  %s5030_s19 = smov 0  }
   0x5 LB: > { %s4091_s20 = sadd.s32 4294967295, %s4992_s19   ;;  %s4092_s21 = sadd.s32 4294967294, %s4992_s19   ;;  %s4992_s19 = sphi %s5030_s19, %s16_s19   ;;  %s4988_s18 = sphi %s5028_s18, %s7284_s18   ;;  %s4984_s17 = sphi %s5026_s17, %s7283_s17   ;;  %s4980_s16 = sphi %s5024_s16, %s7282_s16   ;;  %s4976_s15 = sphi %s5022_s15, %s7281_s15   ;;  %s4972_s14 = sphi %s5020_s14, %s7280_s14   ;;  %s4968_s13 = sphi %s5018_s13, %s7279_s13   ;;  %s4964_s12 = sphi %s5016_s12, %s7278_s12  }
   0x6   : > { %s28_s22 = sadd.s32 1, %s4984_s17  ;;  %s35_s23 = sadd.s32 1, %s4988_s18 }
   0x7   : > { %p29_p0 = scmp.ge.s32.totalorder %s28_s22, 2  ;;  %p100_p1 = scmp.ne.s32.totalorder %s4972_s14, %s4968_s13 }
   0x8   : > { %p101_p2 = scmp.eq.s32.totalorder %s4091_s20, 3  ;;  %p106_p5 = scmp.ne.s32.totalorder %s4968_s13, %s4964_s12 }
   0x9   : > { %s7286_s22 = smov (%p29_p0, %s28_s22), 0  ;;  %s7288_s23 = smov (!%p29_p0, %s35_s23), %s4988_s18 }
   0xa   : > { %s86_s24 = ssub.s32 %s4984_s17, %s7286_s22  ;;  %p5067_p3 = por %p101_p2, %p100_p1 }
   0xb   : > { %p37_p4 = scmp.ge.s32.totalorder %s7288_s23, 2  ;;  %p107_p6 = scmp.eq.s32.totalorder %s4092_s21, 3 }
   0xc   : > { %p4094_p7 = scmp.ge.s32.totalorder %s4992_s19, 1  ;;  %p131_p9 = scmp.lt.s32.totalorder %s4992_s19, 5 }
   0xd   : > { %s7290_s23 = smov (%p37_p4, %s7288_s23), 0  ;;  %p5076_p8 = por %p107_p6, %p106_p5 }
   0xe   : > { %s85_s27 = ssub.s32 %s4988_s18, %s7290_s23  ;;  %s90_s28 = sadd.s32 1, %s4972_s14 }
   0xf   : > { %s87_s29 = sor.u32 %s86_s24, %s85_s27  ;;  %p132_p10 = pnand %p4094_p7, %p131_p9 }
  0x10   : > { %p88_p11 = scmp.eq.s32.totalorder %s87_s29, 0 }
  0x11   : > { %135 = sbr.rel (%p132_p10) target bundleno = 1553 (0x611), region = 28 }
  0x12   : > { %s5085_s30 = scalar_select %p88_p11, %s4972_s14, %s90_s28  }
  0x16   : > { %s7180_s4 = sand.u32 1, %s4968_s13   ;;  %p153_p12 = scmp.lt.s32.totalorder %s4976_s15, 0 }
  0x17   : > { %s4095_s5 = sshll.u32 %s7180_s4, 9  ;;  %s154_s6 = ssub.s32 0, %s4976_s15 }
  0x18   : > { %s4096_s7 = smin.u32 %s4976_s15, %s154_s6  ;;  %s5095_s11 = scalar_lea.vmem [#allocation4], %s4095_s5 }
  0x19   : > { %s156_s8 = sand.u32 1, %s4096_s7   ;;  %p4099_p0 = scmp.ne.s32.totalorder %s4976_s15, 0 }
  0x1a   : > { %s157_s9 = ssub.s32 0, %s156_s8  ;;  %s4101_s20 = smul.u32 (!%p4099_p0), 640, %s4976_s15 }
  0x1b   : > { %s7292_s9 = smov (!%p153_p12, %s157_s9), %s156_s8  ;;  %168 = sbr.rel (%p4099_p0) target bundleno = 125 (0x7d), region = 32 }
  0x1c   : > { %p4098_p13 = scmp.lt.s32.totalorder %s7292_s9, 0  ;;  %s163_s10 = sadd.s32 2, %s7292_s9 }
  0x1d   : > { %s171_s21 = smul.u32 (!%p4099_p0), 1360, %s4980_s16 }
  0x1e   : > { %s7294_s10 = smov (!%p4098_p13, %s163_s10), %s7292_s9 }
  0x1f   : > { %s174_s24 = smul.u32 (!%p4099_p0), 720, %s7294_s10  ;;  %s172_s27 = sadd.s32 (!%p4099_p0), %s4101_s20, %s171_s21 }
  0x20   : > { %s5104_s6 = scalar_lea.vmem %s7176_s0, %s172_s27  ;;  %s176_s7 = scalar_lea.sflag [#allocation3], %s7294_s10 }
  0x21   : > { %v189_v0 = vld [vmem:[%s5104_s6] sm:$0xff]  ;;  %v191_v1 = vld [vmem:[%s5104_s6 + $0x8] sm:$0xff]  ;;  %v193_v2 = vld [vmem:[%s5104_s6 + $0x10] sm:$0xff]  ;;  %s5109_s5 = scalar_lea.vmem [#allocation2], %s174_s24 }
  0x22   : > { %190 = vst [vmem:[%s5109_s5] sm:$0xff] %v189_v0  ;;  %v195_v3 = vld [vmem:[%s5104_s6 + $0x18] sm:$0xff]  ;;  %v197_v4 = vld [vmem:[%s5104_s6 + $0x28] sm:$0xff]  ;;  %v199_v5 = vld [vmem:[%s5104_s6 + $0x30] sm:$0xff] }
  0x23   : > { %192 = vst [vmem:[%s5109_s5 + $0x8] sm:$0xff] %v191_v1  ;;  %v201_v6 = vld [vmem:[%s5104_s6 + $0x38] sm:$0xff]  ;;  %v203_v7 = vld [vmem:[%s5104_s6 + $0x40] sm:$0xff]  ;;  %v205_v8 = vld [vmem:[%s5104_s6 + $0x50] sm:$0xff] }
  0x24   : > { %194 = vst [vmem:[%s5109_s5 + $0x10] sm:$0xff] %v193_v2  ;;  %v207_v9 = vld [vmem:[%s5104_s6 + $0x58] sm:$0xff]  ;;  %v209_v10 = vld [vmem:[%s5104_s6 + $0x60] sm:$0xff]  ;;  %v211_v11 = vld [vmem:[%s5104_s6 + $0x68] sm:$0xff] }
  0x25   : > { %196 = vst [vmem:[%s5109_s5 + $0x18] sm:$0xff] %v195_v3  ;;  %v213_v12 = vld [vmem:[%s5104_s6 + $0x78] sm:$0xff]  ;;  %v215_v13 = vld [vmem:[%s5104_s6 + $0x80] sm:$0xff]  ;;  %v217_v14 = vld [vmem:[%s5104_s6 + $0x88] sm:$0xff] }
  0x26   : > { %198 = vst [vmem:[%s5109_s5 + $0x28] sm:$0xff] %v197_v4  ;;  %v219_v15 = vld [vmem:[%s5104_s6 + $0x90] sm:$0xff]  ;;  %v221_v16 = vld [vmem:[%s5104_s6 + $0xa0] sm:$0xff]  ;;  %v223_v17 = vld [vmem:[%s5104_s6 + $0xa8] sm:$0xff] }
  0x27   : > { %200 = vst [vmem:[%s5109_s5 + $0x30] sm:$0xff] %v199_v5  ;;  %v225_v18 = vld [vmem:[%s5104_s6 + $0xb0] sm:$0xff]  ;;  %v227_v19 = vld [vmem:[%s5104_s6 + $0xb8] sm:$0xff]  ;;  %v229_v20 = vld [vmem:[%s5104_s6 + $0xc8] sm:$0xff] }
  0x28   : > { %202 = vst [vmem:[%s5109_s5 + $0x38] sm:$0xff] %v201_v6  ;;  %v231_v21 = vld [vmem:[%s5104_s6 + $0xd0] sm:$0xff]  ;;  %v233_v22 = vld [vmem:[%s5104_s6 + $0xd8] sm:$0xff]  ;;  %v235_v23 = vld [vmem:[%s5104_s6 + $0xe0] sm:$0xff] }
  0x29   : > { %204 = vst [vmem:[%s5109_s5 + $0x40] sm:$0xff] %v203_v7  ;;  %v237_v24 = vld [vmem:[%s5104_s6 + $0xf0] sm:$0xff]  ;;  %v239_v25 = vld [vmem:[%s5104_s6 + $0xf8] sm:$0xff]  ;;  %v241_v26 = vld [vmem:[%s5104_s6 + $0x100] sm:$0xff] }
  0x2a   : > { %206 = vst [vmem:[%s5109_s5 + $0x50] sm:$0xff] %v205_v8  ;;  %v243_v27 = vld [vmem:[%s5104_s6 + $0x108] sm:$0xff]  ;;  %v245_v28 = vld [vmem:[%s5104_s6 + $0x118] sm:$0xff]  ;;  %v247_v29 = vld [vmem:[%s5104_s6 + $0x120] sm:$0xff] }
  0x2b   : > { %208 = vst [vmem:[%s5109_s5 + $0x58] sm:$0xff] %v207_v9  ;;  %v249_v30 = vld [vmem:[%s5104_s6 + $0x128] sm:$0xff]  ;;  %v251_v31 = vld [vmem:[%s5104_s6 + $0x130] sm:$0xff]  ;;  %v253_v32 = vld [vmem:[%s5104_s6 + $0x140] sm:$0xff] }
  0x2c   : > { %210 = vst [vmem:[%s5109_s5 + $0x60] sm:$0xff] %v209_v10  ;;  %v255_v33 = vld [vmem:[%s5104_s6 + $0x148] sm:$0xff]  ;;  %v257_v34 = vld [vmem:[%s5104_s6 + $0x150] sm:$0xff]  ;;  %v259_v35 = vld [vmem:[%s5104_s6 + $0x158] sm:$0xff] }
  0x2d   : > { %212 = vst [vmem:[%s5109_s5 + $0x68] sm:$0xff] %v211_v11  ;;  %v261_v36 = vld [vmem:[%s5104_s6 + $0x168] sm:$0xff]  ;;  %v263_v37 = vld [vmem:[%s5104_s6 + $0x170] sm:$0xff]  ;;  %v265_v38 = vld [vmem:[%s5104_s6 + $0x178] sm:$0xff] }
  0x2e   : > { %214 = vst [vmem:[%s5109_s5 + $0x78] sm:$0xff] %v213_v12  ;;  %v267_v39 = vld [vmem:[%s5104_s6 + $0x180] sm:$0xff]  ;;  %v269_v40 = vld [vmem:[%s5104_s6 + $0x190] sm:$0xff]  ;;  %v271_v41 = vld [vmem:[%s5104_s6 + $0x198] sm:$0xff] }
  0x2f   : > { %216 = vst [vmem:[%s5109_s5 + $0x80] sm:$0xff] %v215_v13  ;;  %v273_v42 = vld [vmem:[%s5104_s6 + $0x1a0] sm:$0xff]  ;;  %v275_v43 = vld [vmem:[%s5104_s6 + $0x1a8] sm:$0xff]  ;;  %v277_v44 = vld [vmem:[%s5104_s6 + $0x1b8] sm:$0xff] }
  0x30   : > { %218 = vst [vmem:[%s5109_s5 + $0x88] sm:$0xff] %v217_v14  ;;  %v279_v45 = vld [vmem:[%s5104_s6 + $0x1c0] sm:$0xff]  ;;  %v281_v46 = vld [vmem:[%s5104_s6 + $0x1c8] sm:$0xff]  ;;  %v283_v47 = vld [vmem:[%s5104_s6 + $0x1d0] sm:$0xff] }
  0x31   : > { %220 = vst [vmem:[%s5109_s5 + $0x90] sm:$0xff] %v219_v15  ;;  %v285_v48 = vld [vmem:[%s5104_s6 + $0x1e0] sm:$0xff]  ;;  %v287_v49 = vld [vmem:[%s5104_s6 + $0x1e8] sm:$0xff]  ;;  %v289_v50 = vld [vmem:[%s5104_s6 + $0x1f0] sm:$0xff] }
  0x32   : > { %222 = vst [vmem:[%s5109_s5 + $0xa0] sm:$0xff] %v221_v16  ;;  %v291_v51 = vld [vmem:[%s5104_s6 + $0x1f8] sm:$0xff]  ;;  %v293_v52 = vld [vmem:[%s5104_s6 + $0x208] sm:$0xff]  ;;  %v295_v53 = vld [vmem:[%s5104_s6 + $0x210] sm:$0xff] }
  0x33   : > { %224 = vst [vmem:[%s5109_s5 + $0xa8] sm:$0xff] %v223_v17  ;;  %v297_v54 = vld [vmem:[%s5104_s6 + $0x218] sm:$0xff]  ;;  %v299_v55 = vld [vmem:[%s5104_s6 + $0x220] sm:$0xff]  ;;  %v301_v56 = vld [vmem:[%s5104_s6 + $0x230] sm:$0xff] }
  0x34   : > { %226 = vst [vmem:[%s5109_s5 + $0xb0] sm:$0xff] %v225_v18  ;;  %v303_v57 = vld [vmem:[%s5104_s6 + $0x238] sm:$0xff]  ;;  %v305_v58 = vld [vmem:[%s5104_s6 + $0x240] sm:$0xff]  ;;  %v307_v59 = vld [vmem:[%s5104_s6 + $0x248] sm:$0xff] }
  0x35   : > { %228 = vst [vmem:[%s5109_s5 + $0xb8] sm:$0xff] %v227_v19  ;;  %v309_v60 = vld [vmem:[%s5104_s6 + $0x258] sm:$0xff]  ;;  %v311_v61 = vld [vmem:[%s5104_s6 + $0x260] sm:$0xff]  ;;  %v313_v62 = vld [vmem:[%s5104_s6 + $0x268] sm:$0xff] }
  0x36   : > { %230 = vst [vmem:[%s5109_s5 + $0xc8] sm:$0xff] %v229_v20  ;;  %v315_v63 = vld [vmem:[%s5104_s6 + $0x270] sm:$0xff]  ;;  %v317_v0 = vld [vmem:[%s5104_s6 + $0x280] sm:$0xff]  ;;  %v319_v1 = vld [vmem:[%s5104_s6 + $0x288] sm:$0xff] }
  0x37   : > { %232 = vst [vmem:[%s5109_s5 + $0xd0] sm:$0xff] %v231_v21  ;;  %v321_v2 = vld [vmem:[%s5104_s6 + $0x290] sm:$0xff]  ;;  %v323_v3 = vld [vmem:[%s5104_s6 + $0x298] sm:$0xff]  ;;  %v325_v4 = vld [vmem:[%s5104_s6 + $0x2a8] sm:$0xff] }
  0x38   : > { %234 = vst [vmem:[%s5109_s5 + $0xd8] sm:$0xff] %v233_v22  ;;  %v327_v5 = vld [vmem:[%s5104_s6 + $0x2b0] sm:$0xff]  ;;  %v329_v6 = vld [vmem:[%s5104_s6 + $0x2b8] sm:$0xff]  ;;  %v331_v7 = vld [vmem:[%s5104_s6 + $0x2c0] sm:$0xff] }
  0x39   : > { %236 = vst [vmem:[%s5109_s5 + $0xe0] sm:$0xff] %v235_v23  ;;  %v4102_v8 = vld [vmem:[%s5104_s6 + $0x20] sm:$0x3]  ;;  %v4104_v9 = vld [vmem:[%s5104_s6 + $0x48] sm:$0x3] }
  0x3a   : > { %238 = vst [vmem:[%s5109_s5 + $0xf0] sm:$0xff] %v237_v24  ;;  %v4106_v10 = vld [vmem:[%s5104_s6 + $0x70] sm:$0x3]  ;;  %v4108_v11 = vld [vmem:[%s5104_s6 + $0x98] sm:$0x3] }
  0x3b   : > { %240 = vst [vmem:[%s5109_s5 + $0xf8] sm:$0xff] %v239_v25  ;;  %v4110_v12 = vld [vmem:[%s5104_s6 + $0xc0] sm:$0x3]  ;;  %v4112_v13 = vld [vmem:[%s5104_s6 + $0xe8] sm:$0x3] }
  0x3c   : > { %242 = vst [vmem:[%s5109_s5 + $0x100] sm:$0xff] %v241_v26  ;;  %v4114_v14 = vld [vmem:[%s5104_s6 + $0x110] sm:$0x3]  ;;  %v4116_v15 = vld [vmem:[%s5104_s6 + $0x138] sm:$0x3] }
  0x3d   : > { %244 = vst [vmem:[%s5109_s5 + $0x108] sm:$0xff] %v243_v27  ;;  %v4118_v16 = vld [vmem:[%s5104_s6 + $0x160] sm:$0x3]  ;;  %v4120_v17 = vld [vmem:[%s5104_s6 + $0x188] sm:$0x3] }
  0x3e   : > { %246 = vst [vmem:[%s5109_s5 + $0x118] sm:$0xff] %v245_v28  ;;  %v4122_v18 = vld [vmem:[%s5104_s6 + $0x1b0] sm:$0x3]  ;;  %v4124_v19 = vld [vmem:[%s5104_s6 + $0x1d8] sm:$0x3] }
  0x3f   : > { %248 = vst [vmem:[%s5109_s5 + $0x120] sm:$0xff] %v247_v29  ;;  %v4126_v20 = vld [vmem:[%s5104_s6 + $0x200] sm:$0x3]  ;;  %v4128_v21 = vld [vmem:[%s5104_s6 + $0x228] sm:$0x3] }
  0x40   : > { %250 = vst [vmem:[%s5109_s5 + $0x128] sm:$0xff] %v249_v30  ;;  %v4130_v22 = vld [vmem:[%s5104_s6 + $0x250] sm:$0x3]  ;;  %v4132_v23 = vld [vmem:[%s5104_s6 + $0x278] sm:$0x3] }
  0x41   : > { %252 = vst [vmem:[%s5109_s5 + $0x130] sm:$0xff] %v251_v31  ;;  %v4134_v24 = vld [vmem:[%s5104_s6 + $0x2a0] sm:$0x3]  ;;  %v4136_v25 = vld [vmem:[%s5104_s6 + $0x2c8] sm:$0x3] }
  0x42   : > { %254 = vst [vmem:[%s5109_s5 + $0x140] sm:$0xff] %v253_v32 }
  0x43   : > { %256 = vst [vmem:[%s5109_s5 + $0x148] sm:$0xff] %v255_v33 }
  0x44   : > { %258 = vst [vmem:[%s5109_s5 + $0x150] sm:$0xff] %v257_v34 }
  0x45   : > { %260 = vst [vmem:[%s5109_s5 + $0x158] sm:$0xff] %v259_v35 }
  0x46   : > { %262 = vst [vmem:[%s5109_s5 + $0x168] sm:$0xff] %v261_v36 }
  0x47   : > { %264 = vst [vmem:[%s5109_s5 + $0x170] sm:$0xff] %v263_v37 }
  0x48   : > { %266 = vst [vmem:[%s5109_s5 + $0x178] sm:$0xff] %v265_v38 }
  0x49   : > { %268 = vst [vmem:[%s5109_s5 + $0x180] sm:$0xff] %v267_v39 }
  0x4a   : > { %270 = vst [vmem:[%s5109_s5 + $0x190] sm:$0xff] %v269_v40 }
  0x4b   : > { %272 = vst [vmem:[%s5109_s5 + $0x198] sm:$0xff] %v271_v41 }
  0x4c   : > { %274 = vst [vmem:[%s5109_s5 + $0x1a0] sm:$0xff] %v273_v42 }
  0x4d   : > { %276 = vst [vmem:[%s5109_s5 + $0x1a8] sm:$0xff] %v275_v43 }
  0x4e   : > { %278 = vst [vmem:[%s5109_s5 + $0x1b8] sm:$0xff] %v277_v44 }
  0x4f   : > { %280 = vst [vmem:[%s5109_s5 + $0x1c0] sm:$0xff] %v279_v45 }
  0x50   : > { %282 = vst [vmem:[%s5109_s5 + $0x1c8] sm:$0xff] %v281_v46 }
  0x51   : > { %284 = vst [vmem:[%s5109_s5 + $0x1d0] sm:$0xff] %v283_v47 }
  0x52   : > { %286 = vst [vmem:[%s5109_s5 + $0x1e0] sm:$0xff] %v285_v48 }
  0x53   : > { %288 = vst [vmem:[%s5109_s5 + $0x1e8] sm:$0xff] %v287_v49 }
  0x54   : > { %290 = vst [vmem:[%s5109_s5 + $0x1f0] sm:$0xff] %v289_v50 }
  0x55   : > { %292 = vst [vmem:[%s5109_s5 + $0x1f8] sm:$0xff] %v291_v51 }
  0x56   : > { %294 = vst [vmem:[%s5109_s5 + $0x208] sm:$0xff] %v293_v52 }
  0x57   : > { %296 = vst [vmem:[%s5109_s5 + $0x210] sm:$0xff] %v295_v53 }
  0x58   : > { %298 = vst [vmem:[%s5109_s5 + $0x218] sm:$0xff] %v297_v54 }
  0x59   : > { %300 = vst [vmem:[%s5109_s5 + $0x220] sm:$0xff] %v299_v55 }
  0x5a   : > { %302 = vst [vmem:[%s5109_s5 + $0x230] sm:$0xff] %v301_v56 }
  0x5b   : > { %304 = vst [vmem:[%s5109_s5 + $0x238] sm:$0xff] %v303_v57 }
  0x5c   : > { %306 = vst [vmem:[%s5109_s5 + $0x240] sm:$0xff] %v305_v58 }
  0x5d   : > { %308 = vst [vmem:[%s5109_s5 + $0x248] sm:$0xff] %v307_v59 }
  0x5e   : > { %310 = vst [vmem:[%s5109_s5 + $0x258] sm:$0xff] %v309_v60 }
  0x5f   : > { %312 = vst [vmem:[%s5109_s5 + $0x260] sm:$0xff] %v311_v61 }
  0x60   : > { %314 = vst [vmem:[%s5109_s5 + $0x268] sm:$0xff] %v313_v62 }
  0x61   : > { %316 = vst [vmem:[%s5109_s5 + $0x270] sm:$0xff] %v315_v63 }
  0x62   : > { %318 = vst [vmem:[%s5109_s5 + $0x280] sm:$0xff] %v317_v0 }
  0x63   : > { %320 = vst [vmem:[%s5109_s5 + $0x288] sm:$0xff] %v319_v1 }
  0x64   : > { %322 = vst [vmem:[%s5109_s5 + $0x290] sm:$0xff] %v321_v2 }
  0x65   : > { %324 = vst [vmem:[%s5109_s5 + $0x298] sm:$0xff] %v323_v3 }
  0x66   : > { %326 = vst [vmem:[%s5109_s5 + $0x2a8] sm:$0xff] %v325_v4 }
  0x67   : > { %328 = vst [vmem:[%s5109_s5 + $0x2b0] sm:$0xff] %v327_v5 }
  0x68   : > { %330 = vst [vmem:[%s5109_s5 + $0x2b8] sm:$0xff] %v329_v6 }
  0x69   : > { %332 = vst [vmem:[%s5109_s5 + $0x2c0] sm:$0xff] %v331_v7 }
  0x6a   : > { %4103 = vst [vmem:[%s5109_s5 + $0x20] sm:$0x3] %v4102_v8 }
  0x6b   : > { %4105 = vst [vmem:[%s5109_s5 + $0x48] sm:$0x3] %v4104_v9 }
  0x6c   : > { %4107 = vst [vmem:[%s5109_s5 + $0x70] sm:$0x3] %v4106_v10 }
  0x6d   : > { %4109 = vst [vmem:[%s5109_s5 + $0x98] sm:$0x3] %v4108_v11 }
  0x6e   : > { %4111 = vst [vmem:[%s5109_s5 + $0xc0] sm:$0x3] %v4110_v12 }
  0x6f   : > { %4113 = vst [vmem:[%s5109_s5 + $0xe8] sm:$0x3] %v4112_v13 }
  0x70   : > { %4115 = vst [vmem:[%s5109_s5 + $0x110] sm:$0x3] %v4114_v14 }
  0x71   : > { %4117 = vst [vmem:[%s5109_s5 + $0x138] sm:$0x3] %v4116_v15 }
  0x72   : > { %4119 = vst [vmem:[%s5109_s5 + $0x160] sm:$0x3] %v4118_v16 }
  0x73   : > { %4121 = vst [vmem:[%s5109_s5 + $0x188] sm:$0x3] %v4120_v17 }
  0x74   : > { %4123 = vst [vmem:[%s5109_s5 + $0x1b0] sm:$0x3] %v4122_v18 }
  0x75   : > { %4125 = vst [vmem:[%s5109_s5 + $0x1d8] sm:$0x3] %v4124_v19 }
  0x76   : > { %4127 = vst [vmem:[%s5109_s5 + $0x200] sm:$0x3] %v4126_v20 }
  0x77   : > { %4129 = vst [vmem:[%s5109_s5 + $0x228] sm:$0x3] %v4128_v21 }
  0x78   : > { %4131 = vst [vmem:[%s5109_s5 + $0x250] sm:$0x3] %v4130_v22 }
  0x79   : > { %4133 = vst [vmem:[%s5109_s5 + $0x278] sm:$0x3] %v4132_v23 }
  0x7a   : > { %4135 = vst [vmem:[%s5109_s5 + $0x2a0] sm:$0x3] %v4134_v24 }
  0x7b   : > { %4137 = vst [vmem:[%s5109_s5 + $0x2c8] sm:$0x3] %v4136_v25 }
  0x7c   : > { %382 = vsyncadd %s176_s7, 9792 }
  0x7d PF: > { %s383_s8 = sadd.s32 1, %s4976_s15 }
  0x7e   : > { %p4138_p1 = scmp.ge.s32.totalorder %s383_s8, 2 }
  0x7f   : > { %p389_p2 = scmp.lt.s32.totalorder (!%p4138_p1), %s383_s8, 0  ;;  %s390_s9 = ssub.s32 (!%p4138_p1), 0, %s383_s8 }
  0x80   : > { %387 = sbr.rel (%p4138_p1) target bundleno = 231 (0xe7), region = 58  ;;  %s4139_s20 = smin.u32 (!%p4138_p1), %s390_s9, %s383_s8 }
  0x81   : > { %s4015_s21 = smul.u32 (!%p4138_p1), 640, %s4976_s15  ;;  %s392_s24 = sand.u32 (!%p4138_p1), 1, %s4139_s20  }
  0x82   : > { %s4016_s27 = smul.u32 (!%p4138_p1), 1360, %s4980_s16  ;;  %s393_s28 = ssub.s32 (!%p4138_p1), 0, %s392_s24 }
  0x84   : > { %s4017_s29 = sadd.s32 (!%p4138_p1), %s4016_s27, %s4015_s21 }
  0x85   : > { %s7296_s28 = smov (!%p389_p2, %s393_s28), %s392_s24  ;;  %s5295_s4 = scalar_lea.vmem %s7176_s0, %s4017_s29 }
  0x86   : > { %p4141_p4 = scmp.lt.s32.totalorder %s7296_s28, 0  ;;  %s399_s6 = sadd.s32 2, %s7296_s28  ;;  %v4142_v26 = vld [vmem:[%s5295_s4 + $0x280] sm:$0xff]  ;;  %v4143_v27 = vld [vmem:[%s5295_s4 + $0x288] sm:$0xff]  ;;  %v4144_v28 = vld [vmem:[%s5295_s4 + $0x290] sm:$0xff] }
  0x87   : > { %v4145_v29 = vld [vmem:[%s5295_s4 + $0x298] sm:$0xff]  ;;  %v4146_v30 = vld [vmem:[%s5295_s4 + $0x2a8] sm:$0xff]  ;;  %v4147_v31 = vld [vmem:[%s5295_s4 + $0x2b0] sm:$0xff] }
  0x88   : > { %s7298_s6 = smov (!%p4141_p4, %s399_s6), %s7296_s28  ;;  %v4148_v32 = vld [vmem:[%s5295_s4 + $0x2b8] sm:$0xff]  ;;  %v4149_v33 = vld [vmem:[%s5295_s4 + $0x2c0] sm:$0xff]  ;;  %v4150_v34 = vld [vmem:[%s5295_s4 + $0x2d0] sm:$0xff] }
  0x89   : > { %s406_s8 = smul.u32 720, %s7298_s6  ;;  %v4151_v35 = vld [vmem:[%s5295_s4 + $0x2d8] sm:$0xff]  ;;  %v4152_v36 = vld [vmem:[%s5295_s4 + $0x2e0] sm:$0xff]  ;;  %v4153_v37 = vld [vmem:[%s5295_s4 + $0x2e8] sm:$0xff]  ;;  %s408_s20 = scalar_lea.sflag [#allocation3], %s7298_s6 }
  0x8a   : > { %v4154_v38 = vld [vmem:[%s5295_s4 + $0x2f8] sm:$0xff]  ;;  %v4155_v39 = vld [vmem:[%s5295_s4 + $0x300] sm:$0xff]  ;;  %v4156_v40 = vld [vmem:[%s5295_s4 + $0x308] sm:$0xff] }
  0x8b   : > { %s5303_s9 = scalar_lea.vmem [#allocation2], %s406_s8  ;;  %v4157_v41 = vld [vmem:[%s5295_s4 + $0x310] sm:$0xff]  ;;  %v4158_v42 = vld [vmem:[%s5295_s4 + $0x320] sm:$0xff]  ;;  %v4159_v43 = vld [vmem:[%s5295_s4 + $0x328] sm:$0xff] }
  0x8c   : > { %422 = vst [vmem:[%s5303_s9] sm:$0xff] %v4142_v26  ;;  %v4160_v44 = vld [vmem:[%s5295_s4 + $0x330] sm:$0xff]  ;;  %v4161_v45 = vld [vmem:[%s5295_s4 + $0x338] sm:$0xff]  ;;  %v4162_v46 = vld [vmem:[%s5295_s4 + $0x348] sm:$0xff] }
  0x8d   : > { %424 = vst [vmem:[%s5303_s9 + $0x8] sm:$0xff] %v4143_v27  ;;  %v4163_v47 = vld [vmem:[%s5295_s4 + $0x350] sm:$0xff]  ;;  %v4164_v48 = vld [vmem:[%s5295_s4 + $0x358] sm:$0xff]  ;;  %v4165_v49 = vld [vmem:[%s5295_s4 + $0x360] sm:$0xff] }
  0x8e   : > { %426 = vst [vmem:[%s5303_s9 + $0x10] sm:$0xff] %v4144_v28  ;;  %v4166_v50 = vld [vmem:[%s5295_s4 + $0x370] sm:$0xff]  ;;  %v4167_v51 = vld [vmem:[%s5295_s4 + $0x378] sm:$0xff]  ;;  %v4168_v52 = vld [vmem:[%s5295_s4 + $0x380] sm:$0xff] }
  0x8f   : > { %428 = vst [vmem:[%s5303_s9 + $0x18] sm:$0xff] %v4145_v29  ;;  %v4169_v53 = vld [vmem:[%s5295_s4 + $0x388] sm:$0xff]  ;;  %v4170_v54 = vld [vmem:[%s5295_s4 + $0x398] sm:$0xff]  ;;  %v4171_v55 = vld [vmem:[%s5295_s4 + $0x3a0] sm:$0xff] }
  0x90   : > { %430 = vst [vmem:[%s5303_s9 + $0x28] sm:$0xff] %v4146_v30  ;;  %v4172_v56 = vld [vmem:[%s5295_s4 + $0x3a8] sm:$0xff]  ;;  %v4173_v57 = vld [vmem:[%s5295_s4 + $0x3b0] sm:$0xff]  ;;  %v4174_v58 = vld [vmem:[%s5295_s4 + $0x3c0] sm:$0xff] }
  0x91   : > { %432 = vst [vmem:[%s5303_s9 + $0x30] sm:$0xff] %v4147_v31  ;;  %v4175_v59 = vld [vmem:[%s5295_s4 + $0x3c8] sm:$0xff]  ;;  %v4176_v60 = vld [vmem:[%s5295_s4 + $0x3d0] sm:$0xff]  ;;  %v4177_v61 = vld [vmem:[%s5295_s4 + $0x3d8] sm:$0xff] }
  0x92   : > { %434 = vst [vmem:[%s5303_s9 + $0x38] sm:$0xff] %v4148_v32  ;;  %v4178_v62 = vld [vmem:[%s5295_s4 + $0x3e8] sm:$0xff]  ;;  %v4179_v63 = vld [vmem:[%s5295_s4 + $0x3f0] sm:$0xff]  ;;  %v4180_v0 = vld [vmem:[%s5295_s4 + $0x3f8] sm:$0xff] }
  0x93   : > { %436 = vst [vmem:[%s5303_s9 + $0x40] sm:$0xff] %v4149_v33  ;;  %v4181_v1 = vld [vmem:[%s5295_s4 + $0x400] sm:$0xff]  ;;  %v4182_v2 = vld [vmem:[%s5295_s4 + $0x410] sm:$0xff]  ;;  %v4183_v3 = vld [vmem:[%s5295_s4 + $0x418] sm:$0xff] }
  0x94   : > { %438 = vst [vmem:[%s5303_s9 + $0x50] sm:$0xff] %v4150_v34  ;;  %v4184_v4 = vld [vmem:[%s5295_s4 + $0x420] sm:$0xff]  ;;  %v4185_v5 = vld [vmem:[%s5295_s4 + $0x428] sm:$0xff]  ;;  %v4186_v6 = vld [vmem:[%s5295_s4 + $0x438] sm:$0xff] }
  0x95   : > { %440 = vst [vmem:[%s5303_s9 + $0x58] sm:$0xff] %v4151_v35  ;;  %v4187_v7 = vld [vmem:[%s5295_s4 + $0x440] sm:$0xff]  ;;  %v4188_v8 = vld [vmem:[%s5295_s4 + $0x448] sm:$0xff]  ;;  %v4189_v9 = vld [vmem:[%s5295_s4 + $0x450] sm:$0xff] }
  0x96   : > { %442 = vst [vmem:[%s5303_s9 + $0x60] sm:$0xff] %v4152_v36  ;;  %v4190_v10 = vld [vmem:[%s5295_s4 + $0x460] sm:$0xff]  ;;  %v4191_v11 = vld [vmem:[%s5295_s4 + $0x468] sm:$0xff]  ;;  %v4192_v12 = vld [vmem:[%s5295_s4 + $0x470] sm:$0xff] }
  0x97   : > { %444 = vst [vmem:[%s5303_s9 + $0x68] sm:$0xff] %v4153_v37  ;;  %v4193_v13 = vld [vmem:[%s5295_s4 + $0x478] sm:$0xff]  ;;  %v4194_v14 = vld [vmem:[%s5295_s4 + $0x488] sm:$0xff]  ;;  %v4195_v15 = vld [vmem:[%s5295_s4 + $0x490] sm:$0xff] }
  0x98   : > { %446 = vst [vmem:[%s5303_s9 + $0x78] sm:$0xff] %v4154_v38  ;;  %v4196_v16 = vld [vmem:[%s5295_s4 + $0x498] sm:$0xff]  ;;  %v4197_v17 = vld [vmem:[%s5295_s4 + $0x4a0] sm:$0xff]  ;;  %v4198_v18 = vld [vmem:[%s5295_s4 + $0x4b0] sm:$0xff] }
  0x99   : > { %448 = vst [vmem:[%s5303_s9 + $0x80] sm:$0xff] %v4155_v39  ;;  %v4199_v19 = vld [vmem:[%s5295_s4 + $0x4b8] sm:$0xff]  ;;  %v4200_v20 = vld [vmem:[%s5295_s4 + $0x4c0] sm:$0xff]  ;;  %v4201_v21 = vld [vmem:[%s5295_s4 + $0x4c8] sm:$0xff] }
  0x9a   : > { %450 = vst [vmem:[%s5303_s9 + $0x88] sm:$0xff] %v4156_v40  ;;  %v4202_v22 = vld [vmem:[%s5295_s4 + $0x4d8] sm:$0xff]  ;;  %v4203_v23 = vld [vmem:[%s5295_s4 + $0x4e0] sm:$0xff]  ;;  %v4204_v24 = vld [vmem:[%s5295_s4 + $0x4e8] sm:$0xff] }
  0x9b   : > { %452 = vst [vmem:[%s5303_s9 + $0x90] sm:$0xff] %v4157_v41  ;;  %v4205_v25 = vld [vmem:[%s5295_s4 + $0x4f0] sm:$0xff]  ;;  %v4206_v26 = vld [vmem:[%s5295_s4 + $0x500] sm:$0xff]  ;;  %v4207_v27 = vld [vmem:[%s5295_s4 + $0x508] sm:$0xff] }
  0x9c   : > { %454 = vst [vmem:[%s5303_s9 + $0xa0] sm:$0xff] %v4158_v42  ;;  %v4208_v28 = vld [vmem:[%s5295_s4 + $0x510] sm:$0xff]  ;;  %v4209_v29 = vld [vmem:[%s5295_s4 + $0x518] sm:$0xff]  ;;  %v4210_v30 = vld [vmem:[%s5295_s4 + $0x528] sm:$0xff] }
  0x9d   : > { %456 = vst [vmem:[%s5303_s9 + $0xa8] sm:$0xff] %v4159_v43  ;;  %v4211_v31 = vld [vmem:[%s5295_s4 + $0x530] sm:$0xff]  ;;  %v4212_v32 = vld [vmem:[%s5295_s4 + $0x538] sm:$0xff]  ;;  %v4213_v33 = vld [vmem:[%s5295_s4 + $0x540] sm:$0xff] }
  0x9e   : > { %458 = vst [vmem:[%s5303_s9 + $0xb0] sm:$0xff] %v4160_v44  ;;  %v4214_v34 = vld [vmem:[%s5295_s4 + $0x2a0] sm:$0x3]  ;;  %v4216_v35 = vld [vmem:[%s5295_s4 + $0x2c8] sm:$0x3] }
  0x9f   : > { %460 = vst [vmem:[%s5303_s9 + $0xb8] sm:$0xff] %v4161_v45  ;;  %v4218_v36 = vld [vmem:[%s5295_s4 + $0x2f0] sm:$0x3]  ;;  %v4220_v37 = vld [vmem:[%s5295_s4 + $0x318] sm:$0x3] }
  0xa0   : > { %462 = vst [vmem:[%s5303_s9 + $0xc8] sm:$0xff] %v4162_v46  ;;  %v4222_v38 = vld [vmem:[%s5295_s4 + $0x340] sm:$0x3]  ;;  %v4224_v39 = vld [vmem:[%s5295_s4 + $0x368] sm:$0x3] }
  0xa1   : > { %464 = vst [vmem:[%s5303_s9 + $0xd0] sm:$0xff] %v4163_v47  ;;  %v4226_v40 = vld [vmem:[%s5295_s4 + $0x390] sm:$0x3]  ;;  %v4228_v41 = vld [vmem:[%s5295_s4 + $0x3b8] sm:$0x3] }
  0xa2   : > { %466 = vst [vmem:[%s5303_s9 + $0xd8] sm:$0xff] %v4164_v48  ;;  %v4230_v42 = vld [vmem:[%s5295_s4 + $0x3e0] sm:$0x3]  ;;  %v4232_v43 = vld [vmem:[%s5295_s4 + $0x408] sm:$0x3] }
  0xa3   : > { %468 = vst [vmem:[%s5303_s9 + $0xe0] sm:$0xff] %v4165_v49  ;;  %v4234_v44 = vld [vmem:[%s5295_s4 + $0x430] sm:$0x3]  ;;  %v4236_v45 = vld [vmem:[%s5295_s4 + $0x458] sm:$0x3] }
  0xa4   : > { %470 = vst [vmem:[%s5303_s9 + $0xf0] sm:$0xff] %v4166_v50  ;;  %v4238_v46 = vld [vmem:[%s5295_s4 + $0x480] sm:$0x3]  ;;  %v4240_v47 = vld [vmem:[%s5295_s4 + $0x4a8] sm:$0x3] }
  0xa5   : > { %472 = vst [vmem:[%s5303_s9 + $0xf8] sm:$0xff] %v4167_v51  ;;  %v4242_v48 = vld [vmem:[%s5295_s4 + $0x4d0] sm:$0x3]  ;;  %v4244_v49 = vld [vmem:[%s5295_s4 + $0x4f8] sm:$0x3] }
  0xa6   : > { %474 = vst [vmem:[%s5303_s9 + $0x100] sm:$0xff] %v4168_v52  ;;  %v4246_v50 = vld [vmem:[%s5295_s4 + $0x520] sm:$0x3]  ;;  %v4248_v51 = vld [vmem:[%s5295_s4 + $0x548] sm:$0x3] }
  0xa7   : > { %476 = vst [vmem:[%s5303_s9 + $0x108] sm:$0xff] %v4169_v53 }
  0xa8   : > { %478 = vst [vmem:[%s5303_s9 + $0x118] sm:$0xff] %v4170_v54 }
  0xa9   : > { %480 = vst [vmem:[%s5303_s9 + $0x120] sm:$0xff] %v4171_v55 }
  0xaa   : > { %482 = vst [vmem:[%s5303_s9 + $0x128] sm:$0xff] %v4172_v56 }
  0xab   : > { %484 = vst [vmem:[%s5303_s9 + $0x130] sm:$0xff] %v4173_v57 }
  0xac   : > { %486 = vst [vmem:[%s5303_s9 + $0x140] sm:$0xff] %v4174_v58 }
  0xad   : > { %488 = vst [vmem:[%s5303_s9 + $0x148] sm:$0xff] %v4175_v59 }
  0xae   : > { %490 = vst [vmem:[%s5303_s9 + $0x150] sm:$0xff] %v4176_v60 }
  0xaf   : > { %492 = vst [vmem:[%s5303_s9 + $0x158] sm:$0xff] %v4177_v61 }
  0xb0   : > { %494 = vst [vmem:[%s5303_s9 + $0x168] sm:$0xff] %v4178_v62 }
  0xb1   : > { %496 = vst [vmem:[%s5303_s9 + $0x170] sm:$0xff] %v4179_v63 }
  0xb2   : > { %498 = vst [vmem:[%s5303_s9 + $0x178] sm:$0xff] %v4180_v0 }
  0xb3   : > { %500 = vst [vmem:[%s5303_s9 + $0x180] sm:$0xff] %v4181_v1 }
  0xb4   : > { %502 = vst [vmem:[%s5303_s9 + $0x190] sm:$0xff] %v4182_v2 }
  0xb5   : > { %504 = vst [vmem:[%s5303_s9 + $0x198] sm:$0xff] %v4183_v3 }
  0xb6   : > { %506 = vst [vmem:[%s5303_s9 + $0x1a0] sm:$0xff] %v4184_v4 }
  0xb7   : > { %508 = vst [vmem:[%s5303_s9 + $0x1a8] sm:$0xff] %v4185_v5 }
  0xb8   : > { %510 = vst [vmem:[%s5303_s9 + $0x1b8] sm:$0xff] %v4186_v6 }
  0xb9   : > { %512 = vst [vmem:[%s5303_s9 + $0x1c0] sm:$0xff] %v4187_v7 }
  0xba   : > { %514 = vst [vmem:[%s5303_s9 + $0x1c8] sm:$0xff] %v4188_v8 }
  0xbb   : > { %516 = vst [vmem:[%s5303_s9 + $0x1d0] sm:$0xff] %v4189_v9 }
  0xbc   : > { %518 = vst [vmem:[%s5303_s9 + $0x1e0] sm:$0xff] %v4190_v10 }
  0xbd   : > { %520 = vst [vmem:[%s5303_s9 + $0x1e8] sm:$0xff] %v4191_v11 }
  0xbe   : > { %522 = vst [vmem:[%s5303_s9 + $0x1f0] sm:$0xff] %v4192_v12 }
  0xbf   : > { %524 = vst [vmem:[%s5303_s9 + $0x1f8] sm:$0xff] %v4193_v13 }
  0xc0   : > { %526 = vst [vmem:[%s5303_s9 + $0x208] sm:$0xff] %v4194_v14 }
  0xc1   : > { %528 = vst [vmem:[%s5303_s9 + $0x210] sm:$0xff] %v4195_v15 }
  0xc2   : > { %530 = vst [vmem:[%s5303_s9 + $0x218] sm:$0xff] %v4196_v16 }
  0xc3   : > { %532 = vst [vmem:[%s5303_s9 + $0x220] sm:$0xff] %v4197_v17 }
  0xc4   : > { %534 = vst [vmem:[%s5303_s9 + $0x230] sm:$0xff] %v4198_v18 }
  0xc5   : > { %536 = vst [vmem:[%s5303_s9 + $0x238] sm:$0xff] %v4199_v19 }
  0xc6   : > { %538 = vst [vmem:[%s5303_s9 + $0x240] sm:$0xff] %v4200_v20 }
  0xc7   : > { %540 = vst [vmem:[%s5303_s9 + $0x248] sm:$0xff] %v4201_v21 }
  0xc8   : > { %542 = vst [vmem:[%s5303_s9 + $0x258] sm:$0xff] %v4202_v22 }
  0xc9   : > { %544 = vst [vmem:[%s5303_s9 + $0x260] sm:$0xff] %v4203_v23 }
  0xca   : > { %546 = vst [vmem:[%s5303_s9 + $0x268] sm:$0xff] %v4204_v24 }
  0xcb   : > { %548 = vst [vmem:[%s5303_s9 + $0x270] sm:$0xff] %v4205_v25 }
  0xcc   : > { %550 = vst [vmem:[%s5303_s9 + $0x280] sm:$0xff] %v4206_v26 }
  0xcd   : > { %552 = vst [vmem:[%s5303_s9 + $0x288] sm:$0xff] %v4207_v27 }
  0xce   : > { %554 = vst [vmem:[%s5303_s9 + $0x290] sm:$0xff] %v4208_v28 }
  0xcf   : > { %556 = vst [vmem:[%s5303_s9 + $0x298] sm:$0xff] %v4209_v29 }
  0xd0   : > { %558 = vst [vmem:[%s5303_s9 + $0x2a8] sm:$0xff] %v4210_v30 }
  0xd1   : > { %560 = vst [vmem:[%s5303_s9 + $0x2b0] sm:$0xff] %v4211_v31 }
  0xd2   : > { %562 = vst [vmem:[%s5303_s9 + $0x2b8] sm:$0xff] %v4212_v32 }
  0xd3   : > { %564 = vst [vmem:[%s5303_s9 + $0x2c0] sm:$0xff] %v4213_v33 }
  0xd4   : > { %4215 = vst [vmem:[%s5303_s9 + $0x20] sm:$0x3] %v4214_v34 }
  0xd5   : > { %4217 = vst [vmem:[%s5303_s9 + $0x48] sm:$0x3] %v4216_v35 }
  0xd6   : > { %4219 = vst [vmem:[%s5303_s9 + $0x70] sm:$0x3] %v4218_v36 }
  0xd7   : > { %4221 = vst [vmem:[%s5303_s9 + $0x98] sm:$0x3] %v4220_v37 }
  0xd8   : > { %4223 = vst [vmem:[%s5303_s9 + $0xc0] sm:$0x3] %v4222_v38 }
  0xd9   : > { %4225 = vst [vmem:[%s5303_s9 + $0xe8] sm:$0x3] %v4224_v39 }
  0xda   : > { %4227 = vst [vmem:[%s5303_s9 + $0x110] sm:$0x3] %v4226_v40 }
  0xdb   : > { %4229 = vst [vmem:[%s5303_s9 + $0x138] sm:$0x3] %v4228_v41 }
  0xdc   : > { %4231 = vst [vmem:[%s5303_s9 + $0x160] sm:$0x3] %v4230_v42 }
  0xdd   : > { %4233 = vst [vmem:[%s5303_s9 + $0x188] sm:$0x3] %v4232_v43 }
  0xde   : > { %4235 = vst [vmem:[%s5303_s9 + $0x1b0] sm:$0x3] %v4234_v44 }
  0xdf   : > { %4237 = vst [vmem:[%s5303_s9 + $0x1d8] sm:$0x3] %v4236_v45 }
  0xe0   : > { %4239 = vst [vmem:[%s5303_s9 + $0x200] sm:$0x3] %v4238_v46 }
  0xe1   : > { %4241 = vst [vmem:[%s5303_s9 + $0x228] sm:$0x3] %v4240_v47 }
  0xe2   : > { %4243 = vst [vmem:[%s5303_s9 + $0x250] sm:$0x3] %v4242_v48 }
  0xe3   : > { %4245 = vst [vmem:[%s5303_s9 + $0x278] sm:$0x3] %v4244_v49 }
  0xe4   : > { %4247 = vst [vmem:[%s5303_s9 + $0x2a0] sm:$0x3] %v4246_v50 }
  0xe5   : > { %4249 = vst [vmem:[%s5303_s9 + $0x2c8] sm:$0x3] %v4248_v51 }
  0xe6   : > { %614 = vsyncadd %s408_s20, 9792 }
  0xe7 PF: > { %s615_s21 = scalar_lea.sflag [#allocation3], %s7294_s10 }
  0xe8   : > { %4956 = dma.done.wait %s615_s21, 9792 }
  0xe9   : > { %4957 = vsyncadd %s615_s21, 4294957504  ;;  %v705_v52 = vld [vmem:[%s7177_s1 + $0x78] sm:$0xff]  ;;  %v704_v53 = vld [vmem:[%s7177_s1 + $0x70] sm:$0xff]  ;;  %s624_s28 = smul.u32 720, %s7294_s10  ;;  %s4765_s10 = sshll.u32 %s4980_s16, 7 }
  0xea   : > { %4772 = vmatpush.msra.mxu1 %v705_v52  ;;  %4773 = vmatpush.msra.mxu2 %v705_v52  ;;  %v703_v54 = vld [vmem:[%s7177_s1 + $0x68] sm:$0xff]  ;;  %v702_v55 = vld [vmem:[%s7177_s1 + $0x60] sm:$0xff]  ;;  %v701_v56 = vld [vmem:[%s7177_s1 + $0x58] sm:$0xff]  ;;  %s3961_s21 = sshll.u32 %s5095_s11, 4  ;;  %s7277_s27 = sand.u32 1, %s4968_s13   ;;  %s3962_s21 = int_to_ptr.vmem [resolvable:$true] %s3961_s21 }
  0xeb   : > { %4774 = vmatpush.msra.mxu3 %v705_v52  ;;  %706 = vmatpush.msra.mxu0 %v705_v52  ;;  %v700_v57 = vld [vmem:[%s7177_s1 + $0x50] sm:$0xff]  ;;  %v699_v58 = vld [vmem:[%s7177_s1 + $0x48] sm:$0xff]  ;;  %v698_v59 = vld [vmem:[%s7177_s1 + $0x40] sm:$0xff]  ;;  %s5533_s8 = scalar_lea.vmem [#allocation2], %s624_s28  ;;  %s3944_s28 = scalar_lea.sflag [#allocation5], %s7277_s27 }
  0xec   : > { %4775 = vmatpush.msra.mxu1 %v704_v53  ;;  %4776 = vmatpush.msra.mxu2 %v704_v53  ;;  %v697_v60 = vld [vmem:[%s7177_s1 + $0x38] sm:$0xff]  ;;  %v696_v61 = vld [vmem:[%s7177_s1 + $0x30] sm:$0xff]  ;;  %v695_v62 = vld [vmem:[%s7177_s1 + $0x28] sm:$0xff] }
  0xed   : > { %4777 = vmatpush.msra.mxu3 %v704_v53  ;;  %707 = vmatpush.msra.mxu0 %v704_v53  ;;  %v694_v63 = vld [vmem:[%s7177_s1 + $0x20] sm:$0xff]  ;;  %v693_v0 = vld [vmem:[%s7177_s1 + $0x18] sm:$0xff]  ;;  %v692_v1 = vld [vmem:[%s7177_s1 + $0x10] sm:$0xff] }
  0xee   : > { %4778 = vmatpush.msra.mxu1 %v703_v54  ;;  %4779 = vmatpush.msra.mxu2 %v703_v54  ;;  %v691_v2 = vld [vmem:[%s7177_s1 + $0x8] sm:$0xff]  ;;  %v690_v3 = vld [vmem:[%s7177_s1] sm:$0xff]  ;;  %v4281_v6 = vld [vmem:[%s7177_s1 + $0x178] sm:$0xff] }
  0xef   : > { %4780 = vmatpush.msra.mxu3 %v703_v54  ;;  %708 = vmatpush.msra.mxu0 %v703_v54  ;;  %v5536_v4 = vld [vmem:[%s5533_s8 + $0xa0] sm:$0xff]  ;;  %v4265_v8 = vld [vmem:[%s7177_s1 + $0xf8] sm:$0xff]  ;;  %v4279_v15 = vld [vmem:[%s7177_s1 + $0x168] sm:$0xff] }
  0xf0   : > { %4781 = vmatpush.msra.mxu1 %v702_v55  ;;  %4782 = vmatpush.msra.mxu2 %v702_v55  ;;  %v658_v5 = vld [vmem:[%s5533_s8 + $0x140] sm:$0xff]  ;;  %v4361_v9 = vld [vmem:[%s7177_s1 + $0x1f8] sm:$0xff]  ;;  %v4359_v16 = vld [vmem:[%s7177_s1 + $0x1e8] sm:$0xff] }
  0xf1   : > { %4783 = vmatpush.msra.mxu3 %v702_v55  ;;  %709 = vmatpush.msra.mxu0 %v702_v55  ;;  %v674_v7 = vld [vmem:[%s5533_s8 + $0x1e0] sm:$0xff]  ;;  %v4441_v14 = vld [vmem:[%s7177_s1 + $0x278] sm:$0xff]  ;;  %v4263_v17 = vld [vmem:[%s7177_s1 + $0xe8] sm:$0xff] }
  0xf2   : > { %4784 = vmatpush.msra.mxu1 %v701_v56  ;;  %4785 = vmatpush.msra.mxu2 %v701_v56  ;;  %v4280_v10 = vld [vmem:[%s7177_s1 + $0x170] sm:$0xff]  ;;  %v5573_v18 = vld [vmem:[%s5533_s8 + $0xa8] sm:$0xff]  ;;  %v4278_v21 = vld [vmem:[%s7177_s1 + $0x160] sm:$0xff] }
  0xf3   : > { %4786 = vmatpush.msra.mxu3 %v701_v56  ;;  %710 = vmatpush.msra.mxu0 %v701_v56  ;;  %v4264_v11 = vld [vmem:[%s7177_s1 + $0xf0] sm:$0xff]  ;;  %v659_v19 = vld [vmem:[%s5533_s8 + $0x148] sm:$0xff]  ;;  %v4262_v23 = vld [vmem:[%s7177_s1 + $0xe0] sm:$0xff] }
  0xf4   : > { %4787 = vmatpush.msra.mxu1 %v700_v57  ;;  %4788 = vmatpush.msra.mxu2 %v700_v57  ;;  %v626_v12 = vld [vmem:[%s5533_s8] sm:$0xff]  ;;  %v675_v22 = vld [vmem:[%s5533_s8 + $0x1e8] sm:$0xff]  ;;  %v5616_v34 = vld [vmem:[%s5533_s8 + $0xb0] sm:$0xff] }
  0xf5   : > { %4789 = vmatpush.msra.mxu3 %v700_v57  ;;  %711 = vmatpush.msra.mxu0 %v700_v57  ;;  %v4360_v13 = vld [vmem:[%s7177_s1 + $0x1f0] sm:$0xff]  ;;  %v4358_v24 = vld [vmem:[%s7177_s1 + $0x1e0] sm:$0xff]  ;;  %v4439_v25 = vld [vmem:[%s7177_s1 + $0x268] sm:$0xff] }
  0xf6   : > { %4790 = vmatpush.msra.mxu1 %v699_v58  ;;  %4791 = vmatpush.msra.mxu2 %v699_v58  ;;  %v4440_v20 = vld [vmem:[%s7177_s1 + $0x270] sm:$0xff]  ;;  %v4277_v26 = vld [vmem:[%s7177_s1 + $0x158] sm:$0xff]  ;;  %v4438_v30 = vld [vmem:[%s7177_s1 + $0x260] sm:$0xff] }
  0xf7   : > { %4792 = vmatpush.msra.mxu3 %v699_v58  ;;  %712 = vmatpush.msra.mxu0 %v699_v58  ;;  %v4261_v27 = vld [vmem:[%s7177_s1 + $0xd8] sm:$0xff]  ;;  %v4276_v31 = vld [vmem:[%s7177_s1 + $0x150] sm:$0xff]  ;;  %v4275_v38 = vld [vmem:[%s7177_s1 + $0x148] sm:$0xff] }
  0xf8   : > { %4793 = vmatpush.msra.mxu1 %v698_v59  ;;  %4794 = vmatpush.msra.mxu2 %v698_v59  ;;  %v627_v28 = vld [vmem:[%s5533_s8 + $0x8] sm:$0xff]  ;;  %v4356_v32 = vld [vmem:[%s7177_s1 + $0x1d0] sm:$0xff]  ;;  %v5638_v43 = vld [vmem:[%s5533_s8 + $0xb8] sm:$0xff] }
  0xf9   : > { %4795 = vmatpush.msra.mxu3 %v698_v59  ;;  %713 = vmatpush.msra.mxu0 %v698_v59  ;;  %v4357_v29 = vld [vmem:[%s7177_s1 + $0x1d8] sm:$0xff]  ;;  %v4260_v33 = vld [vmem:[%s7177_s1 + $0xd0] sm:$0xff]  ;;  %v4355_v40 = vld [vmem:[%s7177_s1 + $0x1c8] sm:$0xff] }
  0xfa   : > { %4796 = vmatpush.msra.mxu1 %v697_v60  ;;  %4797 = vmatpush.msra.mxu2 %v697_v60  ;;  %v660_v35 = vld [vmem:[%s5533_s8 + $0x150] sm:$0xff]  ;;  %v4437_v36 = vld [vmem:[%s7177_s1 + $0x258] sm:$0xff]  ;;  %v4259_v42 = vld [vmem:[%s7177_s1 + $0xc8] sm:$0xff] }
  0xfb   : > { %4798 = vmatpush.msra.mxu3 %v697_v60  ;;  %714 = vmatpush.msra.mxu0 %v697_v60  ;;  %v676_v37 = vld [vmem:[%s5533_s8 + $0x1f0] sm:$0xff]  ;;  %v661_v44 = vld [vmem:[%s5533_s8 + $0x158] sm:$0xff]  ;;  %v5657_v51 = vld [vmem:[%s5533_s8 + $0xc8] sm:$0xff] }
  0xfc   : > { %4799 = vmatpush.msra.mxu1 %v696_v61  ;;  %4800 = vmatpush.msra.mxu2 %v696_v61  ;;  %v628_v39 = vld [vmem:[%s5533_s8 + $0x10] sm:$0xff]  ;;  %v677_v45 = vld [vmem:[%s5533_s8 + $0x1f8] sm:$0xff]  ;;  %v662_v52 = vld [vmem:[%s5533_s8 + $0x168] sm:$0xff] }
  0xfd   : > { %4801 = vmatpush.msra.mxu3 %v696_v61  ;;  %715 = vmatpush.msra.mxu0 %v696_v61  ;;  %v4436_v41 = vld [vmem:[%s7177_s1 + $0x250] sm:$0xff]  ;;  %v4274_v46 = vld [vmem:[%s7177_s1 + $0x140] sm:$0xff]  ;;  %v629_v47 = vld [vmem:[%s5533_s8 + $0x18] sm:$0xff] }
  0xfe   : > { %4802 = vmatpush.msra.mxu1 %v695_v62  ;;  %4803 = vmatpush.msra.mxu2 %v695_v62  ;;  %v4354_v48 = vld [vmem:[%s7177_s1 + $0x1c0] sm:$0xff]  ;;  %v4435_v49 = vld [vmem:[%s7177_s1 + $0x248] sm:$0xff]  ;;  %v4273_v54 = vld [vmem:[%s7177_s1 + $0x138] sm:$0xff] }
  0xff   : > { %4804 = vmatpush.msra.mxu3 %v695_v62  ;;  %716 = vmatpush.msra.mxu0 %v695_v62  ;;  %v4258_v50 = vld [vmem:[%s7177_s1 + $0xc0] sm:$0xff]  ;;  %v678_v53 = vld [vmem:[%s5533_s8 + $0x208] sm:$0xff]  ;;  %v4272_v62 = vld [vmem:[%s7177_s1 + $0x130] sm:$0xff] }
 0x100   : > { %4805 = vmatpush.msra.mxu1 %v694_v63  ;;  %4806 = vmatpush.msra.mxu2 %v694_v63  ;;  %v5666_v55 = vld [vmem:[%s5533_s8 + $0x28] sm:$0xff]  ;;  %v4434_v57 = vld [vmem:[%s7177_s1 + $0x240] sm:$0xff] }
 0x101   : > { %4807 = vmatpush.msra.mxu3 %v694_v63  ;;  %717 = vmatpush.msra.mxu0 %v694_v63  ;;  %v4353_v56 = vld [vmem:[%s7177_s1 + $0x1b8] sm:$0xff]  ;;  %v5678_v59 = vld [vmem:[%s5533_s8 + $0xd0] sm:$0xff] }
 0x102   : > { %4808 = vmatpush.msra.mxu1 %v693_v0  ;;  %4809 = vmatpush.msra.mxu2 %v693_v0  ;;  %v4257_v58 = vld [vmem:[%s7177_s1 + $0xb8] sm:$0xff]  ;;  %v663_v60 = vld [vmem:[%s5533_s8 + $0x170] sm:$0xff] }
 0x103   : > { %4810 = vmatpush.msra.mxu3 %v693_v0  ;;  %718 = vmatpush.msra.mxu0 %v693_v0  ;;  %v679_v61 = vld [vmem:[%s5533_s8 + $0x210] sm:$0xff] }
 0x104   : > { %4811 = vmatpush.msra.mxu1 %v692_v1  ;;  %4812 = vmatpush.msra.mxu2 %v692_v1  ;;  %v5688_v63 = vld [vmem:[%s5533_s8 + $0x30] sm:$0xff] }
 0x105   : > { %4813 = vmatpush.msra.mxu3 %v692_v1  ;;  %719 = vmatpush.msra.mxu0 %v692_v1  ;;  %v4352_v0 = vld [vmem:[%s7177_s1 + $0x1b0] sm:$0xff]  ;;  %v4433_v1 = vld [vmem:[%s7177_s1 + $0x238] sm:$0xff] }
 0x106   : > { %4814 = vmatpush.msra.mxu1 %v691_v2  ;;  %4815 = vmatpush.msra.mxu2 %v691_v2 }
 0x107   : > { %4816 = vmatpush.msra.mxu3 %v691_v2  ;;  %720 = vmatpush.msra.mxu0 %v691_v2  ;;  %v4256_v2 = vld [vmem:[%s7177_s1 + $0xb0] sm:$0xff] }
 0x108   : > { %4817 = vmatpush.msra.mxu1 %v690_v3  ;;  %4818 = vmatpush.msra.mxu2 %v690_v3 }
 0x109   : > { %770 = vmatmul.f32.vlgmr.msra.gmra.mxu1 %v5536_v4  ;;  %818 = vmatmul.f32.vlgmr.msra.gmra.mxu2 %v658_v5  ;;  %v664_v5 = vld [vmem:[%s5533_s8 + $0x178] sm:$0xff] }
 0x10a   : > { %1414 = vmatpush.msrb.mxu2 %v4281_v6  ;;  %4819 = vmatpush.msra.mxu3 %v690_v3  ;;  %v680_v6 = vld [vmem:[%s5533_s8 + $0x218] sm:$0xff] }
 0x10b   : > { %866 = vmatmul.f32.vlgmr.msra.gmra.mxu3 %v674_v7  ;;  %1060 = vmatpush.msrb.mxu1 %v4265_v8  ;;  %v4271_v7 = vld [vmem:[%s7177_s1 + $0x128] sm:$0xff] }
 0x10c   : > { %1770 = vmatpush.msrb.mxu3 %v4361_v9  ;;  %1415 = vmatpush.msrb.mxu2 %v4280_v10  ;;  %v5710_v8 = vld [vmem:[%s5533_s8 + $0x38] sm:$0xff]  ;;  %v4432_v10 = vld [vmem:[%s7177_s1 + $0x230] sm:$0xff] }
 0x10d   : > { %721 = vmatpush.msra.mxu0 %v690_v3  ;;  %1061 = vmatpush.msrb.mxu1 %v4264_v11  ;;  %v5700_v3 = vld [vmem:[%s5533_s8 + $0xd8] sm:$0xff] }
 0x10e   : > { %722 = vmatmul.f32.vlgmr.msra.gmra.mxu0 %v626_v12  ;;  %1771 = vmatpush.msrb.mxu3 %v4360_v13  ;;  %v4351_v9 = vld [vmem:[%s7177_s1 + $0x1a8] sm:$0xff]  ;;  %v5722_v12 = vld [vmem:[%s5533_s8 + $0xe0] sm:$0xff] }
 0x10f   : > { %2124 = vmatpush.msrb.mxu0 %v4441_v14  ;;  %1416 = vmatpush.msrb.mxu2 %v4279_v15  ;;  %v4255_v11 = vld [vmem:[%s7177_s1 + $0xa8] sm:$0xff]  ;;  %v665_v13 = vld [vmem:[%s5533_s8 + $0x180] sm:$0xff] }
 0x110   : > { %1772 = vmatpush.msrb.mxu3 %v4359_v16  ;;  %1062 = vmatpush.msrb.mxu1 %v4263_v17  ;;  %v681_v14 = vld [vmem:[%s5533_s8 + $0x220] sm:$0xff] }
 0x111   : > { %773 = vmatmul.f32.gmra.mxu1 %v5573_v18  ;;  %821 = vmatmul.f32.gmra.mxu2 %v659_v19  ;;  %v4270_v15 = vld [vmem:[%s7177_s1 + $0x120] sm:$0xff]  ;;  %v4431_v19 = vld [vmem:[%s7177_s1 + $0x228] sm:$0xff] }
 0x112   : > { %2125 = vmatpush.msrb.mxu0 %v4440_v20  ;;  %1417 = vmatpush.msrb.mxu2 %v4278_v21  ;;  %v5732_v16 = vld [vmem:[%s5533_s8 + $0x40] sm:$0xff]  ;;  %v5744_v21 = vld [vmem:[%s5533_s8 + $0xf0] sm:$0xff] }
 0x113   : > { %869 = vmatmul.f32.gmra.mxu3 %v675_v22  ;;  %1063 = vmatpush.msrb.mxu1 %v4262_v23  ;;  %v4350_v17 = vld [vmem:[%s7177_s1 + $0x1a0] sm:$0xff] }
 0x114   : > { %1773 = vmatpush.msrb.mxu3 %v4358_v24  ;;  %2126 = vmatpush.msrb.mxu0 %v4439_v25  ;;  %v4254_v20 = vld [vmem:[%s7177_s1 + $0xa0] sm:$0xff]  ;;  %v4269_v24 = vld [vmem:[%s7177_s1 + $0x118] sm:$0xff] }
 0x115   : > { %1418 = vmatpush.msrb.mxu2 %v4277_v26  ;;  %1064 = vmatpush.msrb.mxu1 %v4261_v27  ;;  %v666_v22 = vld [vmem:[%s5533_s8 + $0x190] sm:$0xff]  ;;  %v4349_v26 = vld [vmem:[%s7177_s1 + $0x198] sm:$0xff] }
 0x116   : > { %725 = vmatmul.f32.gmra.mxu0 %v627_v28  ;;  %1774 = vmatpush.msrb.mxu3 %v4357_v29  ;;  %v682_v23 = vld [vmem:[%s5533_s8 + $0x230] sm:$0xff]  ;;  %v4253_v28 = vld [vmem:[%s7177_s1 + $0x98] sm:$0xff] }
 0x117   : > { %2127 = vmatpush.msrb.mxu0 %v4438_v30  ;;  %1419 = vmatpush.msrb.mxu2 %v4276_v31  ;;  %v5754_v25 = vld [vmem:[%s5533_s8 + $0x50] sm:$0xff]  ;;  %v5766_v29 = vld [vmem:[%s5533_s8 + $0xf8] sm:$0xff] }
 0x118   : > { %1775 = vmatpush.msrb.mxu3 %v4356_v32  ;;  %1065 = vmatpush.msrb.mxu1 %v4260_v33  ;;  %v4430_v27 = vld [vmem:[%s7177_s1 + $0x220] sm:$0xff]  ;;  %v667_v30 = vld [vmem:[%s5533_s8 + $0x198] sm:$0xff]  ;;  %v4268_v32 = vld [vmem:[%s7177_s1 + $0x110] sm:$0xff] }
 0x119   : > { %776 = vmatmul.f32.gmra.mxu1 %v5616_v34  ;;  %824 = vmatmul.f32.gmra.mxu2 %v660_v35  ;;  %v683_v31 = vld [vmem:[%s5533_s8 + $0x238] sm:$0xff]  ;;  %v4348_v35 = vld [vmem:[%s7177_s1 + $0x190] sm:$0xff] }
 0x11a   : > { %2128 = vmatpush.msrb.mxu0 %v4437_v36  ;;  %1420 = vmatpush.msrb.mxu2 %v4275_v38  ;;  %v5776_v33 = vld [vmem:[%s5533_s8 + $0x58] sm:$0xff]  ;;  %v5788_v38 = vld [vmem:[%s5533_s8 + $0x100] sm:$0xff] }
 0x11b   : > { %872 = vmatmul.f32.gmra.mxu3 %v676_v37  ;;  %1066 = vmatpush.msrb.mxu1 %v4259_v42  ;;  %v4429_v36 = vld [vmem:[%s7177_s1 + $0x218] sm:$0xff]  ;;  %v4252_v37 = vld [vmem:[%s7177_s1 + $0x90] sm:$0xff] }
 0x11c   : > { %1776 = vmatpush.msrb.mxu3 %v4355_v40  ;;  %2129 = vmatpush.msrb.mxu0 %v4436_v41  ;;  %v684_v40 = vld [vmem:[%s5533_s8 + $0x240] sm:$0xff]  ;;  %v4267_v41 = vld [vmem:[%s7177_s1 + $0x108] sm:$0xff] }
 0x11d   : > { %1421 = vmatpush.msrb.mxu2 %v4274_v46  ;;  %1067 = vmatpush.msrb.mxu1 %v4258_v50  ;;  %v5798_v42 = vld [vmem:[%s5533_s8 + $0x60] sm:$0xff]  ;;  %v4251_v46 = vld [vmem:[%s7177_s1 + $0x88] sm:$0xff] }
 0x11e   : > { %728 = vmatmul.f32.gmra.mxu0 %v628_v39  ;;  %1777 = vmatpush.msrb.mxu3 %v4354_v48  ;;  %v668_v39 = vld [vmem:[%s5533_s8 + $0x1a0] sm:$0xff]  ;;  %v669_v48 = vld [vmem:[%s5533_s8 + $0x1a8] sm:$0xff] }
 0x11f   : > { %2130 = vmatpush.msrb.mxu0 %v4435_v49  ;;  %1422 = vmatpush.msrb.mxu2 %v4273_v54  ;;  %v685_v49 = vld [vmem:[%s5533_s8 + $0x248] sm:$0xff]  ;;  %v4266_v50 = vld [vmem:[%s7177_s1 + $0x100] sm:$0xff] }
 0x120   : > { %1778 = vmatpush.msrb.mxu3 %v4353_v56  ;;  %1068 = vmatpush.msrb.mxu1 %v4257_v58  ;;  %v4427_v54 = vld [vmem:[%s7177_s1 + $0x208] sm:$0xff]  ;;  %v4250_v56 = vld [vmem:[%s7177_s1 + $0x80] sm:$0xff] }
 0x121   : > { %779 = vmatmul.f32.gmra.mxu1 %v5638_v43  ;;  %827 = vmatmul.f32.gmra.mxu2 %v661_v44  ;;  %v4347_v44 = vld [vmem:[%s7177_s1 + $0x188] sm:$0xff] }
 0x122   : > { %2131 = vmatpush.msrb.mxu0 %v4434_v57  ;;  %1423 = vmatpush.msrb.mxu2 %v4272_v62  ;;  %v5832_v57 = vld [vmem:[%s5533_s8 + $0x118] sm:$0xff] }
 0x123   : > { %875 = vmatmul.f32.gmra.mxu3 %v677_v45  ;;  %1069 = vmatpush.msrb.mxu1 %v4256_v2  ;;  %v4428_v45 = vld [vmem:[%s7177_s1 + $0x210] sm:$0xff]  ;;  %v670_v58 = vld [vmem:[%s5533_s8 + $0x1b8] sm:$0xff] }
 0x124   : > { %1779 = vmatpush.msrb.mxu3 %v4352_v0  ;;  %2132 = vmatpush.msrb.mxu0 %v4433_v1  ;;  %v5842_v62 = vld [vmem:[%s5533_s8 + $0x78] sm:$0xff]  ;;  %v4426_v0 = vld [vmem:[%s7177_s1 + $0x200] sm:$0xff] }
 0x125   : > { %1424 = vmatpush.msrb.mxu2 %v4271_v7  ;;  %1070 = vmatpush.msrb.mxu1 %v4255_v11  ;;  %v4681_v1 = vld [vmem:[%s7177_s1 + $0x3f8] sm:$0xff]  ;;  %v687_v7 = vld [vmem:[%s5533_s8 + $0x260] sm:$0xff] }
 0x126   : > { %731 = vmatmul.f32.gmra.mxu0 %v629_v47  ;;  %1780 = vmatpush.msrb.mxu3 %v4351_v9  ;;  %v5810_v47 = vld [vmem:[%s5533_s8 + $0x108] sm:$0xff]  ;;  %v5861_v9 = vld [vmem:[%s5533_s8 + $0x80] sm:$0xff] }
 0x127   : > { %2133 = vmatpush.msrb.mxu0 %v4432_v10  ;;  %1425 = vmatpush.msrb.mxu2 %v4270_v15  ;;  %v4521_v2 = vld [vmem:[%s7177_s1 + $0x2f8] sm:$0xff] }
 0x128   : > { %1781 = vmatpush.msrb.mxu3 %v4350_v17  ;;  %1071 = vmatpush.msrb.mxu1 %v4254_v20  ;;  %v4761_v10 = vld [vmem:[%s7177_s1 + $0x478] sm:$0xff]  ;;  %v657_v17 = vld [vmem:[%s5533_s8 + $0x130] sm:$0xff] }
 0x129   : > { %782 = vmatmul.f32.gmra.mxu1 %v5657_v51  ;;  %830 = vmatmul.f32.gmra.mxu2 %v662_v52  ;;  %v5820_v52 = vld [vmem:[%s5533_s8 + $0x68] sm:$0xff]  ;;  %v689_v20 = vld [vmem:[%s5533_s8 + $0x270] sm:$0xff] }
 0x12a   : > { %2134 = vmatpush.msrb.mxu0 %v4431_v19  ;;  %1426 = vmatpush.msrb.mxu2 %v4269_v24  ;;  %v656_v11 = vld [vmem:[%s5533_s8 + $0x128] sm:$0xff]  ;;  %v673_v19 = vld [vmem:[%s5533_s8 + $0x1d0] sm:$0xff] }
 0x12b   : > { %878 = vmatmul.f32.gmra.mxu3 %v678_v53  ;;  %1072 = vmatpush.msrb.mxu1 %v4253_v28  ;;  %v4346_v53 = vld [vmem:[%s7177_s1 + $0x180] sm:$0xff]  ;;  %v5871_v15 = vld [vmem:[%s5533_s8 + $0x88] sm:$0xff] }
 0x12c   : > { %1782 = vmatpush.msrb.mxu3 %v4349_v26  ;;  %2135 = vmatpush.msrb.mxu0 %v4430_v27  ;;  %v979_v24 = vld [vmem:[%s5533_s8 + $0x1] sm:$0xff] }
 0x12d   : > { %1427 = vmatpush.msrb.mxu2 %v4268_v32  ;;  %1073 = vmatpush.msrb.mxu1 %v4252_v37  ;;  %v1333_v26 = vld [vmem:[%s5533_s8 + $0x2] sm:$0xff] }
 0x12e   : > { %734 = vmatmul.f32.gmra.mxu0 %v5666_v55  ;;  %1783 = vmatpush.msrb.mxu3 %v4348_v35  ;;  %v4600_v27 = vld [vmem:[%s7177_s1 + $0x370] sm:$0xff] }
 0x12f   : > { %2136 = vmatpush.msrb.mxu0 %v4429_v36  ;;  %1428 = vmatpush.msrb.mxu2 %v4267_v41  ;;  %v4520_v35 = vld [vmem:[%s7177_s1 + $0x2f0] sm:$0xff] }
 0x130   : > { %1784 = vmatpush.msrb.mxu3 %v4347_v44  ;;  %1074 = vmatpush.msrb.mxu1 %v4251_v46  ;;  %v4363_v41 = vld [vmem:[%s5533_s8 + $0x31] sm:$0xff] }
 0x131   : > { %785 = vmatmul.f32.gmra.mxu1 %v5678_v59  ;;  %833 = vmatmul.f32.gmra.mxu2 %v663_v60  ;;  %v686_v60 = vld [vmem:[%s5533_s8 + $0x258] sm:$0xff]  ;;  %v4760_v44 = vld [vmem:[%s7177_s1 + $0x470] sm:$0xff] }
 0x132   : > { %2137 = vmatpush.msrb.mxu0 %v4428_v45  ;;  %1429 = vmatpush.msrb.mxu2 %v4266_v50  ;;  %v1335_v50 = vld [vmem:[%s5533_s8 + $0x12] sm:$0xff] }
 0x133   : > { %881 = vmatmul.f32.gmra.mxu3 %v679_v61  ;;  %1075 = vmatpush.msrb.mxu1 %v4250_v56  ;;  %v4601_v61 = vld [vmem:[%s7177_s1 + $0x378] sm:$0xff] }
 0x134   : > { %1785 = vmatpush.msrb.mxu3 %v4346_v53  ;;  %2138 = vmatpush.msrb.mxu0 %v4427_v54  ;;  %v4364_v53 = vld [vmem:[%s5533_s8 + $0x39] sm:$0xff] }
 0x135   : > { %2834 = vmatpush.msra.mxu2 %v4601_v61  ;;  %2478 = vmatpush.msra.mxu1 %v4521_v2  ;;  %v1336_v61 = vld [vmem:[%s5533_s8 + $0x1a] sm:$0xff] }
 0x136   : > { %737 = vmatmul.f32.gmra.mxu0 %v5688_v63  ;;  %3188 = vmatpush.msra.mxu3 %v4681_v1 }
 0x137   : > { %2139 = vmatpush.msrb.mxu0 %v4426_v0  ;;  %2835 = vmatpush.msra.mxu2 %v4600_v27  ;;  %v4759_v27 = vld [vmem:[%s7177_s1 + $0x468] sm:$0xff] }
 0x138   : > { %2479 = vmatpush.msra.mxu1 %v4520_v35 }
 0x139   : > { %788 = vmatmul.f32.gmra.mxu1 %v5700_v3  ;;  %836 = vmatmul.f32.gmra.mxu2 %v664_v5  ;;  %v5854_v5 = vld [vmem:[%s5533_s8 + $0x120] sm:$0xff] }
 0x13a   : > { %3542 = vmatpush.msra.mxu0 %v4761_v10  ;;  %v4599_v10 = vld [vmem:[%s7177_s1 + $0x368] sm:$0xff] }
 0x13b   : > { %884 = vmatmul.f32.gmra.mxu3 %v680_v6  ;;  %v671_v6 = vld [vmem:[%s5533_s8 + $0x1c0] sm:$0xff]  ;;  %2836 = vmatpush.msra.mxu2 %v4599_v10  ;;  %v1341_v10 = vld [vmem:[%s5533_s8 + $0x52] sm:$0xff] }
 0x13c   : > { %3543 = vmatpush.msra.mxu0 %v4760_v44 }
 0x13e   : > { %740 = vmatmul.f32.gmra.mxu0 %v5710_v8 }
 0x13f   : > { %3544 = vmatpush.msra.mxu0 %v4759_v27 }
 0x141   : > { %791 = vmatmul.f32.gmra.mxu1 %v5722_v12  ;;  %839 = vmatmul.f32.gmra.mxu2 %v665_v13  ;;  %v672_v13 = vld [vmem:[%s5533_s8 + $0x1c8] sm:$0xff] }
 0x143   : > { %887 = vmatmul.f32.gmra.mxu3 %v681_v14  ;;  %v688_v14 = vld [vmem:[%s5533_s8 + $0x268] sm:$0xff] }
 0x146   : > { %743 = vmatmul.f32.gmra.mxu0 %v5732_v16 }
 0x149   : > { %794 = vmatmul.f32.gmra.mxu1 %v5744_v21  ;;  %842 = vmatmul.f32.gmra.mxu2 %v666_v22  ;;  %v5878_v22 = vld [vmem:[%s5533_s8 + $0x90] sm:$0xff] }
 0x14b   : > { %890 = vmatmul.f32.gmra.mxu3 %v682_v23 }
 0x14e   : > { %746 = vmatmul.f32.gmra.mxu0 %v5754_v25 }
 0x151   : > { %797 = vmatmul.f32.gmra.mxu1 %v5766_v29  ;;  %845 = vmatmul.f32.gmra.mxu2 %v667_v30  ;;  %v4362_v30 = vld [vmem:[%s5533_s8 + $0x29] sm:$0xff] }
 0x153   : > { %893 = vmatmul.f32.gmra.mxu3 %v683_v31  ;;  %v4680_v31 = vld [vmem:[%s7177_s1 + $0x3f0] sm:$0xff] }
 0x154   : > { %3189 = vmatpush.msra.mxu3 %v4680_v31 }
 0x156   : > { %749 = vmatmul.f32.gmra.mxu0 %v5776_v33 }
 0x159   : > { %800 = vmatmul.f32.gmra.mxu1 %v5788_v38  ;;  %848 = vmatmul.f32.gmra.mxu2 %v668_v39  ;;  %v1334_v39 = vld [vmem:[%s5533_s8 + $0xa] sm:$0xff] }
 0x15b   : > { %896 = vmatmul.f32.gmra.mxu3 %v684_v40 }
 0x15e   : > { %752 = vmatmul.f32.gmra.mxu0 %v5798_v42 }
 0x161   : > { %803 = vmatmul.f32.gmra.mxu1 %v5810_v47  ;;  %851 = vmatmul.f32.gmra.mxu2 %v669_v48 }
 0x163   : > { %899 = vmatmul.f32.gmra.mxu3 %v685_v49  ;;  %v981_v49 = vld [vmem:[%s5533_s8 + $0x11] sm:$0xff] }
 0x166   : > { %755 = vmatmul.f32.gmra.mxu0 %v5820_v52 }
 0x169   : > { %806 = vmatmul.f32.gmra.mxu1 %v5832_v57  ;;  %854 = vmatmul.f32.gmra.mxu2 %v670_v58 }
 0x16b   : > { %902 = vmatmul.f32.gmra.mxu3 %v686_v60  ;;  %v982_v60 = vld [vmem:[%s5533_s8 + $0x19] sm:$0xff] }
 0x16e   : > { %758 = vmatmul.f32.gmra.mxu0 %v5842_v62 }
 0x171   : > { %809 = vmatmul.f32.gmra.mxu1 %v5854_v5  ;;  %857 = vmatmul.f32.gmra.mxu2 %v671_v6 }
 0x173   : > { %905 = vmatmul.f32.gmra.mxu3 %v687_v7  ;;  %v1337_v7 = vld [vmem:[%s5533_s8 + $0x2a] sm:$0xff] }
 0x176   : > { %761 = vmatmul.f32.gmra.mxu0 %v5861_v9 }
 0x179   : > { %812 = vmatmul.f32.gmra.mxu1 %v656_v11  ;;  %860 = vmatmul.f32.gmra.mxu2 %v672_v13  ;;  %v4366_v11 = vld [vmem:[%s5533_s8 + $0x51] sm:$0xff] }
 0x17a   : > { %v4679_v13 = vld [vmem:[%s7177_s1 + $0x3e8] sm:$0xff] }
 0x17b   : > { %908 = vmatmul.f32.gmra.mxu3 %v688_v14 }
 0x17c   : > { %3190 = vmatpush.msra.mxu3 %v4679_v13  ;;  %v4370_v13 = vld [vmem:[%s5533_s8 + $0x79] sm:$0xff] }
 0x17e   : > { %764 = vmatmul.f32.gmra.mxu0 %v5871_v15 }
 0x181   : > { %815 = vmatmul.f32.gmra.mxu1 %v657_v17  ;;  %863 = vmatmul.f32.gmra.mxu2 %v673_v19  ;;  %v4519_v17 = vld [vmem:[%s7177_s1 + $0x2e8] sm:$0xff] }
 0x182   : > { %2480 = vmatpush.msra.mxu1 %v4519_v17  ;;  %v4678_v17 = vld [vmem:[%s7177_s1 + $0x3e0] sm:$0xff] }
 0x183   : > { %911 = vmatmul.f32.gmra.mxu3 %v689_v20 }
 0x184   : > { %3191 = vmatpush.msra.mxu3 %v4678_v17 }
 0x186   : > { %v5880_v23 = vpop.f32.mrf.mxu1  ;;  %767 = vmatmul.f32.gmra.mxu0 %v5878_v22 }
 0x189   : > { %1076 = vmatmul.f32.vlgmr.msrb.gmra.mxu1 %v979_v24  ;;  %1430 = vmatmul.f32.vlgmr.msrb.gmra.mxu2 %v1333_v26  ;;  %v4367_v26 = vld [vmem:[%s5533_s8 + $0x59] sm:$0xff] }
 0x18b   : > { %1786 = vmatmul.f32.vlgmr.msrb.gmra.mxu3 %v5666_v55  ;;  %v5889_v28 = vpop.f32.mrf.mxu0  ;;  %v980_v55 = vld [vmem:[%s5533_s8 + $0x9] sm:$0xff] }
 0x18c   : > { %v5895_v32 = vpop.f32.mrf.mxu2 }
 0x18e   : > { %v5900_v36 = vpop.f32.mrf.mxu1  ;;  %v5902_v37 = vpop.f32.mrf.mxu3  ;;  %2140 = vmatmul.f32.vlgmr.msrb.gmra.mxu0 %v4362_v30 }
 0x18f   : > { %7183 = vst [vmem:[#allocation10_spill] sm:$0xff] %v5902_v37 }
 0x191   : > { %1079 = vmatmul.f32.gmra.mxu1 %v980_v55  ;;  %1433 = vmatmul.f32.gmra.mxu2 %v1334_v39  ;;  %v1339_v55 = vld [vmem:[%s5533_s8 + $0x3a] sm:$0xff] }
 0x192   : > { %v4368_v39 = vld [vmem:[%s5533_s8 + $0x61] sm:$0xff] }
 0x193   : > { %1789 = vmatmul.f32.gmra.mxu3 %v5688_v63  ;;  %v5907_v40 = vpop.f32.mrf.mxu0 }
 0x194   : > { %v5913_v45 = vpop.f32.mrf.mxu2 }
 0x196   : > { %v5915_v46 = vpop.f32.mrf.mxu1  ;;  %v5917_v48 = vpop.f32.mrf.mxu3  ;;  %2143 = vmatmul.f32.gmra.mxu0 %v4363_v41 }
 0x197   : > { %7184 = vst [vmem:[#allocation11_spill] sm:$0xff] %v5917_v48  ;;  %v4757_v48 = vld [vmem:[%s7177_s1 + $0x458] sm:$0xff] }
 0x199   : > { %1082 = vmatmul.f32.gmra.mxu1 %v981_v49  ;;  %1436 = vmatmul.f32.gmra.mxu2 %v1335_v50  ;;  %v1340_v50 = vld [vmem:[%s5533_s8 + $0x42] sm:$0xff] }
 0x19b   : > { %1792 = vmatmul.f32.gmra.mxu3 %v5710_v8  ;;  %v5922_v63 = vpop.f32.mrf.mxu0  ;;  %v4365_v8 = vld [vmem:[%s5533_s8 + $0x41] sm:$0xff] }
 0x19c   : > { %v5925_v54 = vpop.f32.mrf.mxu2 }
 0x19e   : > { %v5927_v56 = vpop.f32.mrf.mxu1  ;;  %v5929_v58 = vpop.f32.mrf.mxu3  ;;  %2146 = vmatmul.f32.gmra.mxu0 %v4364_v53 }
 0x19f   : > { %7185 = vst [vmem:[#allocation12_spill] sm:$0xff] %v5929_v58 }
 0x1a1   : > { %1085 = vmatmul.f32.gmra.mxu1 %v982_v60  ;;  %1439 = vmatmul.f32.gmra.mxu2 %v1336_v61 }
 0x1a3   : > { %1795 = vmatmul.f32.gmra.mxu3 %v5732_v16  ;;  %v5934_v0 = vpop.f32.mrf.mxu0 }
 0x1a4   : > { %v5937_v1 = vpop.f32.mrf.mxu2 }
 0x1a6   : > { %v5939_v2 = vpop.f32.mrf.mxu1  ;;  %v5941_v6 = vpop.f32.mrf.mxu3  ;;  %2149 = vmatmul.f32.gmra.mxu0 %v4365_v8 }
 0x1a7   : > { %7186 = vst [vmem:[#allocation13_spill] sm:$0xff] %v5941_v6  ;;  %v1345_v6 = vld [vmem:[%s5533_s8 + $0x7a] sm:$0xff] }
 0x1a9   : > { %1088 = vmatmul.f32.gmra.mxu1 %v4362_v30  ;;  %1442 = vmatmul.f32.gmra.mxu2 %v1337_v7 }
 0x1ab   : > { %1798 = vmatmul.f32.gmra.mxu3 %v5754_v25  ;;  %v5948_v16 = vpop.f32.mrf.mxu0  ;;  %v1338_v25 = vld [vmem:[%s5533_s8 + $0x32] sm:$0xff] }
 0x1ac   : > { %v5954_v14 = vpop.f32.mrf.mxu2 }
 0x1ae   : > { %v5959_v19 = vpop.f32.mrf.mxu1  ;;  %v5961_v20 = vpop.f32.mrf.mxu3  ;;  %2152 = vmatmul.f32.gmra.mxu0 %v4366_v11 }
 0x1af   : > { %7187 = vst [vmem:[#allocation14_spill] sm:$0xff] %v5961_v20 }
 0x1b1   : > { %1091 = vmatmul.f32.gmra.mxu1 %v4363_v41  ;;  %1445 = vmatmul.f32.gmra.mxu2 %v1338_v25 }
 0x1b3   : > { %1801 = vmatmul.f32.gmra.mxu3 %v5776_v33  ;;  %v5965_v24 = vpop.f32.mrf.mxu0 }
 0x1b4   : > { %v5971_v30 = vpop.f32.mrf.mxu2 }
 0x1b6   : > { %v5973_v31 = vpop.f32.mrf.mxu1  ;;  %v5975_v35 = vpop.f32.mrf.mxu3  ;;  %2155 = vmatmul.f32.gmra.mxu0 %v4367_v26 }
 0x1b7   : > { %7188 = vst [vmem:[#allocation15_spill] sm:$0xff] %v5975_v35  ;;  %v1344_v35 = vld [vmem:[%s5533_s8 + $0x6a] sm:$0xff] }
 0x1b9   : > { %1094 = vmatmul.f32.gmra.mxu1 %v4364_v53  ;;  %1448 = vmatmul.f32.gmra.mxu2 %v1339_v55 }
 0x1bb   : > { %1804 = vmatmul.f32.gmra.mxu3 %v5798_v42  ;;  %v5979_v33 = vpop.f32.mrf.mxu0  ;;  %v4369_v42 = vld [vmem:[%s5533_s8 + $0x69] sm:$0xff] }
 0x1bc   : > { %v5982_v41 = vpop.f32.mrf.mxu2 }
 0x1bd   : > { %7189 = vst [vmem:[#allocation16_spill] sm:$0xff] %v5982_v41  ;;  %v4756_v41 = vld [vmem:[%s7177_s1 + $0x450] sm:$0xff] }
 0x1be   : > { %v5984_v44 = vpop.f32.mrf.mxu1  ;;  %v5986_v49 = vpop.f32.mrf.mxu3  ;;  %2158 = vmatmul.f32.gmra.mxu0 %v4368_v39 }
 0x1bf   : > { %7190 = vst [vmem:[#allocation17_spill] sm:$0xff] %v5986_v49 }
 0x1c1   : > { %1097 = vmatmul.f32.gmra.mxu1 %v4365_v8  ;;  %1451 = vmatmul.f32.gmra.mxu2 %v1340_v50  ;;  %v4598_v8 = vld [vmem:[%s7177_s1 + $0x360] sm:$0xff] }
 0x1c2   : > { %2837 = vmatpush.msra.mxu2 %v4598_v8  ;;  %v4758_v8 = vld [vmem:[%s7177_s1 + $0x460] sm:$0xff] }
 0x1c3   : > { %1807 = vmatmul.f32.gmra.mxu3 %v5820_v52  ;;  %v5990_v53 = vpop.f32.mrf.mxu0  ;;  %3545 = vmatpush.msra.mxu0 %v4758_v8 }
 0x1c4   : > { %v5993_v60 = vpop.f32.mrf.mxu2 }
 0x1c5   : > { %7191 = vst [vmem:[#allocation18_spill] sm:$0xff] %v5993_v60  ;;  %3546 = vmatpush.msra.mxu0 %v4757_v48 }
 0x1c6   : > { %v5995_v61 = vpop.f32.mrf.mxu1  ;;  %v5997_v7 = vpop.f32.mrf.mxu3  ;;  %2161 = vmatmul.f32.gmra.mxu0 %v4369_v42 }
 0x1c7   : > { %7192 = vst [vmem:[#allocation19_spill] sm:$0xff] %v5997_v7  ;;  %3547 = vmatpush.msra.mxu0 %v4756_v41  ;;  %v6148_v41 = vld [vmem:[%s5533_s8 + $0xd9] sm:$0xff] }
 0x1c9   : > { %1100 = vmatmul.f32.gmra.mxu1 %v4366_v11  ;;  %1454 = vmatmul.f32.gmra.mxu2 %v1341_v10  ;;  %v4518_v11 = vld [vmem:[%s7177_s1 + $0x2e0] sm:$0xff] }
 0x1ca   : > { %2481 = vmatpush.msra.mxu1 %v4518_v11  ;;  %v4371_v10 = vld [vmem:[%s5533_s8 + $0x81] sm:$0xff]  ;;  %v4372_v11 = vld [vmem:[%s5533_s8 + $0x89] sm:$0xff] }
 0x1cb   : > { %1810 = vmatmul.f32.gmra.mxu3 %v5842_v62  ;;  %v6004_v52 = vpop.f32.mrf.mxu0  ;;  %v1342_v62 = vld [vmem:[%s5533_s8 + $0x5a] sm:$0xff] }
 0x1cc   : > { %v6010_v25 = vpop.f32.mrf.mxu2 }
 0x1cd   : > { %7193 = vst [vmem:[#allocation20_spill] sm:$0xff] %v6010_v25 }
 0x1ce   : > { %v6015_v27 = vpop.f32.mrf.mxu1  ;;  %v6017_v55 = vpop.f32.mrf.mxu3  ;;  %2164 = vmatmul.f32.gmra.mxu0 %v4370_v13 }
 0x1cf   : > { %7194 = vst [vmem:[#allocation21_spill] sm:$0xff] %v6017_v55 }
 0x1d1   : > { %1103 = vmatmul.f32.gmra.mxu1 %v4367_v26  ;;  %1457 = vmatmul.f32.gmra.mxu2 %v1342_v62  ;;  %v1343_v26 = vld [vmem:[%s5533_s8 + $0x62] sm:$0xff] }
 0x1d3   : > { %1813 = vmatmul.f32.gmra.mxu3 %v5861_v9  ;;  %v6021_v50 = vpop.f32.mrf.mxu0 }
 0x1d4   : > { %v6027_v17 = vpop.f32.mrf.mxu2 }
 0x1d5   : > { %7195 = vst [vmem:[#allocation22_spill] sm:$0xff] %v6027_v17  ;;  %v4676_v17 = vld [vmem:[%s7177_s1 + $0x3d0] sm:$0xff] }
 0x1d6   : > { %v6029_v55 = vpop.f32.mrf.mxu1  ;;  %v6031_v7 = vpop.f32.mrf.mxu3  ;;  %2167 = vmatmul.f32.gmra.mxu0 %v4371_v10 }
 0x1d7   : > { %7196 = vst [vmem:[#allocation23_spill] sm:$0xff] %v6031_v7 }
 0x1d9   : > { %1106 = vmatmul.f32.gmra.mxu1 %v4368_v39  ;;  %1460 = vmatmul.f32.gmra.mxu2 %v1343_v26 }
 0x1db   : > { %1816 = vmatmul.f32.gmra.mxu3 %v5871_v15  ;;  %v6035_v9 = vpop.f32.mrf.mxu0  ;;  %v4373_v15 = vld [vmem:[%s5533_s8 + $0x91] sm:$0xff] }
 0x1dc   : > { %v6038_v62 = vpop.f32.mrf.mxu2 }
 0x1dd   : > { %7197 = vst [vmem:[#allocation24_spill] sm:$0xff] %v6038_v62 }
 0x1de   : > { %v6040_v49 = vpop.f32.mrf.mxu1  ;;  %v6042_v8 = vpop.f32.mrf.mxu3  ;;  %2170 = vmatmul.f32.gmra.mxu0 %v4372_v11 }
 0x1df   : > { %7198 = vst [vmem:[#allocation25_spill] sm:$0xff] %v6042_v8 }
 0x1e1   : > { %1109 = vmatmul.f32.gmra.mxu1 %v4369_v42  ;;  %1463 = vmatmul.f32.gmra.mxu2 %v1344_v35  ;;  %v4597_v35 = vld [vmem:[%s7177_s1 + $0x358] sm:$0xff] }
 0x1e2   : > { %2838 = vmatpush.msra.mxu2 %v4597_v35  ;;  %v4374_v42 = vld [vmem:[%s5533_s8 + $0xa1] sm:$0xff] }
 0x1e3   : > { %1819 = vmatmul.f32.gmra.mxu3 %v5878_v22  ;;  %v6046_v39 = vpop.f32.mrf.mxu0 }
 0x1e4   : > { %v6049_v26 = vpop.f32.mrf.mxu2 }
 0x1e5   : > { %7199 = vst [vmem:[#allocation26_spill] sm:$0xff] %v6049_v26 }
 0x1e6   : > { %v6051_v7 = vpop.f32.mrf.mxu1  ;;  %v6053_v20 = vpop.f32.mrf.mxu3  ;;  %2173 = vmatmul.f32.gmra.mxu0 %v4373_v15 }
 0x1e7   : > { %7200 = vst [vmem:[#allocation27_spill] sm:$0xff] %v6053_v20  ;;  %v4677_v20 = vld [vmem:[%s7177_s1 + $0x3d8] sm:$0xff] }
 0x1e8   : > { %3192 = vmatpush.msra.mxu3 %v4677_v20  ;;  %v4375_v20 = vld [vmem:[%s5533_s8 + $0xa9] sm:$0xff] }
 0x1e9   : > { %1112 = vmatmul.f32.gmra.mxu1 %v4370_v13  ;;  %1466 = vmatmul.f32.gmra.mxu2 %v1345_v6  ;;  %v4517_v6 = vld [vmem:[%s7177_s1 + $0x2d8] sm:$0xff] }
 0x1ea   : > { %2482 = vmatpush.msra.mxu1 %v4517_v6  ;;  %v4376_v6 = vld [vmem:[%s5533_s8 + $0xb1] sm:$0xff]  ;;  %3193 = vmatpush.msra.mxu3 %v4676_v17 }
 0x1eb   : > { %1822 = vmatmul.f32.gmra.mxu3 %v5536_v4  ;;  %v6060_v22 = vpop.f32.mrf.mxu0  ;;  %v1346_v4 = vld [vmem:[%s5533_s8 + $0x82] sm:$0xff] }
 0x1ec   : > { %v6066_v8 = vpop.f32.mrf.mxu2 }
 0x1ed   : > { %7201 = vst [vmem:[#allocation28_spill] sm:$0xff] %v6066_v8 }
 0x1ee   : > { %v6071_v13 = vpop.f32.mrf.mxu1  ;;  %v6073_v35 = vpop.f32.mrf.mxu3  ;;  %2176 = vmatmul.f32.gmra.mxu0 %v4374_v42 }
 0x1ef   : > { %7202 = vst [vmem:[#allocation29_spill] sm:$0xff] %v6073_v35 }
 0x1f1   : > { %1115 = vmatmul.f32.gmra.mxu1 %v4371_v10  ;;  %1469 = vmatmul.f32.gmra.mxu2 %v1346_v4  ;;  %v1347_v10 = vld [vmem:[%s5533_s8 + $0x8a] sm:$0xff] }
 0x1f3   : > { %1825 = vmatmul.f32.gmra.mxu3 %v5573_v18  ;;  %v6077_v58 = vpop.f32.mrf.mxu0 }
 0x1f4   : > { %v6083_v37 = vpop.f32.mrf.mxu2 }
 0x1f5   : > { %7203 = vst [vmem:[#allocation30_spill] sm:$0xff] %v6083_v37  ;;  %v1348_v37 = vld [vmem:[%s5533_s8 + $0x92] sm:$0xff] }
 0x1f6   : > { %v6085_v35 = vpop.f32.mrf.mxu1  ;;  %v6087_v8 = vpop.f32.mrf.mxu3  ;;  %2179 = vmatmul.f32.gmra.mxu0 %v4375_v20 }
 0x1f7   : > { %7204 = vst [vmem:[#allocation31_spill] sm:$0xff] %v6087_v8 }
 0x1f9   : > { %1118 = vmatmul.f32.gmra.mxu1 %v4372_v11  ;;  %1472 = vmatmul.f32.gmra.mxu2 %v1347_v10 }
 0x1fb   : > { %1828 = vmatmul.f32.gmra.mxu3 %v5616_v34  ;;  %v6091_v18 = vpop.f32.mrf.mxu0  ;;  %v4377_v34 = vld [vmem:[%s5533_s8 + $0xb9] sm:$0xff] }
 0x1fc   : > { %v6094_v4 = vpop.f32.mrf.mxu2 }
 0x1fd   : > { %7205 = vst [vmem:[#allocation32_spill] sm:$0xff] %v6094_v4  ;;  %v1349_v4 = vld [vmem:[%s5533_s8 + $0xa2] sm:$0xff] }
 0x1fe   : > { %v6096_v26 = vpop.f32.mrf.mxu1  ;;  %v6098_v48 = vpop.f32.mrf.mxu3  ;;  %2182 = vmatmul.f32.gmra.mxu0 %v4376_v6 }
 0x1ff   : > { %7206 = vst [vmem:[#allocation33_spill] sm:$0xff] %v6098_v48  ;;  %v6113_v48 = vld [vmem:[%s7178_s2] ss:$0 sm:$0xff] }
 0x201   : > { %1121 = vmatmul.f32.gmra.mxu1 %v4373_v15  ;;  %1475 = vmatmul.f32.gmra.mxu2 %v1348_v37  ;;  %v915_v37 = vadd.f32 %v6113_v48, %v5889_v28 }
 0x203   : > { %1831 = vmatmul.f32.gmra.mxu3 %v5638_v43  ;;  %v6102_v11 = vpop.f32.mrf.mxu0  ;;  %v4596_v43 = vld [vmem:[%s7177_s1 + $0x350] sm:$0xff] }
 0x204   : > { %v6105_v10 = vpop.f32.mrf.mxu2  ;;  %2839 = vmatpush.msra.mxu2 %v4596_v43  ;;  %v1350_v43 = vld [vmem:[%s5533_s8 + $0xaa] sm:$0xff] }
 0x205   : > { %7207 = vst [vmem:[#allocation34_spill] sm:$0xff] %v6105_v10  ;;  %v4378_v10 = vld [vmem:[%s5533_s8 + $0xc9] sm:$0xff] }
 0x206   : > { %v6107_v8 = vpop.f32.mrf.mxu3  ;;  %v1077_v62 = vpop.f32.mrf.mxu1  ;;  %2185 = vmatmul.f32.gmra.mxu0 %v4377_v34 }
 0x207   : > { %7208 = vst [vmem:[#allocation35_spill] sm:$0xff] %v6107_v8  ;;  %v1269_v15 = vadd.f32 %v1077_v62, %v915_v37  ;;  %v916_v62 = vadd.f32 %v6113_v48, %v5907_v40 }
 0x209   : > { %1124 = vmatmul.f32.gmra.mxu1 %v4374_v42  ;;  %1478 = vmatmul.f32.gmra.mxu2 %v1349_v4  ;;  %v4516_v42 = vld [vmem:[%s7177_s1 + $0x2d0] sm:$0xff] }
 0x20a   : > { %2483 = vmatpush.msra.mxu1 %v4516_v42 }
 0x20b   : > { %1834 = vmatmul.f32.gmra.mxu3 %v5657_v51  ;;  %v2141_v8 = vpop.f32.mrf.mxu0 }
 0x20c   : > { %v1431_v25 = vpop.f32.mrf.mxu2 }
 0x20d   : > { %v1623_v28 = vadd.f32 %v1431_v25, %v1269_v15  ;;  %v6135_v15 = vld [vmem:[%s5533_s8 + $0xd1] sm:$0xff] }
 0x20e   : > { %v1080_v4 = vpop.f32.mrf.mxu1  ;;  %v1787_v60 = vpop.f32.mrf.mxu3  ;;  %2188 = vmatmul.f32.gmra.mxu0 %v4378_v10 }
 0x20f   : > { %v1979_v51 = vadd.f32 %v1787_v60, %v1623_v28  ;;  %v1270_v17 = vadd.f32 %v1080_v4, %v916_v62 }
 0x211   : > { %v6131_v37 = vadd.f32 %v2141_v8, %v1979_v51  ;;  %1127 = vmatmul.f32.gmra.mxu1 %v4375_v20  ;;  %1481 = vmatmul.f32.gmra.mxu2 %v1350_v43  ;;  %v1351_v8 = vld [vmem:[%s5533_s8 + $0xb2] sm:$0xff] }
 0x213   : > { %7209 = vst [vmem:[#allocation36_spill] sm:$0xff] %v6131_v37  ;;  %1837 = vmatmul.f32.gmra.mxu3 %v5678_v59  ;;  %v2144_v25 = vpop.f32.mrf.mxu0  ;;  %v917_v59 = vadd.f32 %v6113_v48, %v5922_v63 }
 0x214   : > { %v1434_v42 = vpop.f32.mrf.mxu2 }
 0x215   : > { %v1624_v60 = vadd.f32 %v1434_v42, %v1270_v17 }
 0x216   : > { %v1083_v28 = vpop.f32.mrf.mxu1  ;;  %v1790_v40 = vpop.f32.mrf.mxu3  ;;  %2191 = vmatmul.f32.gmra.mxu0 %v6135_v15 }
 0x217   : > { %v1980_v20 = vadd.f32 %v1790_v40, %v1624_v60  ;;  %v1271_v43 = vadd.f32 %v1083_v28, %v917_v59  ;;  %v1352_v60 = vld [vmem:[%s5533_s8 + $0xba] sm:$0xff] }
 0x218   : > { %v6158_v40 = vld [vmem:[%s5533_s8 + $0xe1] sm:$0xff] }
 0x219   : > { %v6144_v4 = vadd.f32 %v2144_v25, %v1980_v20  ;;  %1130 = vmatmul.f32.gmra.mxu1 %v4376_v6  ;;  %1484 = vmatmul.f32.gmra.mxu2 %v1351_v8  ;;  %v918_v6 = vadd.f32 %v6113_v48, %v5934_v0  ;;  %v919_v0 = vadd.f32 %v6113_v48, %v5948_v16 }
 0x21b   : > { %1840 = vmatmul.f32.gmra.mxu3 %v5700_v3  ;;  %v2147_v51 = vpop.f32.mrf.mxu0 }
 0x21c   : > { %v1437_v62 = vpop.f32.mrf.mxu2 }
 0x21d   : > { %v1625_v17 = vadd.f32 %v1437_v62, %v1271_v43  ;;  %v1353_v62 = vld [vmem:[%s5533_s8 + $0xca] sm:$0xff] }
 0x21e   : > { %v1086_v42 = vpop.f32.mrf.mxu1  ;;  %v1793_v37 = vpop.f32.mrf.mxu3  ;;  %2194 = vmatmul.f32.gmra.mxu0 %v6148_v41 }
 0x21f   : > { %v1981_v63 = vadd.f32 %v1793_v37, %v1625_v17  ;;  %v1272_v3 = vadd.f32 %v1086_v42, %v918_v6  ;;  %v4382_v42 = vld [vmem:[%s5533_s8 + $0xf1] sm:$0xff] }
 0x221   : > { %v6154_v25 = vadd.f32 %v2147_v51, %v1981_v63  ;;  %1133 = vmatmul.f32.gmra.mxu1 %v4377_v34  ;;  %1487 = vmatmul.f32.gmra.mxu2 %v1352_v60  ;;  %v4675_v60 = vld [vmem:[%s7177_s1 + $0x3c8] sm:$0xff] }
 0x222   : > { %3194 = vmatpush.msra.mxu3 %v4675_v60 }
 0x223   : > { %1843 = vmatmul.f32.gmra.mxu3 %v5722_v12  ;;  %v2150_v28 = vpop.f32.mrf.mxu0  ;;  %v4595_v12 = vld [vmem:[%s7177_s1 + $0x348] sm:$0xff] }
 0x224   : > { %v1440_v8 = vpop.f32.mrf.mxu2  ;;  %2840 = vmatpush.msra.mxu2 %v4595_v12 }
 0x225   : > { %v1626_v20 = vadd.f32 %v1440_v8, %v1272_v3  ;;  %v920_v8 = vadd.f32 %v6113_v48, %v5965_v24 }
 0x226   : > { %v1089_v59 = vpop.f32.mrf.mxu1  ;;  %v1796_v43 = vpop.f32.mrf.mxu3  ;;  %2197 = vmatmul.f32.gmra.mxu0 %v6158_v40 }
 0x227   : > { %v1982_v37 = vadd.f32 %v1796_v43, %v1626_v20  ;;  %v1273_v51 = vadd.f32 %v1089_v59, %v919_v0 }
 0x229   : > { %v6164_v34 = vadd.f32 %v2150_v28, %v1982_v37  ;;  %1136 = vmatmul.f32.gmra.mxu1 %v4378_v10  ;;  %1490 = vmatmul.f32.gmra.mxu2 %v1353_v62  ;;  %v4515_v10 = vld [vmem:[%s7177_s1 + $0x2c8] sm:$0xff] }
 0x22a   : > { %v1354_v28 = vld [vmem:[%s5533_s8 + $0xd2] sm:$0xff]  ;;  %2484 = vmatpush.msra.mxu1 %v4515_v10  ;;  %v6199_v10 = vld [vmem:[%s5533_s8 + $0x101] sm:$0xff] }
 0x22b   : > { %1846 = vmatmul.f32.gmra.mxu3 %v5744_v21  ;;  %v2153_v17 = vpop.f32.mrf.mxu0  ;;  %v6185_v62 = vld [vmem:[%s5533_s8 + $0xf9] sm:$0xff] }
 0x22c   : > { %v1443_v16 = vpop.f32.mrf.mxu2  ;;  %v4755_v37 = vld [vmem:[%s7177_s1 + $0x448] sm:$0xff] }
 0x22d   : > { %v1627_v63 = vadd.f32 %v1443_v16, %v1273_v51  ;;  %3548 = vmatpush.msra.mxu0 %v4755_v37  ;;  %v6210_v37 = vld [vmem:[%s5533_s8 + $0x109] sm:$0xff] }
 0x22e   : > { %v1092_v6 = vpop.f32.mrf.mxu1  ;;  %v1799_v3 = vpop.f32.mrf.mxu3  ;;  %2200 = vmatmul.f32.gmra.mxu0 %v4382_v42 }
 0x22f   : > { %v1983_v21 = vadd.f32 %v1799_v3, %v1627_v63  ;;  %v1274_v59 = vadd.f32 %v1092_v6, %v920_v8  ;;  %v1356_v8 = vld [vmem:[%s5533_s8 + $0xe2] sm:$0xff] }
 0x231   : > { %v6180_v20 = vadd.f32 %v2153_v17, %v1983_v21  ;;  %1139 = vmatmul.f32.gmra.mxu1 %v6135_v15  ;;  %1493 = vmatmul.f32.gmra.mxu2 %v1354_v28  ;;  %v1355_v17 = vld [vmem:[%s5533_s8 + $0xda] sm:$0xff] }
 0x233   : > { %1849 = vmatmul.f32.gmra.mxu3 %v5766_v29  ;;  %v2156_v43 = vpop.f32.mrf.mxu0  ;;  %v921_v29 = vadd.f32 %v6113_v48, %v5979_v33 }
 0x234   : > { %v1446_v0 = vpop.f32.mrf.mxu2 }
 0x235   : > { %v1628_v12 = vadd.f32 %v1446_v0, %v1274_v59 }
 0x236   : > { %v1095_v24 = vpop.f32.mrf.mxu1  ;;  %v1802_v51 = vpop.f32.mrf.mxu3  ;;  %2203 = vmatmul.f32.gmra.mxu0 %v6185_v62 }
 0x237   : > { %v1984_v15 = vadd.f32 %v1802_v51, %v1628_v12  ;;  %v1275_v16 = vadd.f32 %v1095_v24, %v921_v29 }
 0x239   : > { %v6194_v60 = vadd.f32 %v2156_v43, %v1984_v15  ;;  %1142 = vmatmul.f32.gmra.mxu1 %v6148_v41  ;;  %1496 = vmatmul.f32.gmra.mxu2 %v1355_v17  ;;  %v922_v41 = vadd.f32 %v6113_v48, %v5990_v53  ;;  %v1357_v17 = vld [vmem:[%s5533_s8 + $0xf2] sm:$0xff]  ;;  %v923_v15 = vadd.f32 %v6113_v48, %v6004_v52 }
 0x23a   : > { %v4674_v52 = vld [vmem:[%s7177_s1 + $0x3c0] sm:$0xff] }
 0x23b   : > { %1852 = vmatmul.f32.gmra.mxu3 %v5788_v38  ;;  %v2159_v63 = vpop.f32.mrf.mxu0 }
 0x23c   : > { %v1449_v6 = vpop.f32.mrf.mxu2  ;;  %3195 = vmatpush.msra.mxu3 %v4674_v52  ;;  %v6254_v52 = vld [vmem:[%s5533_s8 + $0x129] sm:$0xff] }
 0x23d   : > { %v1629_v3 = vadd.f32 %v1449_v6, %v1275_v16 }
 0x23e   : > { %v1098_v28 = vpop.f32.mrf.mxu1  ;;  %v1805_v21 = vpop.f32.mrf.mxu3  ;;  %2206 = vmatmul.f32.gmra.mxu0 %v6199_v10 }
 0x23f   : > { %v1985_v33 = vadd.f32 %v1805_v21, %v1629_v3  ;;  %v1276_v38 = vadd.f32 %v1098_v28, %v922_v41  ;;  %v4514_v3 = vld [vmem:[%s7177_s1 + $0x2c0] sm:$0xff] }
 0x240   : > { %2485 = vmatpush.msra.mxu1 %v4514_v3 }
 0x241   : > { %v6205_v59 = vadd.f32 %v2159_v63, %v1985_v33  ;;  %1145 = vmatmul.f32.gmra.mxu1 %v6158_v40  ;;  %1499 = vmatmul.f32.gmra.mxu2 %v1356_v8  ;;  %v6223_v63 = vld [vmem:[%s5533_s8 + $0x119] sm:$0xff]  ;;  %v924_v33 = vadd.f32 %v6113_v48, %v6021_v50 }
 0x242   : > { %v1358_v8 = vld [vmem:[%s5533_s8 + $0xfa] sm:$0xff] }
 0x243   : > { %1855 = vmatmul.f32.gmra.mxu3 %v5810_v47  ;;  %v2162_v43 = vpop.f32.mrf.mxu0  ;;  %v4594_v47 = vld [vmem:[%s7177_s1 + $0x340] sm:$0xff] }
 0x244   : > { %v1452_v0 = vpop.f32.mrf.mxu2  ;;  %2841 = vmatpush.msra.mxu2 %v4594_v47 }
 0x245   : > { %v1630_v12 = vadd.f32 %v1452_v0, %v1276_v38  ;;  %v6240_v0 = vld [vmem:[%s5533_s8 + $0x121] sm:$0xff] }
 0x246   : > { %v1101_v24 = vpop.f32.mrf.mxu1  ;;  %v1808_v51 = vpop.f32.mrf.mxu3  ;;  %2209 = vmatmul.f32.gmra.mxu0 %v6210_v37 }
 0x247   : > { %v1986_v53 = vadd.f32 %v1808_v51, %v1630_v12  ;;  %v1277_v29 = vadd.f32 %v1101_v24, %v923_v15  ;;  %v4754_v12 = vld [vmem:[%s7177_s1 + $0x440] sm:$0xff]  ;;  %v4308_v15 = vld [vmem:[%s5533_s8 + $0x128] sm:$0xff] }
 0x248   : > { %3549 = vmatpush.msra.mxu0 %v4754_v12 }
 0x249   : > { %v6216_v40 = vadd.f32 %v2162_v43, %v1986_v53  ;;  %1148 = vmatmul.f32.gmra.mxu1 %v4382_v42  ;;  %1502 = vmatmul.f32.gmra.mxu2 %v1357_v17  ;;  %v1359_v53 = vld [vmem:[%s5533_s8 + $0x102] sm:$0xff] }
 0x24b   : > { %1858 = vmatmul.f32.gmra.mxu3 %v5832_v57  ;;  %v2165_v16 = vpop.f32.mrf.mxu0 }
 0x24c   : > { %v1455_v6 = vpop.f32.mrf.mxu2 }
 0x24d   : > { %v1631_v42 = vadd.f32 %v1455_v6, %v1277_v29 }
 0x24e   : > { %v1104_v28 = vpop.f32.mrf.mxu1  ;;  %v1811_v21 = vpop.f32.mrf.mxu3  ;;  %2212 = vmatmul.f32.gmra.mxu0 %v6223_v63 }
 0x24f   : > { %v1987_v57 = vadd.f32 %v1811_v21, %v1631_v42  ;;  %v1278_v38 = vadd.f32 %v1104_v28, %v924_v33  ;;  %v1360_v21 = vld [vmem:[%s5533_s8 + $0x10a] sm:$0xff] }
 0x251   : > { %v6235_v41 = vadd.f32 %v2165_v16, %v1987_v57  ;;  %1151 = vmatmul.f32.gmra.mxu1 %v6185_v62  ;;  %1505 = vmatmul.f32.gmra.mxu2 %v1358_v8  ;;  %v4309_v8 = vld [vmem:[%s5533_s8 + $0x130] sm:$0xff] }
 0x253   : > { %1861 = vmatmul.f32.gmra.mxu3 %v5854_v5  ;;  %v2168_v43 = vpop.f32.mrf.mxu0  ;;  %v925_v5 = vadd.f32 %v6113_v48, %v6035_v9 }
 0x254   : > { %v1458_v24 = vpop.f32.mrf.mxu2 }
 0x255   : > { %v1632_v50 = vadd.f32 %v1458_v24, %v1278_v38 }
 0x256   : > { %v1107_v51 = vpop.f32.mrf.mxu1  ;;  %v1814_v17 = vpop.f32.mrf.mxu3  ;;  %2215 = vmatmul.f32.gmra.mxu0 %v6240_v0 }
 0x257   : > { %v1988_v62 = vadd.f32 %v1814_v17, %v1632_v50  ;;  %v1279_v29 = vadd.f32 %v1107_v51, %v925_v5  ;;  %v1361_v17 = vld [vmem:[%s5533_s8 + $0x11a] sm:$0xff] }
 0x259   : > { %v6250_v47 = vadd.f32 %v2168_v43, %v1988_v62  ;;  %1154 = vmatmul.f32.gmra.mxu1 %v6199_v10  ;;  %1508 = vmatmul.f32.gmra.mxu2 %v1359_v53  ;;  %v926_v10 = vadd.f32 %v6113_v48, %v6046_v39  ;;  %v6265_v43 = vld [vmem:[%s5533_s8 + $0x131] sm:$0xff]  ;;  %v4310_v39 = vld [vmem:[%s5533_s8 + $0x140] sm:$0xff]  ;;  %v927_v62 = vadd.f32 %v6113_v48, %v6060_v22 }
 0x25a   : > { %v4673_v22 = vld [vmem:[%s7177_s1 + $0x3b8] sm:$0xff] }
 0x25b   : > { %1864 = vmatmul.f32.gmra.mxu3 %v4308_v15  ;;  %v2171_v16 = vpop.f32.mrf.mxu0  ;;  %v4593_v15 = vld [vmem:[%s7177_s1 + $0x338] sm:$0xff] }
 0x25c   : > { %v1461_v6 = vpop.f32.mrf.mxu2  ;;  %2842 = vmatpush.msra.mxu2 %v4593_v15  ;;  %3196 = vmatpush.msra.mxu3 %v4673_v22  ;;  %v929_v15 = vadd.f32 %v6113_v48, %v6091_v18 }
 0x25d   : > { %v1633_v42 = vadd.f32 %v1461_v6, %v1279_v29 }
 0x25e   : > { %v1110_v3 = vpop.f32.mrf.mxu1  ;;  %v1817_v28 = vpop.f32.mrf.mxu3  ;;  %2218 = vmatmul.f32.gmra.mxu0 %v6254_v52 }
 0x25f   : > { %v1989_v9 = vadd.f32 %v1817_v28, %v1633_v42  ;;  %v1280_v33 = vadd.f32 %v1110_v3, %v926_v10  ;;  %v928_v10 = vadd.f32 %v6113_v48, %v6077_v58 }
 0x261   : > { %v6261_v57 = vadd.f32 %v2171_v16, %v1989_v9  ;;  %1157 = vmatmul.f32.gmra.mxu1 %v6210_v37  ;;  %1511 = vmatmul.f32.gmra.mxu2 %v1360_v21  ;;  %v6279_v16 = vld [vmem:[%s5533_s8 + $0x141] sm:$0xff] }
 0x262   : > { %v1362_v21 = vld [vmem:[%s5533_s8 + $0x122] sm:$0xff] }
 0x263   : > { %1867 = vmatmul.f32.gmra.mxu3 %v4309_v8  ;;  %v2174_v38 = vpop.f32.mrf.mxu0  ;;  %v4311_v8 = vld [vmem:[%s5533_s8 + $0x148] sm:$0xff] }
 0x264   : > { %v1464_v12 = vpop.f32.mrf.mxu2 }
 0x265   : > { %v1634_v24 = vadd.f32 %v1464_v12, %v1280_v33 }
 0x266   : > { %v1113_v50 = vpop.f32.mrf.mxu1  ;;  %v1820_v51 = vpop.f32.mrf.mxu3  ;;  %2221 = vmatmul.f32.gmra.mxu0 %v6265_v43 }
 0x267   : > { %v1990_v53 = vadd.f32 %v1820_v51, %v1634_v24  ;;  %v1281_v5 = vadd.f32 %v1113_v50, %v927_v62  ;;  %v6296_v24 = vld [vmem:[%s5533_s8 + $0x149] sm:$0xff] }
 0x268   : > { %v4753_v50 = vld [vmem:[%s7177_s1 + $0x438] sm:$0xff]  ;;  %v4312_v62 = vld [vmem:[%s5533_s8 + $0x150] sm:$0xff] }
 0x269   : > { %v6272_v37 = vadd.f32 %v2174_v38, %v1990_v53  ;;  %1160 = vmatmul.f32.gmra.mxu1 %v6223_v63  ;;  %1514 = vmatmul.f32.gmra.mxu2 %v1361_v17  ;;  %v4513_v63 = vld [vmem:[%s7177_s1 + $0x2b8] sm:$0xff] }
 0x26a   : > { %2486 = vmatpush.msra.mxu1 %v4513_v63  ;;  %3550 = vmatpush.msra.mxu0 %v4753_v50 }
 0x26b   : > { %1870 = vmatmul.f32.gmra.mxu3 %v4310_v39  ;;  %v2177_v29 = vpop.f32.mrf.mxu0  ;;  %v1363_v39 = vld [vmem:[%s5533_s8 + $0x12a] sm:$0xff] }
 0x26c   : > { %v1467_v6 = vpop.f32.mrf.mxu2 }
 0x26d   : > { %v1635_v42 = vadd.f32 %v1467_v6, %v1281_v5  ;;  %v6310_v6 = vld [vmem:[%s5533_s8 + $0x151] sm:$0xff] }
 0x26e   : > { %v1116_v3 = vpop.f32.mrf.mxu1  ;;  %v1823_v28 = vpop.f32.mrf.mxu3  ;;  %2224 = vmatmul.f32.gmra.mxu0 %v6279_v16 }
 0x26f   : > { %v1991_v9 = vadd.f32 %v1823_v28, %v1635_v42  ;;  %v1282_v38 = vadd.f32 %v1116_v3, %v928_v10 }
 0x271   : > { %v6292_v33 = vadd.f32 %v2177_v29, %v1991_v9  ;;  %1163 = vmatmul.f32.gmra.mxu1 %v6240_v0  ;;  %1517 = vmatmul.f32.gmra.mxu2 %v1362_v21  ;;  %v1364_v21 = vld [vmem:[%s5533_s8 + $0x132] sm:$0xff] }
 0x272   : > { %v4313_v9 = vld [vmem:[%s5533_s8 + $0x158] sm:$0xff] }
 0x273   : > { %1873 = vmatmul.f32.gmra.mxu3 %v4311_v8  ;;  %v2180_v12 = vpop.f32.mrf.mxu0 }
 0x274   : > { %v1470_v51 = vpop.f32.mrf.mxu2 }
 0x275   : > { %v1636_v17 = vadd.f32 %v1470_v51, %v1282_v38 }
 0x276   : > { %v1119_v58 = vpop.f32.mrf.mxu1  ;;  %v1826_v53 = vpop.f32.mrf.mxu3  ;;  %2227 = vmatmul.f32.gmra.mxu0 %v6296_v24 }
 0x277   : > { %v1992_v0 = vadd.f32 %v1826_v53, %v1636_v17  ;;  %v1283_v29 = vadd.f32 %v1119_v58, %v929_v15  ;;  %v1365_v53 = vld [vmem:[%s5533_s8 + $0x142] sm:$0xff] }
 0x279   : > { %v6306_v5 = vadd.f32 %v2180_v12, %v1992_v0  ;;  %1166 = vmatmul.f32.gmra.mxu1 %v6254_v52  ;;  %1520 = vmatmul.f32.gmra.mxu2 %v1363_v39  ;;  %v930_v52 = vadd.f32 %v6113_v48, %v6102_v11  ;;  %v6321_v12 = vld [vmem:[%s5533_s8 + $0x159] sm:$0xff]  ;;  %v4314_v11 = vld [vmem:[%s5533_s8 + $0x168] sm:$0xff]  ;;  %v931_v0 = vadd.f32 %v6113_v48, %v5880_v23 }
 0x27a   : > { %v4672_v23 = vld [vmem:[%s7177_s1 + $0x3b0] sm:$0xff] }
 0x27b   : > { %1876 = vmatmul.f32.gmra.mxu3 %v4312_v62  ;;  %v2183_v22 = vpop.f32.mrf.mxu0  ;;  %v4592_v62 = vld [vmem:[%s7177_s1 + $0x330] sm:$0xff] }
 0x27c   : > { %v1473_v42 = vpop.f32.mrf.mxu2  ;;  %2843 = vmatpush.msra.mxu2 %v4592_v62  ;;  %3197 = vmatpush.msra.mxu3 %v4672_v23  ;;  %v933_v62 = vadd.f32 %v6113_v48, %v5915_v46 }
 0x27d   : > { %v1637_v63 = vadd.f32 %v1473_v42, %v1283_v29 }
 0x27e   : > { %v1122_v3 = vpop.f32.mrf.mxu1  ;;  %v1829_v28 = vpop.f32.mrf.mxu3  ;;  %2230 = vmatmul.f32.gmra.mxu0 %v6310_v6 }
 0x27f   : > { %v1993_v18 = vadd.f32 %v1829_v28, %v1637_v63  ;;  %v1284_v10 = vadd.f32 %v1122_v3, %v930_v52  ;;  %v932_v52 = vadd.f32 %v6113_v48, %v5900_v36 }
 0x281   : > { %v6317_v8 = vadd.f32 %v2183_v22, %v1993_v18  ;;  %1169 = vmatmul.f32.gmra.mxu1 %v6265_v43  ;;  %1523 = vmatmul.f32.gmra.mxu2 %v1364_v21  ;;  %v6335_v22 = vld [vmem:[%s5533_s8 + $0x169] sm:$0xff] }
 0x282   : > { %v1366_v21 = vld [vmem:[%s5533_s8 + $0x14a] sm:$0xff] }
 0x283   : > { %1879 = vmatmul.f32.gmra.mxu3 %v4313_v9  ;;  %v2186_v38 = vpop.f32.mrf.mxu0  ;;  %v4315_v9 = vld [vmem:[%s5533_s8 + $0x170] sm:$0xff] }
 0x284   : > { %v1476_v50 = vpop.f32.mrf.mxu2 }
 0x285   : > { %v1638_v51 = vadd.f32 %v1476_v50, %v1284_v10 }
 0x286   : > { %v1125_v17 = vpop.f32.mrf.mxu1  ;;  %v1832_v58 = vpop.f32.mrf.mxu3  ;;  %2233 = vmatmul.f32.gmra.mxu0 %v6321_v12 }
 0x287   : > { %v1994_v39 = vadd.f32 %v1832_v58, %v1638_v51  ;;  %v1285_v15 = vadd.f32 %v1125_v17, %v931_v0  ;;  %v6352_v51 = vld [vmem:[%s5533_s8 + $0x171] sm:$0xff] }
 0x288   : > { %v4752_v17 = vld [vmem:[%s7177_s1 + $0x430] sm:$0xff]  ;;  %v4316_v0 = vld [vmem:[%s5533_s8 + $0x178] sm:$0xff] }
 0x289   : > { %v6328_v43 = vadd.f32 %v2186_v38, %v1994_v39  ;;  %1172 = vmatmul.f32.gmra.mxu1 %v6279_v16  ;;  %1526 = vmatmul.f32.gmra.mxu2 %v1365_v53  ;;  %v4512_v16 = vld [vmem:[%s7177_s1 + $0x2b0] sm:$0xff] }
 0x28a   : > { %2487 = vmatpush.msra.mxu1 %v4512_v16  ;;  %3551 = vmatpush.msra.mxu0 %v4752_v17 }
 0x28b   : > { %1882 = vmatmul.f32.gmra.mxu3 %v4314_v11  ;;  %v2189_v29 = vpop.f32.mrf.mxu0  ;;  %v1367_v11 = vld [vmem:[%s5533_s8 + $0x152] sm:$0xff] }
 0x28c   : > { %v1479_v42 = vpop.f32.mrf.mxu2 }
 0x28d   : > { %v1639_v63 = vadd.f32 %v1479_v42, %v1285_v15  ;;  %v6366_v42 = vld [vmem:[%s5533_s8 + $0x179] sm:$0xff] }
 0x28e   : > { %v1128_v3 = vpop.f32.mrf.mxu1  ;;  %v1835_v28 = vpop.f32.mrf.mxu3  ;;  %2236 = vmatmul.f32.gmra.mxu0 %v6335_v22 }
 0x28f   : > { %v1995_v18 = vadd.f32 %v1835_v28, %v1639_v63  ;;  %v1286_v38 = vadd.f32 %v1128_v3, %v932_v52 }
 0x291   : > { %v6348_v10 = vadd.f32 %v2189_v29, %v1995_v18  ;;  %1175 = vmatmul.f32.gmra.mxu1 %v6296_v24  ;;  %1529 = vmatmul.f32.gmra.mxu2 %v1366_v21  ;;  %v1368_v21 = vld [vmem:[%s5533_s8 + $0x15a] sm:$0xff] }
 0x292   : > { %v4317_v18 = vld [vmem:[%s5533_s8 + $0x180] sm:$0xff] }
 0x293   : > { %1885 = vmatmul.f32.gmra.mxu3 %v4315_v9  ;;  %v2192_v50 = vpop.f32.mrf.mxu0 }
 0x294   : > { %v1482_v58 = vpop.f32.mrf.mxu2 }
 0x295   : > { %v1640_v53 = vadd.f32 %v1482_v58, %v1286_v38 }
 0x296   : > { %v1131_v36 = vpop.f32.mrf.mxu1  ;;  %v1838_v39 = vpop.f32.mrf.mxu3  ;;  %2239 = vmatmul.f32.gmra.mxu0 %v6352_v51 }
 0x297   : > { %v1996_v24 = vadd.f32 %v1838_v39, %v1640_v53  ;;  %v1287_v29 = vadd.f32 %v1131_v36, %v933_v62  ;;  %v1369_v39 = vld [vmem:[%s5533_s8 + $0x16a] sm:$0xff] }
 0x299   : > { %v6362_v15 = vadd.f32 %v2192_v50, %v1996_v24  ;;  %1178 = vmatmul.f32.gmra.mxu1 %v6310_v6  ;;  %1532 = vmatmul.f32.gmra.mxu2 %v1367_v11  ;;  %v934_v6 = vadd.f32 %v6113_v48, %v5927_v56  ;;  %v6377_v50 = vld [vmem:[%s5533_s8 + $0x181] sm:$0xff]  ;;  %v4318_v56 = vld [vmem:[%s5533_s8 + $0x190] sm:$0xff]  ;;  %v935_v24 = vadd.f32 %v6113_v48, %v5939_v2 }
 0x29a   : > { %v4671_v2 = vld [vmem:[%s7177_s1 + $0x3a8] sm:$0xff] }
 0x29b   : > { %1888 = vmatmul.f32.gmra.mxu3 %v4316_v0  ;;  %v2195_v23 = vpop.f32.mrf.mxu0  ;;  %v4591_v0 = vld [vmem:[%s7177_s1 + $0x328] sm:$0xff] }
 0x29c   : > { %v1485_v63 = vpop.f32.mrf.mxu2  ;;  %2844 = vmatpush.msra.mxu2 %v4591_v0  ;;  %3198 = vmatpush.msra.mxu3 %v4671_v2  ;;  %v937_v0 = vadd.f32 %v6113_v48, %v5973_v31 }
 0x29d   : > { %v1641_v16 = vadd.f32 %v1485_v63, %v1287_v29 }
 0x29e   : > { %v1134_v3 = vpop.f32.mrf.mxu1  ;;  %v1841_v28 = vpop.f32.mrf.mxu3  ;;  %2242 = vmatmul.f32.gmra.mxu0 %v6366_v42 }
 0x29f   : > { %v1997_v46 = vadd.f32 %v1841_v28, %v1641_v16  ;;  %v1288_v52 = vadd.f32 %v1134_v3, %v934_v6  ;;  %v936_v6 = vadd.f32 %v6113_v48, %v5959_v19 }
 0x2a1   : > { %v6373_v9 = vadd.f32 %v2195_v23, %v1997_v46  ;;  %1181 = vmatmul.f32.gmra.mxu1 %v6321_v12  ;;  %1535 = vmatmul.f32.gmra.mxu2 %v1368_v21  ;;  %v6391_v23 = vld [vmem:[%s5533_s8 + $0x191] sm:$0xff] }
 0x2a2   : > { %v1370_v21 = vld [vmem:[%s5533_s8 + $0x172] sm:$0xff] }
 0x2a3   : > { %1891 = vmatmul.f32.gmra.mxu3 %v4317_v18  ;;  %v2198_v38 = vpop.f32.mrf.mxu0  ;;  %v4319_v18 = vld [vmem:[%s5533_s8 + $0x198] sm:$0xff] }
 0x2a4   : > { %v1488_v17 = vpop.f32.mrf.mxu2 }
 0x2a5   : > { %v1642_v58 = vadd.f32 %v1488_v17, %v1288_v52 }
 0x2a6   : > { %v1137_v53 = vpop.f32.mrf.mxu1  ;;  %v1844_v36 = vpop.f32.mrf.mxu3  ;;  %2245 = vmatmul.f32.gmra.mxu0 %v6377_v50 }
 0x2a7   : > { %v1998_v11 = vadd.f32 %v1844_v36, %v1642_v58  ;;  %v1289_v62 = vadd.f32 %v1137_v53, %v935_v24  ;;  %v6408_v58 = vld [vmem:[%s5533_s8 + $0x199] sm:$0xff] }
 0x2a8   : > { %v4751_v53 = vld [vmem:[%s7177_s1 + $0x428] sm:$0xff]  ;;  %v4320_v24 = vld [vmem:[%s5533_s8 + $0x1a0] sm:$0xff] }
 0x2a9   : > { %v6384_v12 = vadd.f32 %v2198_v38, %v1998_v11  ;;  %1184 = vmatmul.f32.gmra.mxu1 %v6335_v22  ;;  %1538 = vmatmul.f32.gmra.mxu2 %v1369_v39  ;;  %v4511_v22 = vld [vmem:[%s7177_s1 + $0x2a8] sm:$0xff] }
 0x2aa   : > { %2488 = vmatpush.msra.mxu1 %v4511_v22  ;;  %3552 = vmatpush.msra.mxu0 %v4751_v53 }
 0x2ab   : > { %1894 = vmatmul.f32.gmra.mxu3 %v4318_v56  ;;  %v2201_v29 = vpop.f32.mrf.mxu0  ;;  %v1371_v56 = vld [vmem:[%s5533_s8 + $0x17a] sm:$0xff] }
 0x2ac   : > { %v1491_v63 = vpop.f32.mrf.mxu2 }
 0x2ad   : > { %v1643_v16 = vadd.f32 %v1491_v63, %v1289_v62  ;;  %v6422_v63 = vld [vmem:[%s5533_s8 + $0x1a1] sm:$0xff] }
 0x2ae   : > { %v1140_v3 = vpop.f32.mrf.mxu1  ;;  %v1847_v28 = vpop.f32.mrf.mxu3  ;;  %2248 = vmatmul.f32.gmra.mxu0 %v6391_v23 }
 0x2af   : > { %v1999_v46 = vadd.f32 %v1847_v28, %v1643_v16  ;;  %v1290_v38 = vadd.f32 %v1140_v3, %v936_v6 }
 0x2b1   : > { %v6404_v52 = vadd.f32 %v2201_v29, %v1999_v46  ;;  %1187 = vmatmul.f32.gmra.mxu1 %v6352_v51  ;;  %1541 = vmatmul.f32.gmra.mxu2 %v1370_v21  ;;  %v1372_v21 = vld [vmem:[%s5533_s8 + $0x182] sm:$0xff] }
 0x2b2   : > { %v4321_v46 = vld [vmem:[%s5533_s8 + $0x1a8] sm:$0xff] }
 0x2b3   : > { %1897 = vmatmul.f32.gmra.mxu3 %v4319_v18  ;;  %v2204_v17 = vpop.f32.mrf.mxu0 }
 0x2b4   : > { %v1494_v36 = vpop.f32.mrf.mxu2 }
 0x2b5   : > { %v1644_v39 = vadd.f32 %v1494_v36, %v1290_v38 }
 0x2b6   : > { %v1143_v19 = vpop.f32.mrf.mxu1  ;;  %v1850_v11 = vpop.f32.mrf.mxu3  ;;  %2251 = vmatmul.f32.gmra.mxu0 %v6408_v58 }
 0x2b7   : > { %v2000_v51 = vadd.f32 %v1850_v11, %v1644_v39  ;;  %v1291_v29 = vadd.f32 %v1143_v19, %v937_v0  ;;  %v1373_v11 = vld [vmem:[%s5533_s8 + $0x192] sm:$0xff] }
 0x2b9   : > { %v6418_v62 = vadd.f32 %v2204_v17, %v2000_v51  ;;  %1190 = vmatmul.f32.gmra.mxu1 %v6366_v42  ;;  %1544 = vmatmul.f32.gmra.mxu2 %v1371_v56  ;;  %v938_v42 = vadd.f32 %v6113_v48, %v5984_v44  ;;  %v6433_v17 = vld [vmem:[%s5533_s8 + $0x1a9] sm:$0xff]  ;;  %v4322_v44 = vld [vmem:[%s5533_s8 + $0x1b8] sm:$0xff]  ;;  %v939_v51 = vadd.f32 %v6113_v48, %v5995_v61 }
 0x2ba   : > { %v4670_v61 = vld [vmem:[%s7177_s1 + $0x3a0] sm:$0xff] }
 0x2bb   : > { %1900 = vmatmul.f32.gmra.mxu3 %v4320_v24  ;;  %v2207_v2 = vpop.f32.mrf.mxu0  ;;  %v4590_v24 = vld [vmem:[%s7177_s1 + $0x320] sm:$0xff] }
 0x2bc   : > { %v1497_v16 = vpop.f32.mrf.mxu2  ;;  %2845 = vmatpush.msra.mxu2 %v4590_v24  ;;  %3199 = vmatpush.msra.mxu3 %v4670_v61  ;;  %v941_v24 = vadd.f32 %v6113_v48, %v6029_v55 }
 0x2bd   : > { %v1645_v22 = vadd.f32 %v1497_v16, %v1291_v29 }
 0x2be   : > { %v1146_v3 = vpop.f32.mrf.mxu1  ;;  %v1853_v28 = vpop.f32.mrf.mxu3  ;;  %2254 = vmatmul.f32.gmra.mxu0 %v6422_v63 }
 0x2bf   : > { %v2001_v31 = vadd.f32 %v1853_v28, %v1645_v22  ;;  %v1292_v6 = vadd.f32 %v1146_v3, %v938_v42  ;;  %v940_v42 = vadd.f32 %v6113_v48, %v6015_v27 }
 0x2c1   : > { %v6429_v18 = vadd.f32 %v2207_v2, %v2001_v31  ;;  %1193 = vmatmul.f32.gmra.mxu1 %v6377_v50  ;;  %1547 = vmatmul.f32.gmra.mxu2 %v1372_v21  ;;  %v6447_v2 = vld [vmem:[%s5533_s8 + $0x1b9] sm:$0xff] }
 0x2c2   : > { %v1374_v21 = vld [vmem:[%s5533_s8 + $0x19a] sm:$0xff] }
 0x2c3   : > { %1903 = vmatmul.f32.gmra.mxu3 %v4321_v46  ;;  %v2210_v38 = vpop.f32.mrf.mxu0  ;;  %v4323_v46 = vld [vmem:[%s5533_s8 + $0x1c0] sm:$0xff] }
 0x2c4   : > { %v1500_v53 = vpop.f32.mrf.mxu2 }
 0x2c5   : > { %v1646_v36 = vadd.f32 %v1500_v53, %v1292_v6 }
 0x2c6   : > { %v1149_v39 = vpop.f32.mrf.mxu1  ;;  %v1856_v19 = vpop.f32.mrf.mxu3  ;;  %2257 = vmatmul.f32.gmra.mxu0 %v6433_v17 }
 0x2c7   : > { %v2002_v56 = vadd.f32 %v1856_v19, %v1646_v36  ;;  %v1293_v0 = vadd.f32 %v1149_v39, %v939_v51  ;;  %v6464_v36 = vld [vmem:[%s5533_s8 + $0x1c1] sm:$0xff] }
 0x2c8   : > { %v4750_v39 = vld [vmem:[%s7177_s1 + $0x420] sm:$0xff]  ;;  %v4324_v51 = vld [vmem:[%s5533_s8 + $0x1c8] sm:$0xff] }
 0x2c9   : > { %v6440_v50 = vadd.f32 %v2210_v38, %v2002_v56  ;;  %1196 = vmatmul.f32.gmra.mxu1 %v6391_v23  ;;  %1550 = vmatmul.f32.gmra.mxu2 %v1373_v11  ;;  %v4510_v23 = vld [vmem:[%s7177_s1 + $0x2a0] sm:$0xff] }
 0x2ca   : > { %2489 = vmatpush.msra.mxu1 %v4510_v23  ;;  %3553 = vmatpush.msra.mxu0 %v4750_v39 }
 0x2cb   : > { %1906 = vmatmul.f32.gmra.mxu3 %v4322_v44  ;;  %v2213_v29 = vpop.f32.mrf.mxu0  ;;  %v1375_v44 = vld [vmem:[%s5533_s8 + $0x1a2] sm:$0xff] }
 0x2cc   : > { %v1503_v16 = vpop.f32.mrf.mxu2 }
 0x2cd   : > { %v1647_v22 = vadd.f32 %v1503_v16, %v1293_v0  ;;  %v6478_v16 = vld [vmem:[%s5533_s8 + $0x1c9] sm:$0xff] }
 0x2ce   : > { %v1152_v3 = vpop.f32.mrf.mxu1  ;;  %v1859_v28 = vpop.f32.mrf.mxu3  ;;  %2260 = vmatmul.f32.gmra.mxu0 %v6447_v2 }
 0x2cf   : > { %v2003_v31 = vadd.f32 %v1859_v28, %v1647_v22  ;;  %v1294_v38 = vadd.f32 %v1152_v3, %v940_v42 }
 0x2d1   : > { %v6460_v6 = vadd.f32 %v2213_v29, %v2003_v31  ;;  %1199 = vmatmul.f32.gmra.mxu1 %v6408_v58  ;;  %1553 = vmatmul.f32.gmra.mxu2 %v1374_v21  ;;  %v1376_v21 = vld [vmem:[%s5533_s8 + $0x1aa] sm:$0xff] }
 0x2d2   : > { %v4325_v31 = vld [vmem:[%s5533_s8 + $0x1d0] sm:$0xff] }
 0x2d3   : > { %1909 = vmatmul.f32.gmra.mxu3 %v4323_v46  ;;  %v2216_v53 = vpop.f32.mrf.mxu0 }
 0x2d4   : > { %v1506_v19 = vpop.f32.mrf.mxu2 }
 0x2d5   : > { %v1648_v11 = vadd.f32 %v1506_v19, %v1294_v38 }
 0x2d6   : > { %v1155_v27 = vpop.f32.mrf.mxu1  ;;  %v1862_v56 = vpop.f32.mrf.mxu3  ;;  %2263 = vmatmul.f32.gmra.mxu0 %v6464_v36 }
 0x2d7   : > { %v2004_v58 = vadd.f32 %v1862_v56, %v1648_v11  ;;  %v1295_v29 = vadd.f32 %v1155_v27, %v941_v24  ;;  %v1377_v56 = vld [vmem:[%s5533_s8 + $0x1ba] sm:$0xff] }
 0x2d9   : > { %v6474_v0 = vadd.f32 %v2216_v53, %v2004_v58  ;;  %1202 = vmatmul.f32.gmra.mxu1 %v6422_v63  ;;  %1556 = vmatmul.f32.gmra.mxu2 %v1375_v44  ;;  %v942_v63 = vadd.f32 %v6113_v48, %v6040_v49  ;;  %v6489_v53 = vld [vmem:[%s5533_s8 + $0x1d1] sm:$0xff]  ;;  %v4326_v49 = vld [vmem:[%s5533_s8 + $0x1e0] sm:$0xff]  ;;  %v943_v58 = vadd.f32 %v6113_v48, %v6051_v7 }
 0x2da   : > { %v4669_v7 = vld [vmem:[%s7177_s1 + $0x398] sm:$0xff] }
 0x2db   : > { %1912 = vmatmul.f32.gmra.mxu3 %v4324_v51  ;;  %v2219_v61 = vpop.f32.mrf.mxu0  ;;  %v4589_v51 = vld [vmem:[%s7177_s1 + $0x318] sm:$0xff] }
 0x2dc   : > { %v1509_v22 = vpop.f32.mrf.mxu2  ;;  %2846 = vmatpush.msra.mxu2 %v4589_v51  ;;  %3200 = vmatpush.msra.mxu3 %v4669_v7 }
 0x2dd   : > { %v1649_v23 = vadd.f32 %v1509_v22, %v1295_v29 }
 0x2de   : > { %v1158_v3 = vpop.f32.mrf.mxu1  ;;  %v1865_v28 = vpop.f32.mrf.mxu3  ;;  %2266 = vmatmul.f32.gmra.mxu0 %v6478_v16 }
 0x2df   : > { %v2005_v55 = vadd.f32 %v1865_v28, %v1649_v23  ;;  %v1296_v42 = vadd.f32 %v1158_v3, %v942_v63  ;;  %v1378_v28 = vld [vmem:[%s5533_s8 + $0x1c2] sm:$0xff] }
 0x2e1   : > { %v6485_v46 = vadd.f32 %v2219_v61, %v2005_v55  ;;  %1205 = vmatmul.f32.gmra.mxu1 %v6433_v17  ;;  %1559 = vmatmul.f32.gmra.mxu2 %v1376_v21  ;;  %v6503_v61 = vld [vmem:[%s5533_s8 + $0x1e1] sm:$0xff] }
 0x2e2   : > { %v4327_v55 = vld [vmem:[%s5533_s8 + $0x1e8] sm:$0xff] }
 0x2e3   : > { %1915 = vmatmul.f32.gmra.mxu3 %v4325_v31  ;;  %v2222_v38 = vpop.f32.mrf.mxu0  ;;  %v6517_v31 = vld [vmem:[%s7178_s2] ss:$0 sm:$0xff] }
 0x2e4   : > { %v1512_v39 = vpop.f32.mrf.mxu2  ;;  %v944_v63 = vadd.f32 %v6517_v31, %v6071_v13  ;;  %v945_v51 = vadd.f32 %v6517_v31, %v6085_v35 }
 0x2e5   : > { %v1650_v19 = vadd.f32 %v1512_v39, %v1296_v42 }
 0x2e6   : > { %v1161_v11 = vpop.f32.mrf.mxu1  ;;  %v1868_v27 = vpop.f32.mrf.mxu3  ;;  %2269 = vmatmul.f32.gmra.mxu0 %v6489_v53 }
 0x2e7   : > { %v2006_v44 = vadd.f32 %v1868_v27, %v1650_v19  ;;  %v1297_v24 = vadd.f32 %v1161_v11, %v943_v58  ;;  %v6525_v19 = vld [vmem:[%s5533_s8 + $0x1e9] sm:$0xff] }
 0x2e8   : > { %v4749_v11 = vld [vmem:[%s7177_s1 + $0x418] sm:$0xff]  ;;  %v4328_v58 = vld [vmem:[%s5533_s8 + $0x1f0] sm:$0xff] }
 0x2e9   : > { %v6496_v17 = vadd.f32 %v2222_v38, %v2006_v44  ;;  %1208 = vmatmul.f32.gmra.mxu1 %v6447_v2  ;;  %1562 = vmatmul.f32.gmra.mxu2 %v1377_v56  ;;  %v4509_v2 = vld [vmem:[%s7177_s1 + $0x298] sm:$0xff] }
 0x2ea   : > { %2490 = vmatpush.msra.mxu1 %v4509_v2  ;;  %3554 = vmatpush.msra.mxu0 %v4749_v11 }
 0x2eb   : > { %1918 = vmatmul.f32.gmra.mxu3 %v4326_v49  ;;  %v2225_v29 = vpop.f32.mrf.mxu0  ;;  %v1379_v49 = vld [vmem:[%s5533_s8 + $0x1ca] sm:$0xff] }
 0x2ec   : > { %v1515_v48 = vpop.f32.mrf.mxu2 }
 0x2ed   : > { %v1651_v22 = vadd.f32 %v1515_v48, %v1297_v24  ;;  %v6539_v48 = vld [vmem:[%s5533_s8 + $0x1f1] sm:$0xff] }
 0x2ee   : > { %v1164_v23 = vpop.f32.mrf.mxu1  ;;  %v1871_v3 = vpop.f32.mrf.mxu3  ;;  %2272 = vmatmul.f32.gmra.mxu0 %v6503_v61 }
 0x2ef   : > { %v2007_v21 = vadd.f32 %v1871_v3, %v1651_v22  ;;  %v1298_v38 = vadd.f32 %v1164_v23, %v944_v63 }
 0x2f1   : > { %v6521_v42 = vadd.f32 %v2225_v29, %v2007_v21  ;;  %1211 = vmatmul.f32.gmra.mxu1 %v6464_v36  ;;  %1565 = vmatmul.f32.gmra.mxu2 %v1378_v28  ;;  %v1380_v28 = vld [vmem:[%s5533_s8 + $0x1d2] sm:$0xff] }
 0x2f2   : > { %v4329_v21 = vld [vmem:[%s5533_s8 + $0x1f8] sm:$0xff] }
 0x2f3   : > { %1921 = vmatmul.f32.gmra.mxu3 %v4327_v55  ;;  %v2228_v39 = vpop.f32.mrf.mxu0 }
 0x2f4   : > { %v1518_v27 = vpop.f32.mrf.mxu2 }
 0x2f5   : > { %v1652_v56 = vadd.f32 %v1518_v27, %v1298_v38 }
 0x2f6   : > { %v1167_v13 = vpop.f32.mrf.mxu1  ;;  %v1874_v44 = vpop.f32.mrf.mxu3  ;;  %2275 = vmatmul.f32.gmra.mxu0 %v6525_v19 }
 0x2f7   : > { %v2008_v36 = vadd.f32 %v1874_v44, %v1652_v56  ;;  %v1299_v29 = vadd.f32 %v1167_v13, %v945_v51  ;;  %v1381_v44 = vld [vmem:[%s5533_s8 + $0x1e2] sm:$0xff] }
 0x2f9   : > { %v6535_v24 = vadd.f32 %v2228_v39, %v2008_v36  ;;  %1214 = vmatmul.f32.gmra.mxu1 %v6478_v16  ;;  %1568 = vmatmul.f32.gmra.mxu2 %v1379_v49  ;;  %v946_v16 = vadd.f32 %v6517_v31, %v6096_v26  ;;  %v6550_v39 = vld [vmem:[%s5533_s8 + $0x1f9] sm:$0xff]  ;;  %v4330_v26 = vld [vmem:[%s5533_s8 + $0x208] sm:$0xff]  ;;  %v947_v36 = vadd.f32 %v6517_v31, %v5895_v32 }
 0x2fa   : > { %v4668_v32 = vld [vmem:[%s7177_s1 + $0x390] sm:$0xff] }
 0x2fb   : > { %1924 = vmatmul.f32.gmra.mxu3 %v4328_v58  ;;  %v2231_v7 = vpop.f32.mrf.mxu0  ;;  %v4588_v58 = vld [vmem:[%s7177_s1 + $0x310] sm:$0xff] }
 0x2fc   : > { %v1521_v22 = vpop.f32.mrf.mxu2  ;;  %2847 = vmatpush.msra.mxu2 %v4588_v58  ;;  %3201 = vmatpush.msra.mxu3 %v4668_v32  ;;  %v949_v58 = vadd.f32 %v6517_v31, %v5925_v54 }
 0x2fd   : > { %v1653_v2 = vadd.f32 %v1521_v22, %v1299_v29 }
 0x2fe   : > { %v1170_v23 = vpop.f32.mrf.mxu1  ;;  %v1877_v3 = vpop.f32.mrf.mxu3  ;;  %2278 = vmatmul.f32.gmra.mxu0 %v6539_v48 }
 0x2ff   : > { %v2009_v35 = vadd.f32 %v1877_v3, %v1653_v2  ;;  %v1300_v63 = vadd.f32 %v1170_v23, %v946_v16  ;;  %v948_v16 = vadd.f32 %v6517_v31, %v5913_v45 }
 0x301   : > { %v6546_v55 = vadd.f32 %v2231_v7, %v2009_v35  ;;  %1217 = vmatmul.f32.gmra.mxu1 %v6489_v53  ;;  %1571 = vmatmul.f32.gmra.mxu2 %v1380_v28  ;;  %v6564_v7 = vld [vmem:[%s5533_s8 + $0x209] sm:$0xff] }
 0x302   : > { %v1382_v28 = vld [vmem:[%s5533_s8 + $0x1ea] sm:$0xff] }
 0x303   : > { %1927 = vmatmul.f32.gmra.mxu3 %v4329_v21  ;;  %v2234_v38 = vpop.f32.mrf.mxu0  ;;  %v4331_v21 = vld [vmem:[%s5533_s8 + $0x210] sm:$0xff] }
 0x304   : > { %v1524_v11 = vpop.f32.mrf.mxu2 }
 0x305   : > { %v1654_v27 = vadd.f32 %v1524_v11, %v1300_v63 }
 0x306   : > { %v1173_v56 = vpop.f32.mrf.mxu1  ;;  %v1880_v13 = vpop.f32.mrf.mxu3  ;;  %2281 = vmatmul.f32.gmra.mxu0 %v6550_v39 }
 0x307   : > { %v2010_v49 = vadd.f32 %v1880_v13, %v1654_v27  ;;  %v1301_v51 = vadd.f32 %v1173_v56, %v947_v36  ;;  %v6581_v27 = vld [vmem:[%s5533_s8 + $0x211] sm:$0xff] }
 0x308   : > { %v4748_v56 = vld [vmem:[%s7177_s1 + $0x410] sm:$0xff]  ;;  %v4332_v36 = vld [vmem:[%s5533_s8 + $0x218] sm:$0xff] }
 0x309   : > { %v6557_v53 = vadd.f32 %v2234_v38, %v2010_v49  ;;  %1220 = vmatmul.f32.gmra.mxu1 %v6503_v61  ;;  %1574 = vmatmul.f32.gmra.mxu2 %v1381_v44  ;;  %v4508_v61 = vld [vmem:[%s7177_s1 + $0x290] sm:$0xff] }
 0x30a   : > { %2491 = vmatpush.msra.mxu1 %v4508_v61  ;;  %3555 = vmatpush.msra.mxu0 %v4748_v56 }
 0x30b   : > { %1930 = vmatmul.f32.gmra.mxu3 %v4330_v26  ;;  %v2237_v29 = vpop.f32.mrf.mxu0  ;;  %v1383_v26 = vld [vmem:[%s5533_s8 + $0x1f2] sm:$0xff] }
 0x30c   : > { %v1527_v22 = vpop.f32.mrf.mxu2 }
 0x30d   : > { %v1655_v2 = vadd.f32 %v1527_v22, %v1301_v51  ;;  %v6595_v22 = vld [vmem:[%s5533_s8 + $0x219] sm:$0xff] }
 0x30e   : > { %v1176_v23 = vpop.f32.mrf.mxu1  ;;  %v1883_v3 = vpop.f32.mrf.mxu3  ;;  %2284 = vmatmul.f32.gmra.mxu0 %v6564_v7 }
 0x30f   : > { %v2011_v35 = vadd.f32 %v1883_v3, %v1655_v2  ;;  %v1302_v38 = vadd.f32 %v1176_v23, %v948_v16 }
 0x311   : > { %v6577_v63 = vadd.f32 %v2237_v29, %v2011_v35  ;;  %1223 = vmatmul.f32.gmra.mxu1 %v6525_v19  ;;  %1577 = vmatmul.f32.gmra.mxu2 %v1382_v28  ;;  %v1384_v28 = vld [vmem:[%s5533_s8 + $0x1fa] sm:$0xff] }
 0x312   : > { %v4333_v35 = vld [vmem:[%s5533_s8 + $0x220] sm:$0xff] }
 0x313   : > { %1933 = vmatmul.f32.gmra.mxu3 %v4331_v21  ;;  %v2240_v11 = vpop.f32.mrf.mxu0 }
 0x314   : > { %v1530_v13 = vpop.f32.mrf.mxu2 }
 0x315   : > { %v1656_v44 = vadd.f32 %v1530_v13, %v1302_v38 }
 0x316   : > { %v1179_v45 = vpop.f32.mrf.mxu1  ;;  %v1886_v49 = vpop.f32.mrf.mxu3  ;;  %2287 = vmatmul.f32.gmra.mxu0 %v6581_v27 }
 0x317   : > { %v2012_v19 = vadd.f32 %v1886_v49, %v1656_v44  ;;  %v1303_v29 = vadd.f32 %v1179_v45, %v949_v58  ;;  %v1385_v49 = vld [vmem:[%s5533_s8 + $0x20a] sm:$0xff] }
 0x319   : > { %v6591_v51 = vadd.f32 %v2240_v11, %v2012_v19  ;;  %1226 = vmatmul.f32.gmra.mxu1 %v6539_v48  ;;  %1580 = vmatmul.f32.gmra.mxu2 %v1383_v26  ;;  %v950_v48 = vadd.f32 %v6517_v31, %v5937_v1  ;;  %v6606_v11 = vld [vmem:[%s5533_s8 + $0x221] sm:$0xff]  ;;  %v4334_v1 = vld [vmem:[%s5533_s8 + $0x230] sm:$0xff]  ;;  %v951_v19 = vadd.f32 %v6517_v31, %v5954_v14 }
 0x31a   : > { %v4667_v14 = vld [vmem:[%s7177_s1 + $0x388] sm:$0xff] }
 0x31b   : > { %1936 = vmatmul.f32.gmra.mxu3 %v4332_v36  ;;  %v2243_v32 = vpop.f32.mrf.mxu0  ;;  %v4587_v36 = vld [vmem:[%s7177_s1 + $0x308] sm:$0xff] }
 0x31c   : > { %v1533_v2 = vpop.f32.mrf.mxu2  ;;  %2848 = vmatpush.msra.mxu2 %v4587_v36  ;;  %3202 = vmatpush.msra.mxu3 %v4667_v14  ;;  %v7210_v36 = vld [vmem:[#allocation16_spill] sm:$0xff] }
 0x31d   : > { %v1657_v61 = vadd.f32 %v1533_v2, %v1303_v29 }
 0x31e   : > { %v1182_v23 = vpop.f32.mrf.mxu1  ;;  %v1889_v3 = vpop.f32.mrf.mxu3  ;;  %2290 = vmatmul.f32.gmra.mxu0 %v6595_v22 }
 0x31f   : > { %v2013_v54 = vadd.f32 %v1889_v3, %v1657_v61  ;;  %v1304_v16 = vadd.f32 %v1182_v23, %v950_v48  ;;  %v952_v48 = vadd.f32 %v6517_v31, %v5971_v30 }
 0x321   : > { %v6602_v21 = vadd.f32 %v2243_v32, %v2013_v54  ;;  %1229 = vmatmul.f32.gmra.mxu1 %v6550_v39  ;;  %1583 = vmatmul.f32.gmra.mxu2 %v1384_v28  ;;  %v6620_v32 = vld [vmem:[%s5533_s8 + $0x231] sm:$0xff] }
 0x322   : > { %v1386_v28 = vld [vmem:[%s5533_s8 + $0x212] sm:$0xff] }
 0x323   : > { %1939 = vmatmul.f32.gmra.mxu3 %v4333_v35  ;;  %v2246_v38 = vpop.f32.mrf.mxu0  ;;  %v4335_v35 = vld [vmem:[%s5533_s8 + $0x238] sm:$0xff] }
 0x324   : > { %v1536_v56 = vpop.f32.mrf.mxu2 }
 0x325   : > { %v1658_v13 = vadd.f32 %v1536_v56, %v1304_v16 }
 0x326   : > { %v1185_v44 = vpop.f32.mrf.mxu1  ;;  %v1892_v45 = vpop.f32.mrf.mxu3  ;;  %2293 = vmatmul.f32.gmra.mxu0 %v6606_v11 }
 0x327   : > { %v2014_v26 = vadd.f32 %v1892_v45, %v1658_v13  ;;  %v1305_v58 = vadd.f32 %v1185_v44, %v951_v19  ;;  %v6637_v13 = vld [vmem:[%s5533_s8 + $0x239] sm:$0xff] }
 0x328   : > { %v4747_v44 = vld [vmem:[%s7177_s1 + $0x408] sm:$0xff]  ;;  %v4336_v19 = vld [vmem:[%s5533_s8 + $0x240] sm:$0xff] }
 0x329   : > { %v6613_v39 = vadd.f32 %v2246_v38, %v2014_v26  ;;  %1232 = vmatmul.f32.gmra.mxu1 %v6564_v7  ;;  %1586 = vmatmul.f32.gmra.mxu2 %v1385_v49  ;;  %v4507_v7 = vld [vmem:[%s7177_s1 + $0x288] sm:$0xff] }
 0x32a   : > { %2492 = vmatpush.msra.mxu1 %v4507_v7  ;;  %3556 = vmatpush.msra.mxu0 %v4747_v44 }
 0x32b   : > { %1942 = vmatmul.f32.gmra.mxu3 %v4334_v1  ;;  %v2249_v29 = vpop.f32.mrf.mxu0  ;;  %v1387_v1 = vld [vmem:[%s5533_s8 + $0x21a] sm:$0xff] }
 0x32c   : > { %v1539_v2 = vpop.f32.mrf.mxu2 }
 0x32d   : > { %v1659_v61 = vadd.f32 %v1539_v2, %v1305_v58  ;;  %v953_v58 = vadd.f32 %v6517_v31, %v7210_v36 }
 0x32e   : > { %v1188_v23 = vpop.f32.mrf.mxu1  ;;  %v1895_v3 = vpop.f32.mrf.mxu3  ;;  %2296 = vmatmul.f32.gmra.mxu0 %v6620_v32 }
 0x32f   : > { %v2015_v54 = vadd.f32 %v1895_v3, %v1659_v61  ;;  %v1306_v38 = vadd.f32 %v1188_v23, %v952_v48  ;;  %v6651_v61 = vld [vmem:[%s5533_s8 + $0x241] sm:$0xff] }
 0x330   : > { %v4337_v48 = vld [vmem:[%s5533_s8 + $0x248] sm:$0xff] }
 0x331   : > { %v6633_v16 = vadd.f32 %v2249_v29, %v2015_v54  ;;  %1235 = vmatmul.f32.gmra.mxu1 %v6581_v27  ;;  %1589 = vmatmul.f32.gmra.mxu2 %v1386_v28  ;;  %v1388_v54 = vld [vmem:[%s5533_s8 + $0x222] sm:$0xff] }
 0x333   : > { %1945 = vmatmul.f32.gmra.mxu3 %v4335_v35  ;;  %v2252_v56 = vpop.f32.mrf.mxu0 }
 0x334   : > { %v1542_v45 = vpop.f32.mrf.mxu2 }
 0x335   : > { %v1660_v49 = vadd.f32 %v1542_v45, %v1306_v38  ;;  %v7211_v38 = vld [vmem:[#allocation18_spill] sm:$0xff] }
 0x336   : > { %v1191_v30 = vpop.f32.mrf.mxu1  ;;  %v1898_v26 = vpop.f32.mrf.mxu3  ;;  %2299 = vmatmul.f32.gmra.mxu0 %v6637_v13 }
 0x337   : > { %v2016_v27 = vadd.f32 %v1898_v26, %v1660_v49  ;;  %v1307_v14 = vadd.f32 %v1191_v30, %v953_v58  ;;  %v6662_v49 = vld [vmem:[%s5533_s8 + $0x249] sm:$0xff]  ;;  %v4338_v58 = vld [vmem:[%s5533_s8 + $0x258] sm:$0xff] }
 0x339   : > { %v6647_v29 = vadd.f32 %v2252_v56, %v2016_v27  ;;  %1238 = vmatmul.f32.gmra.mxu1 %v6595_v22  ;;  %1592 = vmatmul.f32.gmra.mxu2 %v1387_v1  ;;  %v954_v22 = vadd.f32 %v6517_v31, %v7211_v38 }
 0x33b   : > { %1948 = vmatmul.f32.gmra.mxu3 %v4336_v19  ;;  %v2255_v2 = vpop.f32.mrf.mxu0  ;;  %v1389_v19 = vld [vmem:[%s5533_s8 + $0x232] sm:$0xff] }
 0x33c   : > { %v1545_v7 = vpop.f32.mrf.mxu2 }
 0x33d   : > { %v1661_v23 = vadd.f32 %v1545_v7, %v1307_v14  ;;  %v7212_v14 = vld [vmem:[#allocation20_spill] sm:$0xff]  ;;  %v4586_v7 = vld [vmem:[%s7177_s1 + $0x300] sm:$0xff] }
 0x33e   : > { %v1194_v3 = vpop.f32.mrf.mxu1  ;;  %v1901_v28 = vpop.f32.mrf.mxu3  ;;  %2302 = vmatmul.f32.gmra.mxu0 %v6651_v61  ;;  %2849 = vmatpush.msra.mxu2 %v4586_v7 }
 0x33f   : > { %v2017_v35 = vadd.f32 %v1901_v28, %v1661_v23  ;;  %v1308_v44 = vadd.f32 %v1194_v3, %v954_v22  ;;  %v6676_v28 = vld [vmem:[%s5533_s8 + $0x259] sm:$0xff] }
 0x341   : > { %v6658_v56 = vadd.f32 %v2255_v2, %v2017_v35  ;;  %1241 = vmatmul.f32.gmra.mxu1 %v6606_v11  ;;  %1595 = vmatmul.f32.gmra.mxu2 %v1388_v54  ;;  %v955_v2 = vadd.f32 %v6517_v31, %v7212_v14  ;;  %v4666_v54 = vld [vmem:[%s7177_s1 + $0x380] sm:$0xff] }
 0x342   : > { %3203 = vmatpush.msra.mxu3 %v4666_v54  ;;  %v4746_v14 = vld [vmem:[%s7177_s1 + $0x400] sm:$0xff] }
 0x343   : > { %1951 = vmatmul.f32.gmra.mxu3 %v4337_v48  ;;  %v2258_v45 = vpop.f32.mrf.mxu0  ;;  %3557 = vmatpush.msra.mxu0 %v4746_v14  ;;  %v1392_v14 = vld [vmem:[%s5533_s8 + $0x24a] sm:$0xff] }
 0x344   : > { %v1548_v30 = vpop.f32.mrf.mxu2 }
 0x345   : > { %v1662_v26 = vadd.f32 %v1548_v30, %v1308_v44  ;;  %v1390_v44 = vld [vmem:[%s5533_s8 + $0x23a] sm:$0xff] }
 0x346   : > { %v1197_v1 = vpop.f32.mrf.mxu1  ;;  %v1904_v27 = vpop.f32.mrf.mxu3  ;;  %2305 = vmatmul.f32.gmra.mxu0 %v6662_v49  ;;  %v4339_v30 = vld [vmem:[%s5533_s8 + $0x260] sm:$0xff] }
 0x347   : > { %v2018_v36 = vadd.f32 %v1904_v27, %v1662_v26  ;;  %v1309_v23 = vadd.f32 %v1197_v1, %v955_v2  ;;  %v7213_v26 = vld [vmem:[#allocation22_spill] sm:$0xff] }
 0x348   : > { %v956_v1 = vadd.f32 %v6517_v31, %v7213_v26 }
 0x349   : > { %v6669_v11 = vadd.f32 %v2258_v45, %v2018_v36  ;;  %1244 = vmatmul.f32.gmra.mxu1 %v6620_v32  ;;  %1598 = vmatmul.f32.gmra.mxu2 %v1389_v19  ;;  %v4506_v32 = vld [vmem:[%s7177_s1 + $0x280] sm:$0xff] }
 0x34a   : > { %2493 = vmatpush.msra.mxu1 %v4506_v32 }
 0x34b   : > { %1954 = vmatmul.f32.gmra.mxu3 %v4338_v58  ;;  %v2261_v3 = vpop.f32.mrf.mxu0  ;;  %v4419_v58 = vld [vmem:[%s5533_s8 + $0x261] sm:$0xff] }
 0x34c   : > { %v1551_v35 = vpop.f32.mrf.mxu2 }
 0x34d   : > { %v1663_v48 = vadd.f32 %v1551_v35, %v1309_v23 }
 0x34e   : > { %v1200_v38 = vpop.f32.mrf.mxu1  ;;  %v1907_v22 = vpop.f32.mrf.mxu3  ;;  %2308 = vmatmul.f32.gmra.mxu0 %v6676_v28 }
 0x34f   : > { %v2019_v45 = vadd.f32 %v1907_v22, %v1663_v48  ;;  %v1310_v19 = vadd.f32 %v1200_v38, %v956_v1  ;;  %v7214_v48 = vld [vmem:[#allocation24_spill] sm:$0xff] }
 0x350   : > { %v957_v32 = vadd.f32 %v6517_v31, %v7214_v48 }
 0x351   : > { %v6689_v27 = vadd.f32 %v2261_v3, %v2019_v45  ;;  %1247 = vmatmul.f32.gmra.mxu1 %v6637_v13  ;;  %1601 = vmatmul.f32.gmra.mxu2 %v1390_v44  ;;  %v1391_v3 = vld [vmem:[%s5533_s8 + $0x242] sm:$0xff] }
 0x352   : > { %v4340_v13 = vld [vmem:[%s5533_s8 + $0x268] sm:$0xff] }
 0x353   : > { %1957 = vmatmul.f32.gmra.mxu3 %v4339_v30  ;;  %v2264_v36 = vpop.f32.mrf.mxu0  ;;  %v4420_v45 = vld [vmem:[%s5533_s8 + $0x269] sm:$0xff] }
 0x354   : > { %v1554_v2 = vpop.f32.mrf.mxu2 }
 0x355   : > { %v1664_v7 = vadd.f32 %v1554_v2, %v1310_v19 }
 0x356   : > { %v1203_v23 = vpop.f32.mrf.mxu1  ;;  %v1910_v54 = vpop.f32.mrf.mxu3  ;;  %2311 = vmatmul.f32.gmra.mxu0 %v4419_v58 }
 0x357   : > { %v2020_v35 = vadd.f32 %v1910_v54, %v1664_v7  ;;  %v1311_v22 = vadd.f32 %v1203_v23, %v957_v32  ;;  %v4341_v7 = vld [vmem:[%s5533_s8 + $0x270] sm:$0xff] }
 0x358   : > { %v7216_v54 = vld [vmem:[#allocation26_spill] sm:$0xff] }
 0x359   : > { %v6700_v38 = vadd.f32 %v2264_v36, %v2020_v35  ;;  %1250 = vmatmul.f32.gmra.mxu1 %v6651_v61  ;;  %1604 = vmatmul.f32.gmra.mxu2 %v1391_v3  ;;  %v958_v36 = vadd.f32 %v6517_v31, %v7216_v54  ;;  %v4421_v35 = vld [vmem:[%s5533_s8 + $0x271] sm:$0xff] }
 0x35a   : > { %v7218_v54 = vld [vmem:[#allocation28_spill] sm:$0xff] }
 0x35b   : > { %7215 = vst [vmem:[#allocation16_spill] sm:$0xff] %v6700_v38  ;;  %1960 = vmatmul.f32.gmra.mxu3 %v4340_v13  ;;  %v2267_v44 = vpop.f32.mrf.mxu0  ;;  %v7234_v38 = vld [vmem:[#allocation14_spill] sm:$0xff] }
 0x35c   : > { %v1557_v30 = vpop.f32.mrf.mxu2 }
 0x35d   : > { %v1665_v26 = vadd.f32 %v1557_v30, %v1311_v22  ;;  %v1393_v30 = vld [vmem:[%s5533_s8 + $0x25a] sm:$0xff] }
 0x35e   : > { %v1206_v1 = vpop.f32.mrf.mxu1  ;;  %v1913_v19 = vpop.f32.mrf.mxu3  ;;  %2314 = vmatmul.f32.gmra.mxu0 %v4420_v45 }
 0x35f   : > { %v2021_v2 = vadd.f32 %v1913_v19, %v1665_v26  ;;  %v1312_v23 = vadd.f32 %v1206_v1, %v958_v36  ;;  %v4342_v19 = vld [vmem:[%s5533_s8 + $0x280] sm:$0xff] }
 0x361   : > { %v6708_v61 = vadd.f32 %v2267_v44, %v2021_v2  ;;  %1253 = vmatmul.f32.gmra.mxu1 %v6662_v49  ;;  %1607 = vmatmul.f32.gmra.mxu2 %v1392_v14  ;;  %v959_v44 = vadd.f32 %v6517_v31, %v7218_v54  ;;  %v4422_v2 = vld [vmem:[%s5533_s8 + $0x281] sm:$0xff] }
 0x362   : > { %v7220_v54 = vld [vmem:[#allocation30_spill] sm:$0xff] }
 0x363   : > { %7217 = vst [vmem:[#allocation18_spill] sm:$0xff] %v6708_v61  ;;  %1963 = vmatmul.f32.gmra.mxu3 %v4341_v7  ;;  %v2270_v3 = vpop.f32.mrf.mxu0  ;;  %v4343_v61 = vld [vmem:[%s5533_s8 + $0x288] sm:$0xff] }
 0x364   : > { %v1560_v13 = vpop.f32.mrf.mxu2 }
 0x365   : > { %v1666_v48 = vadd.f32 %v1560_v13, %v1312_v23 }
 0x366   : > { %v1209_v32 = vpop.f32.mrf.mxu1  ;;  %v1916_v22 = vpop.f32.mrf.mxu3  ;;  %2317 = vmatmul.f32.gmra.mxu0 %v4421_v35 }
 0x367   : > { %v2022_v26 = vadd.f32 %v1916_v22, %v1666_v48  ;;  %v1313_v1 = vadd.f32 %v1209_v32, %v959_v44  ;;  %v1394_v48 = vld [vmem:[%s5533_s8 + $0x262] sm:$0xff] }
 0x369   : > { %v6716_v49 = vadd.f32 %v2270_v3, %v2022_v26  ;;  %1256 = vmatmul.f32.gmra.mxu1 %v6676_v28  ;;  %1610 = vmatmul.f32.gmra.mxu2 %v1393_v30  ;;  %v960_v3 = vadd.f32 %v6517_v31, %v7220_v54  ;;  %v4423_v26 = vld [vmem:[%s5533_s8 + $0x289] sm:$0xff] }
 0x36b   : > { %7219 = vst [vmem:[#allocation20_spill] sm:$0xff] %v6716_v49  ;;  %1966 = vmatmul.f32.gmra.mxu3 %v4342_v19  ;;  %v2273_v14 = vpop.f32.mrf.mxu0  ;;  %v7222_v49 = vld [vmem:[#allocation32_spill] sm:$0xff] }
 0x36c   : > { %v1563_v7 = vpop.f32.mrf.mxu2 }
 0x36d   : > { %v1667_v36 = vadd.f32 %v1563_v7, %v1313_v1 }
 0x36e   : > { %v1212_v23 = vpop.f32.mrf.mxu1  ;;  %v1919_v13 = vpop.f32.mrf.mxu3  ;;  %2320 = vmatmul.f32.gmra.mxu0 %v4422_v2  ;;  %v1395_v2 = vld [vmem:[%s5533_s8 + $0x26a] sm:$0xff] }
 0x36f   : > { %v2023_v22 = vadd.f32 %v1919_v13, %v1667_v36  ;;  %v1314_v32 = vadd.f32 %v1212_v23, %v960_v3  ;;  %v4344_v13 = vld [vmem:[%s5533_s8 + $0x290] sm:$0xff] }
 0x371   : > { %v6724_v28 = vadd.f32 %v2273_v14, %v2023_v22  ;;  %1259 = vmatmul.f32.gmra.mxu1 %v4419_v58  ;;  %1613 = vmatmul.f32.gmra.mxu2 %v1394_v48  ;;  %v961_v14 = vadd.f32 %v6517_v31, %v7222_v49  ;;  %v4424_v48 = vld [vmem:[%s5533_s8 + $0x291] sm:$0xff] }
 0x372   : > { %v7224_v49 = vld [vmem:[#allocation34_spill] sm:$0xff] }
 0x373   : > { %7221 = vst [vmem:[#allocation22_spill] sm:$0xff] %v6724_v28  ;;  %1969 = vmatmul.f32.gmra.mxu3 %v4343_v61  ;;  %v2276_v30 = vpop.f32.mrf.mxu0  ;;  %v7232_v28 = vld [vmem:[#allocation13_spill] sm:$0xff] }
 0x374   : > { %v1566_v19 = vpop.f32.mrf.mxu2 }
 0x375   : > { %v1668_v44 = vadd.f32 %v1566_v19, %v1314_v32 }
 0x376   : > { %v1215_v1 = vpop.f32.mrf.mxu1  ;;  %v1922_v7 = vpop.f32.mrf.mxu3  ;;  %2323 = vmatmul.f32.gmra.mxu0 %v4423_v26  ;;  %v1396_v26 = vld [vmem:[%s5533_s8 + $0x272] sm:$0xff] }
 0x377   : > { %v2024_v36 = vadd.f32 %v1922_v7, %v1668_v44  ;;  %v1315_v61 = vadd.f32 %v1215_v1, %v961_v14  ;;  %v4345_v44 = vld [vmem:[%s5533_s8 + $0x298] sm:$0xff] }
 0x379   : > { %v6731_v58 = vadd.f32 %v2276_v30, %v2024_v36  ;;  %1262 = vmatmul.f32.gmra.mxu1 %v4420_v45  ;;  %1616 = vmatmul.f32.gmra.mxu2 %v1395_v2  ;;  %v962_v30 = vadd.f32 %v6517_v31, %v7224_v49  ;;  %v4425_v2 = vld [vmem:[%s5533_s8 + $0x299] sm:$0xff] }
 0x37b   : > { %7223 = vst [vmem:[#allocation24_spill] sm:$0xff] %v6731_v58  ;;  %1972 = vmatmul.f32.gmra.mxu3 %v4344_v13  ;;  %v2279_v23 = vpop.f32.mrf.mxu0  ;;  %v4445_v58 = vld [vmem:[%s5533_s8 + $0x42] sm:$0xff] }
 0x37c   : > { %v1569_v22 = vpop.f32.mrf.mxu2 }
 0x37d   : > { %v1669_v54 = vadd.f32 %v1569_v22, %v1315_v61  ;;  %v4522_v22 = vld [vmem:[%s5533_s8 + $0x50] sm:$0xff] }
 0x37e   : > { %v1218_v3 = vpop.f32.mrf.mxu1  ;;  %v1925_v32 = vpop.f32.mrf.mxu3  ;;  %2326 = vmatmul.f32.gmra.mxu0 %v4424_v48  ;;  %v4442_v48 = vld [vmem:[%s5533_s8 + $0x2a] sm:$0xff] }
 0x37f   : > { %v2025_v19 = vadd.f32 %v1925_v32, %v1669_v54  ;;  %v1316_v1 = vadd.f32 %v1218_v3, %v962_v30  ;;  %v4602_v32 = vld [vmem:[%s5533_s8 + $0x51] sm:$0xff] }
 0x381   : > { %v6738_v45 = vadd.f32 %v2279_v23, %v2025_v19  ;;  %1265 = vmatmul.f32.gmra.mxu1 %v4421_v35  ;;  %1619 = vmatmul.f32.gmra.mxu2 %v1396_v26  ;;  %v7226_v23 = vld [vmem:[#allocation10_spill] sm:$0xff] }
 0x382   : > { %v963_v35 = vadd.f32 %v6517_v31, %v7226_v23  ;;  %v4603_v23 = vld [vmem:[%s5533_s8 + $0x59] sm:$0xff] }
 0x383   : > { %7225 = vst [vmem:[#allocation26_spill] sm:$0xff] %v6738_v45  ;;  %1975 = vmatmul.f32.gmra.mxu3 %v4345_v44  ;;  %v2282_v7 = vpop.f32.mrf.mxu0  ;;  %v4682_v44 = vld [vmem:[%s5533_s8 + $0x52] sm:$0xff]  ;;  %v4444_v45 = vld [vmem:[%s5533_s8 + $0x3a] sm:$0xff] }
 0x384   : > { %v1572_v36 = vpop.f32.mrf.mxu2 }
 0x385   : > { %v1670_v13 = vadd.f32 %v1572_v36, %v1316_v1  ;;  %v4443_v36 = vld [vmem:[%s5533_s8 + $0x32] sm:$0xff] }
 0x386   : > { %v1221_v14 = vpop.f32.mrf.mxu1  ;;  %v1928_v61 = vpop.f32.mrf.mxu3  ;;  %2329 = vmatmul.f32.gmra.mxu0 %v4425_v2 }
 0x387   : > { %v2026_v54 = vadd.f32 %v1928_v61, %v1670_v13  ;;  %v1317_v26 = vadd.f32 %v1221_v14, %v963_v35  ;;  %v4523_v13 = vld [vmem:[%s5533_s8 + $0x58] sm:$0xff] }
 0x389   : > { %v6746_v3 = vadd.f32 %v2282_v7, %v2026_v54  ;;  %2494 = vmatmul.f32.vlgmr.msra.gmra.mxu1 %v4442_v48  ;;  %2850 = vmatmul.f32.vlgmr.msra.gmra.mxu2 %v4522_v22  ;;  %v7228_v7 = vld [vmem:[#allocation11_spill] sm:$0xff] }
 0x38a   : > { %v964_v48 = vadd.f32 %v6517_v31, %v7228_v7  ;;  %v4604_v7 = vld [vmem:[%s5533_s8 + $0x61] sm:$0xff] }
 0x38b   : > { %7227 = vst [vmem:[#allocation28_spill] sm:$0xff] %v6746_v3  ;;  %3204 = vmatmul.f32.vlgmr.msra.gmra.mxu3 %v4602_v32  ;;  %v2285_v19 = vpop.f32.mrf.mxu0  ;;  %v4683_v32 = vld [vmem:[%s5533_s8 + $0x5a] sm:$0xff] }
 0x38c   : > { %v1575_v49 = vpop.f32.mrf.mxu2 }
 0x38d   : > { %v1671_v30 = vadd.f32 %v1575_v49, %v1317_v26 }
 0x38e   : > { %v1224_v1 = vpop.f32.mrf.mxu1  ;;  %v1931_v2 = vpop.f32.mrf.mxu3  ;;  %3558 = vmatmul.f32.vlgmr.msra.gmra.mxu0 %v4682_v44 }
 0x38f   : > { %v2027_v61 = vadd.f32 %v1931_v2, %v1671_v30  ;;  %v1318_v22 = vadd.f32 %v1224_v1, %v964_v48  ;;  %v4524_v30 = vld [vmem:[%s5533_s8 + $0x60] sm:$0xff] }
 0x391   : > { %v6754_v14 = vadd.f32 %v2285_v19, %v2027_v61  ;;  %2497 = vmatmul.f32.gmra.mxu1 %v4443_v36  ;;  %2853 = vmatmul.f32.gmra.mxu2 %v4523_v13  ;;  %v7230_v19 = vld [vmem:[#allocation12_spill] sm:$0xff] }
 0x392   : > { %v965_v36 = vadd.f32 %v6517_v31, %v7230_v19  ;;  %v4605_v19 = vld [vmem:[%s5533_s8 + $0x69] sm:$0xff] }
 0x393   : > { %7229 = vst [vmem:[#allocation30_spill] sm:$0xff] %v6754_v14  ;;  %3207 = vmatmul.f32.gmra.mxu3 %v4603_v23  ;;  %v2288_v54 = vpop.f32.mrf.mxu0  ;;  %v4684_v23 = vld [vmem:[%s5533_s8 + $0x62] sm:$0xff] }
 0x394   : > { %v1578_v35 = vpop.f32.mrf.mxu2 }
 0x395   : > { %v1672_v26 = vadd.f32 %v1578_v35, %v1318_v22 }
 0x396   : > { %v1227_v49 = vpop.f32.mrf.mxu1  ;;  %v1934_v3 = vpop.f32.mrf.mxu3  ;;  %3561 = vmatmul.f32.gmra.mxu0 %v4683_v32 }
 0x397   : > { %v2028_v2 = vadd.f32 %v1934_v3, %v1672_v26  ;;  %v1319_v13 = vadd.f32 %v1227_v49, %v965_v36  ;;  %v4525_v3 = vld [vmem:[%s5533_s8 + $0x68] sm:$0xff] }
 0x399   : > { %v6762_v1 = vadd.f32 %v2288_v54, %v2028_v2  ;;  %2500 = vmatmul.f32.gmra.mxu1 %v4444_v45  ;;  %2856 = vmatmul.f32.gmra.mxu2 %v4524_v30  ;;  %v966_v45 = vadd.f32 %v6517_v31, %v7232_v28  ;;  %v4685_v2 = vld [vmem:[%s5533_s8 + $0x6a] sm:$0xff]  ;;  %v967_v28 = vadd.f32 %v6517_v31, %v7234_v38 }
 0x39b   : > { %7231 = vst [vmem:[#allocation32_spill] sm:$0xff] %v6762_v1  ;;  %3210 = vmatmul.f32.gmra.mxu3 %v4604_v7  ;;  %v2291_v61 = vpop.f32.mrf.mxu0  ;;  %v4526_v1 = vld [vmem:[%s5533_s8 + $0x78] sm:$0xff] }
 0x39c   : > { %v1581_v48 = vpop.f32.mrf.mxu2 }
 0x39d   : > { %v1673_v22 = vadd.f32 %v1581_v48, %v1319_v13 }
 0x39e   : > { %v1230_v35 = vpop.f32.mrf.mxu1  ;;  %v1937_v14 = vpop.f32.mrf.mxu3  ;;  %3564 = vmatmul.f32.gmra.mxu0 %v4684_v23 }
 0x39f   : > { %v2029_v26 = vadd.f32 %v1937_v14, %v1673_v22  ;;  %v1320_v49 = vadd.f32 %v1230_v35, %v966_v45  ;;  %v4606_v22 = vld [vmem:[%s5533_s8 + $0x79] sm:$0xff] }
 0x3a1   : > { %v6770_v54 = vadd.f32 %v2291_v61, %v2029_v26  ;;  %2503 = vmatmul.f32.gmra.mxu1 %v4445_v58  ;;  %2859 = vmatmul.f32.gmra.mxu2 %v4525_v3  ;;  %v4686_v3 = vld [vmem:[%s5533_s8 + $0x7a] sm:$0xff] }
 0x3a3   : > { %7233 = vst [vmem:[#allocation34_spill] sm:$0xff] %v6770_v54  ;;  %3213 = vmatmul.f32.gmra.mxu3 %v4605_v19  ;;  %v2294_v30 = vpop.f32.mrf.mxu0  ;;  %v7236_v54 = vld [vmem:[#allocation15_spill] sm:$0xff] }
 0x3a4   : > { %v1584_v7 = vpop.f32.mrf.mxu2  ;;  %v968_v38 = vadd.f32 %v6517_v31, %v7236_v54 }
 0x3a5   : > { %v1674_v36 = vadd.f32 %v1584_v7, %v1320_v49  ;;  %v4527_v7 = vld [vmem:[%s5533_s8 + $0x80] sm:$0xff] }
 0x3a6   : > { %v1233_v13 = vpop.f32.mrf.mxu1  ;;  %v1940_v48 = vpop.f32.mrf.mxu3  ;;  %3567 = vmatmul.f32.gmra.mxu0 %v4685_v2 }
 0x3a7   : > { %v2030_v14 = vadd.f32 %v1940_v48, %v1674_v36  ;;  %v1321_v61 = vadd.f32 %v1233_v13, %v967_v28  ;;  %v4607_v48 = vld [vmem:[%s5533_s8 + $0x81] sm:$0xff] }
 0x3a8   : > { %v4687_v13 = vld [vmem:[%s5533_s8 + $0x82] sm:$0xff] }
 0x3a9   : > { %v6777_v58 = vadd.f32 %v2294_v30, %v2030_v14  ;;  %2506 = vmatmul.f32.gmra.mxu1 %v4682_v44  ;;  %2862 = vmatmul.f32.gmra.mxu2 %v4526_v1 }
 0x3ab   : > { %7235 = vst [vmem:[#allocation10_spill] sm:$0xff] %v6777_v58  ;;  %3216 = vmatmul.f32.gmra.mxu3 %v4606_v22  ;;  %v2297_v35 = vpop.f32.mrf.mxu0  ;;  %v7238_v58 = vld [vmem:[#allocation17_spill] sm:$0xff] }
 0x3ac   : > { %v1587_v26 = vpop.f32.mrf.mxu2  ;;  %v969_v54 = vadd.f32 %v6517_v31, %v7238_v58 }
 0x3ad   : > { %v1675_v19 = vadd.f32 %v1587_v26, %v1321_v61  ;;  %v4528_v26 = vld [vmem:[%s5533_s8 + $0x88] sm:$0xff] }
 0x3ae   : > { %v1236_v45 = vpop.f32.mrf.mxu1  ;;  %v1943_v49 = vpop.f32.mrf.mxu3  ;;  %3570 = vmatmul.f32.gmra.mxu0 %v4686_v3 }
 0x3af   : > { %v2031_v36 = vadd.f32 %v1943_v49, %v1675_v19  ;;  %v1322_v1 = vadd.f32 %v1236_v45, %v968_v38  ;;  %v4608_v49 = vld [vmem:[%s5533_s8 + $0x89] sm:$0xff] }
 0x3b1   : > { %v6784_v44 = vadd.f32 %v2297_v35, %v2031_v36  ;;  %2509 = vmatmul.f32.gmra.mxu1 %v4683_v32  ;;  %2865 = vmatmul.f32.gmra.mxu2 %v4527_v7  ;;  %v4688_v7 = vld [vmem:[%s5533_s8 + $0x8a] sm:$0xff] }
 0x3b3   : > { %7237 = vst [vmem:[#allocation11_spill] sm:$0xff] %v6784_v44  ;;  %3219 = vmatmul.f32.gmra.mxu3 %v4607_v48  ;;  %v2300_v30 = vpop.f32.mrf.mxu0  ;;  %v7240_v44 = vld [vmem:[#allocation19_spill] sm:$0xff] }
 0x3b4   : > { %v1590_v14 = vpop.f32.mrf.mxu2  ;;  %v970_v58 = vadd.f32 %v6517_v31, %v7240_v44 }
 0x3b5   : > { %v1676_v22 = vadd.f32 %v1590_v14, %v1322_v1  ;;  %v4529_v14 = vld [vmem:[%s5533_s8 + $0x90] sm:$0xff] }
 0x3b6   : > { %v1239_v28 = vpop.f32.mrf.mxu1  ;;  %v1946_v61 = vpop.f32.mrf.mxu3  ;;  %3573 = vmatmul.f32.gmra.mxu0 %v4687_v13 }
 0x3b7   : > { %v2032_v19 = vadd.f32 %v1946_v61, %v1676_v22  ;;  %v1323_v35 = vadd.f32 %v1239_v28, %v969_v54  ;;  %v4609_v61 = vld [vmem:[%s5533_s8 + $0x91] sm:$0xff] }
 0x3b9   : > { %v6791_v32 = vadd.f32 %v2300_v30, %v2032_v19  ;;  %2512 = vmatmul.f32.gmra.mxu1 %v4684_v23  ;;  %2868 = vmatmul.f32.gmra.mxu2 %v4528_v26  ;;  %v4689_v26 = vld [vmem:[%s5533_s8 + $0x92] sm:$0xff] }
 0x3bb   : > { %7239 = vst [vmem:[#allocation12_spill] sm:$0xff] %v6791_v32  ;;  %3222 = vmatmul.f32.gmra.mxu3 %v4608_v49  ;;  %v2303_v45 = vpop.f32.mrf.mxu0  ;;  %v7242_v32 = vld [vmem:[#allocation21_spill] sm:$0xff] }
 0x3bc   : > { %v1593_v36 = vpop.f32.mrf.mxu2  ;;  %v971_v44 = vadd.f32 %v6517_v31, %v7242_v32 }
 0x3bd   : > { %v1677_v48 = vadd.f32 %v1593_v36, %v1323_v35  ;;  %v4530_v36 = vld [vmem:[%s5533_s8 + $0xa0] sm:$0xff] }
 0x3be   : > { %v1242_v38 = vpop.f32.mrf.mxu1  ;;  %v1949_v1 = vpop.f32.mrf.mxu3  ;;  %3576 = vmatmul.f32.gmra.mxu0 %v4688_v7 }
 0x3bf   : > { %v2033_v22 = vadd.f32 %v1949_v1, %v1677_v48  ;;  %v1324_v30 = vadd.f32 %v1242_v38, %v970_v58  ;;  %v4610_v1 = vld [vmem:[%s5533_s8 + $0xa1] sm:$0xff] }
 0x3c1   : > { %v6798_v23 = vadd.f32 %v2303_v45, %v2033_v22  ;;  %2515 = vmatmul.f32.gmra.mxu1 %v4685_v2  ;;  %2871 = vmatmul.f32.gmra.mxu2 %v4529_v14  ;;  %v4690_v14 = vld [vmem:[%s5533_s8 + $0xa2] sm:$0xff] }
 0x3c3   : > { %7241 = vst [vmem:[#allocation13_spill] sm:$0xff] %v6798_v23  ;;  %3225 = vmatmul.f32.gmra.mxu3 %v4609_v61  ;;  %v2306_v28 = vpop.f32.mrf.mxu0  ;;  %v7244_v23 = vld [vmem:[#allocation23_spill] sm:$0xff] }
 0x3c4   : > { %v1596_v19 = vpop.f32.mrf.mxu2  ;;  %v972_v32 = vadd.f32 %v6517_v31, %v7244_v23 }
 0x3c5   : > { %v1678_v49 = vadd.f32 %v1596_v19, %v1324_v30  ;;  %v4531_v19 = vld [vmem:[%s5533_s8 + $0xa8] sm:$0xff] }
 0x3c6   : > { %v1245_v54 = vpop.f32.mrf.mxu1  ;;  %v1952_v35 = vpop.f32.mrf.mxu3  ;;  %3579 = vmatmul.f32.gmra.mxu0 %v4689_v26 }
 0x3c7   : > { %v2034_v48 = vadd.f32 %v1952_v35, %v1678_v49  ;;  %v1325_v45 = vadd.f32 %v1245_v54, %v971_v44  ;;  %v4611_v35 = vld [vmem:[%s5533_s8 + $0xa9] sm:$0xff] }
 0x3c9   : > { %v6805_v2 = vadd.f32 %v2306_v28, %v2034_v48  ;;  %2518 = vmatmul.f32.gmra.mxu1 %v4686_v3  ;;  %2874 = vmatmul.f32.gmra.mxu2 %v4530_v36  ;;  %v4691_v36 = vld [vmem:[%s5533_s8 + $0xaa] sm:$0xff] }
 0x3cb   : > { %7243 = vst [vmem:[#allocation14_spill] sm:$0xff] %v6805_v2  ;;  %3228 = vmatmul.f32.gmra.mxu3 %v4610_v1  ;;  %v2309_v38 = vpop.f32.mrf.mxu0  ;;  %v7246_v2 = vld [vmem:[#allocation25_spill] sm:$0xff] }
 0x3cc   : > { %v1599_v22 = vpop.f32.mrf.mxu2  ;;  %v973_v23 = vadd.f32 %v6517_v31, %v7246_v2 }
 0x3cd   : > { %v1679_v61 = vadd.f32 %v1599_v22, %v1325_v45  ;;  %v4532_v22 = vld [vmem:[%s5533_s8 + $0xb0] sm:$0xff] }
 0x3ce   : > { %v1248_v58 = vpop.f32.mrf.mxu1  ;;  %v1955_v30 = vpop.f32.mrf.mxu3  ;;  %3582 = vmatmul.f32.gmra.mxu0 %v4690_v14 }
 0x3cf   : > { %v2035_v49 = vadd.f32 %v1955_v30, %v1679_v61  ;;  %v1326_v28 = vadd.f32 %v1248_v58, %v972_v32  ;;  %v4612_v30 = vld [vmem:[%s5533_s8 + $0xb1] sm:$0xff] }
 0x3d1   : > { %v6812_v3 = vadd.f32 %v2309_v38, %v2035_v49  ;;  %2521 = vmatmul.f32.gmra.mxu1 %v4687_v13  ;;  %2877 = vmatmul.f32.gmra.mxu2 %v4531_v19  ;;  %v4692_v19 = vld [vmem:[%s5533_s8 + $0xb2] sm:$0xff] }
 0x3d3   : > { %7245 = vst [vmem:[#allocation15_spill] sm:$0xff] %v6812_v3  ;;  %3231 = vmatmul.f32.gmra.mxu3 %v4611_v35  ;;  %v2312_v54 = vpop.f32.mrf.mxu0  ;;  %v7248_v3 = vld [vmem:[#allocation27_spill] sm:$0xff] }
 0x3d4   : > { %v1602_v48 = vpop.f32.mrf.mxu2  ;;  %v974_v2 = vadd.f32 %v6517_v31, %v7248_v3  ;;  %v4895_v31 = vld [vmem:[%s7178_s2] ss:$0 sm:$0xff] }
 0x3d5   : > { %v1680_v1 = vadd.f32 %v1602_v48, %v1326_v28  ;;  %v4533_v48 = vld [vmem:[%s5533_s8 + $0xb8] sm:$0xff] }
 0x3d6   : > { %v1251_v44 = vpop.f32.mrf.mxu1  ;;  %v1958_v45 = vpop.f32.mrf.mxu3  ;;  %3585 = vmatmul.f32.gmra.mxu0 %v4691_v36 }
 0x3d7   : > { %v2036_v61 = vadd.f32 %v1958_v45, %v1680_v1  ;;  %v1327_v38 = vadd.f32 %v1251_v44, %v973_v23  ;;  %v4613_v45 = vld [vmem:[%s5533_s8 + $0xb9] sm:$0xff] }
 0x3d9   : > { %v6819_v13 = vadd.f32 %v2312_v54, %v2036_v61  ;;  %2524 = vmatmul.f32.gmra.mxu1 %v4688_v7  ;;  %2880 = vmatmul.f32.gmra.mxu2 %v4532_v22  ;;  %v4693_v22 = vld [vmem:[%s5533_s8 + $0xba] sm:$0xff] }
 0x3db   : > { %7247 = vst [vmem:[#allocation17_spill] sm:$0xff] %v6819_v13  ;;  %3234 = vmatmul.f32.gmra.mxu3 %v4612_v30  ;;  %v2315_v58 = vpop.f32.mrf.mxu0  ;;  %v7252_v13 = vld [vmem:[#allocation31_spill] sm:$0xff] }
 0x3dc   : > { %v1605_v49 = vpop.f32.mrf.mxu2 }
 0x3dd   : > { %v1681_v35 = vadd.f32 %v1605_v49, %v1327_v38  ;;  %v4534_v49 = vld [vmem:[%s5533_s8 + $0xc8] sm:$0xff] }
 0x3de   : > { %v1254_v32 = vpop.f32.mrf.mxu1  ;;  %v1961_v28 = vpop.f32.mrf.mxu3  ;;  %3588 = vmatmul.f32.gmra.mxu0 %v4692_v19 }
 0x3df   : > { %v2037_v1 = vadd.f32 %v1961_v28, %v1681_v35  ;;  %v1328_v54 = vadd.f32 %v1254_v32, %v974_v2  ;;  %v4614_v28 = vld [vmem:[%s5533_s8 + $0xc9] sm:$0xff] }
 0x3e1   : > { %v6826_v7 = vadd.f32 %v2315_v58, %v2037_v1  ;;  %2527 = vmatmul.f32.gmra.mxu1 %v4689_v26  ;;  %2883 = vmatmul.f32.gmra.mxu2 %v4533_v48  ;;  %v7250_v26 = vld [vmem:[#allocation29_spill] sm:$0xff] }
 0x3e2   : > { %v975_v3 = vadd.f32 %v4895_v31, %v7250_v26  ;;  %v4694_v1 = vld [vmem:[%s5533_s8 + $0xca] sm:$0xff] }
 0x3e3   : > { %7249 = vst [vmem:[#allocation19_spill] sm:$0xff] %v6826_v7  ;;  %3237 = vmatmul.f32.gmra.mxu3 %v4613_v45  ;;  %v2318_v44 = vpop.f32.mrf.mxu0  ;;  %v4615_v7 = vld [vmem:[%s5533_s8 + $0xd1] sm:$0xff] }
 0x3e4   : > { %v1608_v61 = vpop.f32.mrf.mxu2 }
 0x3e5   : > { %v1682_v30 = vadd.f32 %v1608_v61, %v1328_v54 }
 0x3e6   : > { %v1257_v23 = vpop.f32.mrf.mxu1  ;;  %v1964_v38 = vpop.f32.mrf.mxu3  ;;  %3591 = vmatmul.f32.gmra.mxu0 %v4693_v22 }
 0x3e7   : > { %v2038_v35 = vadd.f32 %v1964_v38, %v1682_v30  ;;  %v1329_v32 = vadd.f32 %v1257_v23, %v975_v3  ;;  %v4535_v30 = vld [vmem:[%s5533_s8 + $0xd0] sm:$0xff] }
 0x3e9   : > { %v6835_v58 = vadd.f32 %v2318_v44, %v2038_v35  ;;  %2530 = vmatmul.f32.gmra.mxu1 %v4690_v14  ;;  %2886 = vmatmul.f32.gmra.mxu2 %v4534_v49  ;;  %v976_v44 = vadd.f32 %v4895_v31, %v7252_v13  ;;  %v4695_v49 = vld [vmem:[%s5533_s8 + $0xd2] sm:$0xff] }
 0x3eb   : > { %7251 = vst [vmem:[#allocation21_spill] sm:$0xff] %v6835_v58  ;;  %3240 = vmatmul.f32.gmra.mxu3 %v4614_v28  ;;  %v2321_v48 = vpop.f32.mrf.mxu0  ;;  %v7254_v58 = vld [vmem:[#allocation33_spill] sm:$0xff] }
 0x3ec   : > { %v1611_v45 = vpop.f32.mrf.mxu2  ;;  %v977_v13 = vadd.f32 %v4895_v31, %v7254_v58 }
 0x3ed   : > { %v1683_v2 = vadd.f32 %v1611_v45, %v1329_v32  ;;  %v4536_v45 = vld [vmem:[%s5533_s8 + $0xd8] sm:$0xff] }
 0x3ee   : > { %v1260_v54 = vpop.f32.mrf.mxu1  ;;  %v1967_v61 = vpop.f32.mrf.mxu3  ;;  %3594 = vmatmul.f32.gmra.mxu0 %v4694_v1 }
 0x3ef   : > { %v2039_v38 = vadd.f32 %v1967_v61, %v1683_v2  ;;  %v1330_v14 = vadd.f32 %v1260_v54, %v976_v44  ;;  %v4616_v61 = vld [vmem:[%s5533_s8 + $0xd9] sm:$0xff] }
 0x3f0   : > { %v4696_v54 = vld [vmem:[%s5533_s8 + $0xda] sm:$0xff] }
 0x3f1   : > { %v6841_v35 = vadd.f32 %v2321_v48, %v2039_v38  ;;  %2533 = vmatmul.f32.gmra.mxu1 %v4691_v36  ;;  %2889 = vmatmul.f32.gmra.mxu2 %v4535_v30 }
 0x3f3   : > { %7253 = vst [vmem:[#allocation23_spill] sm:$0xff] %v6841_v35  ;;  %3243 = vmatmul.f32.gmra.mxu3 %v4615_v7  ;;  %v2324_v23 = vpop.f32.mrf.mxu0  ;;  %v7255_v35 = vld [vmem:[#allocation35_spill] sm:$0xff] }
 0x3f4   : > { %v1614_v28 = vpop.f32.mrf.mxu2  ;;  %v978_v58 = vadd.f32 %v4895_v31, %v7255_v35 }
 0x3f5   : > { %v1684_v26 = vadd.f32 %v1614_v28, %v1330_v14  ;;  %v4537_v28 = vld [vmem:[%s5533_s8 + $0xe0] sm:$0xff] }
 0x3f6   : > { %v1263_v3 = vpop.f32.mrf.mxu1  ;;  %v1970_v32 = vpop.f32.mrf.mxu3  ;;  %3597 = vmatmul.f32.gmra.mxu0 %v4695_v49 }
 0x3f7   : > { %v2040_v2 = vadd.f32 %v1970_v32, %v1684_v26  ;;  %v1331_v36 = vadd.f32 %v1263_v3, %v977_v13  ;;  %v4617_v32 = vld [vmem:[%s5533_s8 + $0xe1] sm:$0xff] }
 0x3f9   : > { %v6847_v48 = vadd.f32 %v2324_v23, %v2040_v2  ;;  %2536 = vmatmul.f32.gmra.mxu1 %v4692_v19  ;;  %2892 = vmatmul.f32.gmra.mxu2 %v4536_v45  ;;  %v4697_v45 = vld [vmem:[%s5533_s8 + $0xe2] sm:$0xff] }
 0x3fb   : > { %3246 = vmatmul.f32.gmra.mxu3 %v4616_v61  ;;  %v2327_v7 = vpop.f32.mrf.mxu0 }
 0x3fc   : > { %v1617_v30 = vpop.f32.mrf.mxu2 }
 0x3fd   : > { %v1685_v38 = vadd.f32 %v1617_v30, %v1331_v36  ;;  %v4538_v30 = vld [vmem:[%s5533_s8 + $0xf0] sm:$0xff] }
 0x3fe   : > { %v1266_v44 = vpop.f32.mrf.mxu1  ;;  %v1973_v14 = vpop.f32.mrf.mxu3  ;;  %3600 = vmatmul.f32.gmra.mxu0 %v4696_v54 }
 0x3ff   : > { %v2041_v26 = vadd.f32 %v1973_v14, %v1685_v38  ;;  %v1332_v19 = vadd.f32 %v1266_v44, %v978_v58  ;;  %v4618_v14 = vld [vmem:[%s5533_s8 + $0xf1] sm:$0xff] }
 0x400   : > { %v4698_v44 = vld [vmem:[%s5533_s8 + $0xf2] sm:$0xff] }
 0x401   : > { %v6853_v23 = vadd.f32 %v2327_v7, %v2041_v26  ;;  %2539 = vmatmul.f32.gmra.mxu1 %v4693_v22  ;;  %2895 = vmatmul.f32.gmra.mxu2 %v4537_v28  ;;  %v7256_v22 = vld [vmem:[#allocation36_spill] sm:$0xff] }
 0x403   : > { %3249 = vmatmul.f32.gmra.mxu3 %v4617_v32  ;;  %v2330_v3 = vpop.f32.mrf.mxu0 }
 0x404   : > { %v1620_v2 = vpop.f32.mrf.mxu2 }
 0x405   : > { %v1686_v61 = vadd.f32 %v1620_v2, %v1332_v19  ;;  %v4539_v19 = vld [vmem:[%s5533_s8 + $0xf8] sm:$0xff] }
 0x406   : > { %v1976_v13 = vpop.f32.mrf.mxu3  ;;  %v2495_v36 = vpop.f32.mrf.mxu1  ;;  %3603 = vmatmul.f32.gmra.mxu0 %v4697_v45 }
 0x407   : > { %v2042_v38 = vadd.f32 %v1976_v13, %v1686_v61  ;;  %v2687_v35 = vadd.f32 %v2495_v36, %v7256_v22  ;;  %v4619_v61 = vld [vmem:[%s5533_s8 + $0xf9] sm:$0xff] }
 0x409   : > { %v6858_v31 = vadd.f32 %v2330_v3, %v2042_v38  ;;  %2542 = vmatmul.f32.gmra.mxu1 %v4694_v1  ;;  %2898 = vmatmul.f32.gmra.mxu2 %v4538_v30  ;;  %v4699_v30 = vld [vmem:[%s5533_s8 + $0xfa] sm:$0xff] }
 0x40b   : > { %3252 = vmatmul.f32.gmra.mxu3 %v4618_v14  ;;  %v3559_v7 = vpop.f32.mrf.mxu0 }
 0x40c   : > { %v2851_v28 = vpop.f32.mrf.mxu2 }
 0x40d   : > { %v3043_v26 = vadd.f32 %v2851_v28, %v2687_v35  ;;  %v4540_v28 = vld [vmem:[%s5533_s8 + $0x100] sm:$0xff] }
 0x40e   : > { %v2498_v32 = vpop.f32.mrf.mxu1  ;;  %v3205_v58 = vpop.f32.mrf.mxu3  ;;  %3606 = vmatmul.f32.gmra.mxu0 %v4698_v44 }
 0x40f   : > { %v3397_v2 = vadd.f32 %v3205_v58, %v3043_v26  ;;  %v2688_v1 = vadd.f32 %v2498_v32, %v6144_v4  ;;  %v4620_v26 = vld [vmem:[%s5533_s8 + $0x101] sm:$0xff] }
 0x411   : > { %v3751_v3 = vadd.f32 %v3559_v7, %v3397_v2  ;;  %2545 = vmatmul.f32.gmra.mxu1 %v4695_v49  ;;  %2901 = vmatmul.f32.gmra.mxu2 %v4539_v19  ;;  %v4700_v19 = vld [vmem:[%s5533_s8 + $0x102] sm:$0xff] }
 0x413   : > { %v3815_v13 = vmax.f32 %v3751_v3, 0.0  ;;  %3255 = vmatmul.f32.gmra.mxu3 %v4619_v61  ;;  %v3562_v36 = vpop.f32.mrf.mxu0 }
 0x414   : > { %v2854_v38 = vpop.f32.mrf.mxu2 }
 0x415   : > { %3879 = vst [vmem:[%s5095_s11] sm:$0xff] %v3815_v13  ;;  %v3044_v14 = vadd.f32 %v2854_v38, %v2688_v1  ;;  %v4541_v13 = vld [vmem:[%s5533_s8 + $0x108] sm:$0xff] }
 0x416   : > { %v2501_v22 = vpop.f32.mrf.mxu1  ;;  %v3208_v35 = vpop.f32.mrf.mxu3  ;;  %3609 = vmatmul.f32.gmra.mxu0 %v4699_v30  ;;  %v4621_v38 = vld [vmem:[%s5533_s8 + $0x109] sm:$0xff] }
 0x417   : > { %v3398_v7 = vadd.f32 %v3208_v35, %v3044_v14  ;;  %v2689_v4 = vadd.f32 %v2501_v22, %v6154_v25  ;;  %v4701_v35 = vld [vmem:[%s5533_s8 + $0x10a] sm:$0xff] }
 0x419   : > { %v3752_v49 = vadd.f32 %v3562_v36, %v3398_v7  ;;  %2548 = vmatmul.f32.gmra.mxu1 %v4696_v54  ;;  %2904 = vmatmul.f32.gmra.mxu2 %v4540_v28 }
 0x41b   : > { %v3816_v32 = vmax.f32 %v3752_v49, 0.0  ;;  %3258 = vmatmul.f32.gmra.mxu3 %v4620_v26  ;;  %v3565_v58 = vpop.f32.mrf.mxu0 }
 0x41c   : > { %v2857_v2 = vpop.f32.mrf.mxu2 }
 0x41d   : > { %3880 = vst [vmem:[%s5095_s11 + $0x8] sm:$0xff] %v3816_v32  ;;  %v3045_v61 = vadd.f32 %v2857_v2, %v2689_v4  ;;  %v4542_v4 = vld [vmem:[%s5533_s8 + $0x118] sm:$0xff] }
 0x41e   : > { %v2504_v3 = vpop.f32.mrf.mxu1  ;;  %v3211_v1 = vpop.f32.mrf.mxu3  ;;  %3612 = vmatmul.f32.gmra.mxu0 %v4700_v19 }
 0x41f   : > { %v3399_v36 = vadd.f32 %v3211_v1, %v3045_v61  ;;  %v2690_v25 = vadd.f32 %v2504_v3, %v6164_v34  ;;  %v4702_v3 = vld [vmem:[%s5533_s8 + $0x11a] sm:$0xff] }
 0x421   : > { %v3753_v54 = vadd.f32 %v3565_v58, %v3399_v36  ;;  %2551 = vmatmul.f32.gmra.mxu1 %v4697_v45  ;;  %2907 = vmatmul.f32.gmra.mxu2 %v4541_v13  ;;  %v4622_v58 = vld [vmem:[%s5533_s8 + $0x119] sm:$0xff] }
 0x423   : > { %v3817_v14 = vmax.f32 %v3753_v54, 0.0  ;;  %3261 = vmatmul.f32.gmra.mxu3 %v4621_v38  ;;  %v3568_v22 = vpop.f32.mrf.mxu0  ;;  %v4543_v54 = vld [vmem:[%s5533_s8 + $0x120] sm:$0xff] }
 0x424   : > { %v2860_v28 = vpop.f32.mrf.mxu2 }
 0x425   : > { %3881 = vst [vmem:[%s5095_s11 + $0x10] sm:$0xff] %v3817_v14  ;;  %v3046_v7 = vadd.f32 %v2860_v28, %v2690_v25  ;;  %v4623_v14 = vld [vmem:[%s5533_s8 + $0x121] sm:$0xff] }
 0x426   : > { %v2507_v26 = vpop.f32.mrf.mxu1  ;;  %v3214_v49 = vpop.f32.mrf.mxu3  ;;  %3615 = vmatmul.f32.gmra.mxu0 %v4701_v35 }
 0x427   : > { %v3400_v32 = vadd.f32 %v3214_v49, %v3046_v7  ;;  %v2691_v34 = vadd.f32 %v2507_v26, %v6180_v20  ;;  %v4703_v7 = vld [vmem:[%s5533_s8 + $0x122] sm:$0xff] }
 0x429   : > { %v3754_v45 = vadd.f32 %v3568_v22, %v3400_v32  ;;  %2554 = vmatmul.f32.gmra.mxu1 %v4698_v44  ;;  %2910 = vmatmul.f32.gmra.mxu2 %v4542_v4 }
 0x42b   : > { %v3818_v2 = vmax.f32 %v3754_v45, 0.0  ;;  %3264 = vmatmul.f32.gmra.mxu3 %v4622_v58  ;;  %v3571_v61 = vpop.f32.mrf.mxu0  ;;  %v4544_v58 = vld [vmem:[%s5533_s8 + $0x128] sm:$0xff] }
 0x42c   : > { %v2863_v1 = vpop.f32.mrf.mxu2 }
 0x42d   : > { %3882 = vst [vmem:[%s5095_s11 + $0x18] sm:$0xff] %v3818_v2  ;;  %v3047_v13 = vadd.f32 %v2863_v1, %v2691_v34  ;;  %v4624_v34 = vld [vmem:[%s5533_s8 + $0x129] sm:$0xff] }
 0x42e   : > { %v2510_v36 = vpop.f32.mrf.mxu1  ;;  %v3217_v38 = vpop.f32.mrf.mxu3  ;;  %3618 = vmatmul.f32.gmra.mxu0 %v4702_v3  ;;  %v4704_v1 = vld [vmem:[%s5533_s8 + $0x12a] sm:$0xff] }
 0x42f   : > { %v3401_v25 = vadd.f32 %v3217_v38, %v3047_v13  ;;  %v2692_v20 = vadd.f32 %v2510_v36, %v6194_v60 }
 0x431   : > { %v3755_v44 = vadd.f32 %v3571_v61, %v3401_v25  ;;  %2557 = vmatmul.f32.gmra.mxu1 %v4699_v30  ;;  %2913 = vmatmul.f32.gmra.mxu2 %v4543_v54  ;;  %v4545_v25 = vld [vmem:[%s5533_s8 + $0x130] sm:$0xff] }
 0x433   : > { %v3819_v22 = vmax.f32 %v3755_v44, 0.0  ;;  %3267 = vmatmul.f32.gmra.mxu3 %v4623_v14  ;;  %v3574_v28 = vpop.f32.mrf.mxu0  ;;  %v4625_v44 = vld [vmem:[%s5533_s8 + $0x131] sm:$0xff] }
 0x434   : > { %v2866_v26 = vpop.f32.mrf.mxu2 }
 0x435   : > { %3883 = vst [vmem:[%s5095_s11 + $0x20] sm:$0xff] %v3819_v22  ;;  %v3048_v49 = vadd.f32 %v2866_v26, %v2692_v20 }
 0x436   : > { %v2513_v4 = vpop.f32.mrf.mxu1  ;;  %v3220_v32 = vpop.f32.mrf.mxu3  ;;  %3621 = vmatmul.f32.gmra.mxu0 %v4703_v7 }
 0x437   : > { %v3402_v45 = vadd.f32 %v3220_v32, %v3048_v49  ;;  %v2693_v60 = vadd.f32 %v2513_v4, %v6205_v59 }
 0x439   : > { %v3756_v30 = vadd.f32 %v3574_v28, %v3402_v45  ;;  %2560 = vmatmul.f32.gmra.mxu1 %v4700_v19  ;;  %2916 = vmatmul.f32.gmra.mxu2 %v4544_v58  ;;  %v4705_v28 = vld [vmem:[%s5533_s8 + $0x132] sm:$0xff]  ;;  %v4546_v58 = vld [vmem:[%s5533_s8 + $0x140] sm:$0xff] }
 0x43b   : > { %v3820_v2 = vmax.f32 %v3756_v30, 0.0  ;;  %3270 = vmatmul.f32.gmra.mxu3 %v4624_v34  ;;  %v3577_v61 = vpop.f32.mrf.mxu0  ;;  %v4626_v34 = vld [vmem:[%s5533_s8 + $0x141] sm:$0xff] }
 0x43c   : > { %v2869_v13 = vpop.f32.mrf.mxu2 }
 0x43d   : > { %3884 = vst [vmem:[%s5095_s11 + $0x28] sm:$0xff] %v3820_v2  ;;  %v3049_v36 = vadd.f32 %v2869_v13, %v2693_v60  ;;  %v4706_v2 = vld [vmem:[%s5533_s8 + $0x142] sm:$0xff] }
 0x43e   : > { %v2516_v38 = vpop.f32.mrf.mxu1  ;;  %v3223_v54 = vpop.f32.mrf.mxu3  ;;  %3624 = vmatmul.f32.gmra.mxu0 %v4704_v1 }
 0x43f   : > { %v3403_v14 = vadd.f32 %v3223_v54, %v3049_v36  ;;  %v2694_v59 = vadd.f32 %v2516_v38, %v6216_v40  ;;  %v4547_v54 = vld [vmem:[%s5533_s8 + $0x148] sm:$0xff] }
 0x441   : > { %v3757_v19 = vadd.f32 %v3577_v61, %v3403_v14  ;;  %2563 = vmatmul.f32.gmra.mxu1 %v4701_v35  ;;  %2919 = vmatmul.f32.gmra.mxu2 %v4545_v25  ;;  %v4627_v14 = vld [vmem:[%s5533_s8 + $0x149] sm:$0xff] }
 0x443   : > { %v3821_v20 = vmax.f32 %v3757_v19, 0.0  ;;  %3273 = vmatmul.f32.gmra.mxu3 %v4625_v44  ;;  %v3580_v22 = vpop.f32.mrf.mxu0 }
 0x444   : > { %v2872_v26 = vpop.f32.mrf.mxu2 }
 0x445   : > { %3885 = vst [vmem:[%s5095_s11 + $0x30] sm:$0xff] %v3821_v20  ;;  %v3050_v49 = vadd.f32 %v2872_v26, %v2694_v59  ;;  %v4707_v59 = vld [vmem:[%s5533_s8 + $0x14a] sm:$0xff] }
 0x446   : > { %v2519_v4 = vpop.f32.mrf.mxu1  ;;  %v3226_v32 = vpop.f32.mrf.mxu3  ;;  %3627 = vmatmul.f32.gmra.mxu0 %v4705_v28 }
 0x447   : > { %v3404_v45 = vadd.f32 %v3226_v32, %v3050_v49  ;;  %v2695_v40 = vadd.f32 %v2519_v4, %v6235_v41  ;;  %v4548_v4 = vld [vmem:[%s5533_s8 + $0x150] sm:$0xff] }
 0x449   : > { %v3758_v35 = vadd.f32 %v3580_v22, %v3404_v45  ;;  %2566 = vmatmul.f32.gmra.mxu1 %v4702_v3  ;;  %2922 = vmatmul.f32.gmra.mxu2 %v4546_v58  ;;  %v4628_v58 = vld [vmem:[%s5533_s8 + $0x151] sm:$0xff] }
 0x44b   : > { %v3822_v30 = vmax.f32 %v3758_v35, 0.0  ;;  %3276 = vmatmul.f32.gmra.mxu3 %v4626_v34  ;;  %v3583_v60 = vpop.f32.mrf.mxu0  ;;  %v4708_v35 = vld [vmem:[%s5533_s8 + $0x152] sm:$0xff] }
 0x44c   : > { %v2875_v61 = vpop.f32.mrf.mxu2 }
 0x44d   : > { %3886 = vst [vmem:[%s5095_s11 + $0x38] sm:$0xff] %v3822_v30  ;;  %v3051_v13 = vadd.f32 %v2875_v61, %v2695_v40 }
 0x44e   : > { %v2522_v36 = vpop.f32.mrf.mxu1  ;;  %v3229_v38 = vpop.f32.mrf.mxu3  ;;  %3630 = vmatmul.f32.gmra.mxu0 %v4706_v2 }
 0x44f   : > { %v3405_v25 = vadd.f32 %v3229_v38, %v3051_v13  ;;  %v2696_v41 = vadd.f32 %v2522_v36, %v6250_v47  ;;  %v4549_v13 = vld [vmem:[%s5533_s8 + $0x158] sm:$0xff] }
 0x450   : > { %v4629_v38 = vld [vmem:[%s5533_s8 + $0x159] sm:$0xff] }
 0x451   : > { %v3759_v3 = vadd.f32 %v3583_v60, %v3405_v25  ;;  %2569 = vmatmul.f32.gmra.mxu1 %v4703_v7  ;;  %2925 = vmatmul.f32.gmra.mxu2 %v4547_v54 }
 0x453   : > { %v3823_v44 = vmax.f32 %v3759_v3, 0.0  ;;  %3279 = vmatmul.f32.gmra.mxu3 %v4627_v14  ;;  %v3586_v19 = vpop.f32.mrf.mxu0  ;;  %v4709_v14 = vld [vmem:[%s5533_s8 + $0x15a] sm:$0xff] }
 0x454   : > { %v2878_v20 = vpop.f32.mrf.mxu2 }
 0x455   : > { %3887 = vst [vmem:[%s5095_s11 + $0x40] sm:$0xff] %v3823_v44  ;;  %v3052_v22 = vadd.f32 %v2878_v20, %v2696_v41  ;;  %v4550_v20 = vld [vmem:[%s5533_s8 + $0x168] sm:$0xff] }
 0x456   : > { %v2525_v26 = vpop.f32.mrf.mxu1  ;;  %v3232_v49 = vpop.f32.mrf.mxu3  ;;  %3633 = vmatmul.f32.gmra.mxu0 %v4707_v59 }
 0x457   : > { %v3406_v32 = vadd.f32 %v3232_v49, %v3052_v22  ;;  %v2697_v47 = vadd.f32 %v2525_v26, %v6261_v57  ;;  %v4630_v26 = vld [vmem:[%s5533_s8 + $0x169] sm:$0xff] }
 0x459   : > { %v3760_v7 = vadd.f32 %v3586_v19, %v3406_v32  ;;  %2572 = vmatmul.f32.gmra.mxu1 %v4704_v1  ;;  %2928 = vmatmul.f32.gmra.mxu2 %v4548_v4  ;;  %v4710_v32 = vld [vmem:[%s5533_s8 + $0x16a] sm:$0xff] }
 0x45b   : > { %v3824_v45 = vmax.f32 %v3760_v7, 0.0  ;;  %3282 = vmatmul.f32.gmra.mxu3 %v4628_v58  ;;  %v3589_v34 = vpop.f32.mrf.mxu0 }
 0x45c   : > { %v2881_v40 = vpop.f32.mrf.mxu2 }
 0x45d   : > { %3888 = vst [vmem:[%s5095_s11 + $0x48] sm:$0xff] %v3824_v45  ;;  %v3053_v30 = vadd.f32 %v2881_v40, %v2697_v47 }
 0x45e   : > { %v2528_v60 = vpop.f32.mrf.mxu1  ;;  %v3235_v61 = vpop.f32.mrf.mxu3  ;;  %3636 = vmatmul.f32.gmra.mxu0 %v4708_v35 }
 0x45f   : > { %v3407_v36 = vadd.f32 %v3235_v61, %v3053_v30  ;;  %v2698_v57 = vadd.f32 %v2528_v60, %v6272_v37  ;;  %v4631_v30 = vld [vmem:[%s5533_s8 + $0x171] sm:$0xff] }
 0x461   : > { %v3761_v1 = vadd.f32 %v3589_v34, %v3407_v36  ;;  %2575 = vmatmul.f32.gmra.mxu1 %v4705_v28  ;;  %2931 = vmatmul.f32.gmra.mxu2 %v4549_v13  ;;  %v4551_v34 = vld [vmem:[%s5533_s8 + $0x170] sm:$0xff] }
 0x462   : > { %v4711_v13 = vld [vmem:[%s5533_s8 + $0x172] sm:$0xff] }
 0x463   : > { %v3825_v54 = vmax.f32 %v3761_v1, 0.0  ;;  %3285 = vmatmul.f32.gmra.mxu3 %v4629_v38  ;;  %v3592_v25 = vpop.f32.mrf.mxu0 }
 0x464   : > { %v2884_v3 = vpop.f32.mrf.mxu2 }
 0x465   : > { %3889 = vst [vmem:[%s5095_s11 + $0x50] sm:$0xff] %v3825_v54  ;;  %v3054_v41 = vadd.f32 %v2884_v3, %v2698_v57  ;;  %v4552_v54 = vld [vmem:[%s5533_s8 + $0x178] sm:$0xff] }
 0x466   : > { %v2531_v44 = vpop.f32.mrf.mxu1  ;;  %v3238_v19 = vpop.f32.mrf.mxu3  ;;  %3639 = vmatmul.f32.gmra.mxu0 %v4709_v14  ;;  %v4632_v3 = vld [vmem:[%s5533_s8 + $0x179] sm:$0xff] }
 0x467   : > { %v3408_v22 = vadd.f32 %v3238_v19, %v3054_v41  ;;  %v2699_v37 = vadd.f32 %v2531_v44, %v6292_v33  ;;  %v4712_v19 = vld [vmem:[%s5533_s8 + $0x17a] sm:$0xff] }
 0x469   : > { %v3762_v28 = vadd.f32 %v3592_v25, %v3408_v22  ;;  %2578 = vmatmul.f32.gmra.mxu1 %v4706_v2  ;;  %2934 = vmatmul.f32.gmra.mxu2 %v4550_v20 }
 0x46b   : > { %v3826_v49 = vmax.f32 %v3762_v28, 0.0  ;;  %3288 = vmatmul.f32.gmra.mxu3 %v4630_v26  ;;  %v3595_v4 = vpop.f32.mrf.mxu0 }
 0x46c   : > { %v2887_v58 = vpop.f32.mrf.mxu2 }
 0x46d   : > { %3890 = vst [vmem:[%s5095_s11 + $0x58] sm:$0xff] %v3826_v49  ;;  %v3055_v7 = vadd.f32 %v2887_v58, %v2699_v37  ;;  %v4553_v37 = vld [vmem:[%s5533_s8 + $0x180] sm:$0xff] }
 0x46e   : > { %v2534_v47 = vpop.f32.mrf.mxu1  ;;  %v3241_v45 = vpop.f32.mrf.mxu3  ;;  %3642 = vmatmul.f32.gmra.mxu0 %v4710_v32 }
 0x46f   : > { %v3409_v40 = vadd.f32 %v3241_v45, %v3055_v7  ;;  %v2700_v33 = vadd.f32 %v2534_v47, %v6306_v5  ;;  %v4713_v47 = vld [vmem:[%s5533_s8 + $0x182] sm:$0xff] }
 0x471   : > { %v3763_v2 = vadd.f32 %v3595_v4, %v3409_v40  ;;  %2581 = vmatmul.f32.gmra.mxu1 %v4707_v59  ;;  %2937 = vmatmul.f32.gmra.mxu2 %v4551_v34  ;;  %v4633_v4 = vld [vmem:[%s5533_s8 + $0x181] sm:$0xff] }
 0x473   : > { %v3827_v60 = vmax.f32 %v3763_v2, 0.0  ;;  %3291 = vmatmul.f32.gmra.mxu3 %v4631_v30  ;;  %v3598_v61 = vpop.f32.mrf.mxu0  ;;  %v4554_v2 = vld [vmem:[%s5533_s8 + $0x190] sm:$0xff] }
 0x474   : > { %v2890_v36 = vpop.f32.mrf.mxu2 }
 0x475   : > { %3891 = vst [vmem:[%s5095_s11 + $0x60] sm:$0xff] %v3827_v60  ;;  %v3056_v38 = vadd.f32 %v2890_v36, %v2700_v33  ;;  %v4634_v60 = vld [vmem:[%s5533_s8 + $0x191] sm:$0xff] }
 0x476   : > { %v2537_v1 = vpop.f32.mrf.mxu1  ;;  %v3244_v57 = vpop.f32.mrf.mxu3  ;;  %3645 = vmatmul.f32.gmra.mxu0 %v4711_v13 }
 0x477   : > { %v3410_v25 = vadd.f32 %v3244_v57, %v3056_v38  ;;  %v2701_v5 = vadd.f32 %v2537_v1, %v6317_v8  ;;  %v4714_v38 = vld [vmem:[%s5533_s8 + $0x192] sm:$0xff] }
 0x479   : > { %v3764_v59 = vadd.f32 %v3598_v61, %v3410_v25  ;;  %2584 = vmatmul.f32.gmra.mxu1 %v4708_v35  ;;  %2940 = vmatmul.f32.gmra.mxu2 %v4552_v54 }
 0x47b   : > { %v3828_v41 = vmax.f32 %v3764_v59, 0.0  ;;  %3294 = vmatmul.f32.gmra.mxu3 %v4632_v3  ;;  %v3601_v44 = vpop.f32.mrf.mxu0  ;;  %v4555_v3 = vld [vmem:[%s5533_s8 + $0x198] sm:$0xff] }
 0x47c   : > { %v2893_v20 = vpop.f32.mrf.mxu2 }
 0x47d   : > { %3892 = vst [vmem:[%s5095_s11 + $0x68] sm:$0xff] %v3828_v41  ;;  %v3057_v22 = vadd.f32 %v2893_v20, %v2701_v5  ;;  %v4635_v5 = vld [vmem:[%s5533_s8 + $0x199] sm:$0xff] }
 0x47e   : > { %v2540_v26 = vpop.f32.mrf.mxu1  ;;  %v3247_v28 = vpop.f32.mrf.mxu3  ;;  %3648 = vmatmul.f32.gmra.mxu0 %v4712_v19  ;;  %v4715_v20 = vld [vmem:[%s5533_s8 + $0x19a] sm:$0xff] }
 0x47f   : > { %v3411_v49 = vadd.f32 %v3247_v28, %v3057_v22  ;;  %v2702_v8 = vadd.f32 %v2540_v26, %v6328_v43 }
 0x481   : > { %v3765_v35 = vadd.f32 %v3601_v44, %v3411_v49  ;;  %2587 = vmatmul.f32.gmra.mxu1 %v4709_v14  ;;  %2943 = vmatmul.f32.gmra.mxu2 %v4553_v37  ;;  %v4556_v49 = vld [vmem:[%s5533_s8 + $0x1a0] sm:$0xff] }
 0x483   : > { %v3829_v58 = vmax.f32 %v3765_v35, 0.0  ;;  %3297 = vmatmul.f32.gmra.mxu3 %v4633_v4  ;;  %v3604_v7 = vpop.f32.mrf.mxu0  ;;  %v4636_v35 = vld [vmem:[%s5533_s8 + $0x1a1] sm:$0xff] }
 0x484   : > { %v2896_v45 = vpop.f32.mrf.mxu2 }
 0x485   : > { %3893 = vst [vmem:[%s5095_s11 + $0x70] sm:$0xff] %v3829_v58  ;;  %v3058_v34 = vadd.f32 %v2896_v45, %v2702_v8 }
 0x486   : > { %v2543_v40 = vpop.f32.mrf.mxu1  ;;  %v3250_v30 = vpop.f32.mrf.mxu3  ;;  %3651 = vmatmul.f32.gmra.mxu0 %v4713_v47 }
 0x487   : > { %v3412_v33 = vadd.f32 %v3250_v30, %v3058_v34  ;;  %v2703_v43 = vadd.f32 %v2543_v40, %v6348_v10 }
 0x489   : > { %v3766_v14 = vadd.f32 %v3604_v7, %v3412_v33  ;;  %2590 = vmatmul.f32.gmra.mxu1 %v4710_v32  ;;  %2946 = vmatmul.f32.gmra.mxu2 %v4554_v2  ;;  %v4716_v7 = vld [vmem:[%s5533_s8 + $0x1a2] sm:$0xff] }
 0x48a   : > { %v4557_v2 = vld [vmem:[%s5533_s8 + $0x1a8] sm:$0xff] }
 0x48b   : > { %v3830_v61 = vmax.f32 %v3766_v14, 0.0  ;;  %3300 = vmatmul.f32.gmra.mxu3 %v4634_v60  ;;  %v3607_v36 = vpop.f32.mrf.mxu0  ;;  %v4637_v60 = vld [vmem:[%s5533_s8 + $0x1a9] sm:$0xff] }
 0x48c   : > { %v2899_v1 = vpop.f32.mrf.mxu2 }
 0x48d   : > { %3894 = vst [vmem:[%s5095_s11 + $0x78] sm:$0xff] %v3830_v61  ;;  %v3059_v57 = vadd.f32 %v2899_v1, %v2703_v43  ;;  %v4717_v61 = vld [vmem:[%s5533_s8 + $0x1aa] sm:$0xff] }
 0x48e   : > { %v2546_v54 = vpop.f32.mrf.mxu1  ;;  %v3253_v25 = vpop.f32.mrf.mxu3  ;;  %3654 = vmatmul.f32.gmra.mxu0 %v4714_v38 }
 0x48f   : > { %v3413_v59 = vadd.f32 %v3253_v25, %v3059_v57  ;;  %v2704_v10 = vadd.f32 %v2546_v54, %v6362_v15  ;;  %v4558_v25 = vld [vmem:[%s5533_s8 + $0x1b8] sm:$0xff] }
 0x491   : > { %v3767_v32 = vadd.f32 %v3607_v36, %v3413_v59  ;;  %2593 = vmatmul.f32.gmra.mxu1 %v4711_v13  ;;  %2949 = vmatmul.f32.gmra.mxu2 %v4555_v3  ;;  %v4638_v59 = vld [vmem:[%s5533_s8 + $0x1b9] sm:$0xff] }
 0x493   : > { %v3831_v41 = vmax.f32 %v3767_v32, 0.0  ;;  %3303 = vmatmul.f32.gmra.mxu3 %v4635_v5  ;;  %v3610_v44 = vpop.f32.mrf.mxu0 }
 0x494   : > { %v2902_v22 = vpop.f32.mrf.mxu2 }
 0x495   : > { %3895 = vst [vmem:[%s5095_s11 + $0x80] sm:$0xff] %v3831_v41  ;;  %v3060_v26 = vadd.f32 %v2902_v22, %v2704_v10  ;;  %v4718_v10 = vld [vmem:[%s5533_s8 + $0x1ba] sm:$0xff] }
 0x496   : > { %v2549_v28 = vpop.f32.mrf.mxu1  ;;  %v3256_v37 = vpop.f32.mrf.mxu3  ;;  %3657 = vmatmul.f32.gmra.mxu0 %v4715_v20 }
 0x497   : > { %v3414_v4 = vadd.f32 %v3256_v37, %v3060_v26  ;;  %v2705_v15 = vadd.f32 %v2549_v28, %v6373_v9  ;;  %v4559_v28 = vld [vmem:[%s5533_s8 + $0x1c0] sm:$0xff] }
 0x499   : > { %v3768_v13 = vadd.f32 %v3610_v44, %v3414_v4  ;;  %2596 = vmatmul.f32.gmra.mxu1 %v4712_v19  ;;  %2952 = vmatmul.f32.gmra.mxu2 %v4556_v49  ;;  %v4639_v49 = vld [vmem:[%s5533_s8 + $0x1c1] sm:$0xff] }
 0x49b   : > { %v3832_v8 = vmax.f32 %v3768_v13, 0.0  ;;  %3306 = vmatmul.f32.gmra.mxu3 %v4636_v35  ;;  %v3613_v58 = vpop.f32.mrf.mxu0  ;;  %v4719_v13 = vld [vmem:[%s5533_s8 + $0x1c2] sm:$0xff] }
 0x49c   : > { %v2905_v45 = vpop.f32.mrf.mxu2 }
 0x49d   : > { %3896 = vst [vmem:[%s5095_s11 + $0x88] sm:$0xff] %v3832_v8  ;;  %v3061_v34 = vadd.f32 %v2905_v45, %v2705_v15 }
 0x49e   : > { %v2552_v40 = vpop.f32.mrf.mxu1  ;;  %v3259_v30 = vpop.f32.mrf.mxu3  ;;  %3660 = vmatmul.f32.gmra.mxu0 %v4716_v7 }
 0x49f   : > { %v3415_v33 = vadd.f32 %v3259_v30, %v3061_v34  ;;  %v2706_v9 = vadd.f32 %v2552_v40, %v6384_v12  ;;  %v4560_v34 = vld [vmem:[%s5533_s8 + $0x1c8] sm:$0xff] }
 0x4a0   : > { %v4640_v30 = vld [vmem:[%s5533_s8 + $0x1c9] sm:$0xff] }
 0x4a1   : > { %v3769_v19 = vadd.f32 %v3613_v58, %v3415_v33  ;;  %2599 = vmatmul.f32.gmra.mxu1 %v4713_v47  ;;  %2955 = vmatmul.f32.gmra.mxu2 %v4557_v2 }
 0x4a3   : > { %v3833_v14 = vmax.f32 %v3769_v19, 0.0  ;;  %3309 = vmatmul.f32.gmra.mxu3 %v4637_v60  ;;  %v3616_v43 = vpop.f32.mrf.mxu0  ;;  %v4720_v60 = vld [vmem:[%s5533_s8 + $0x1ca] sm:$0xff] }
 0x4a4   : > { %v2908_v36 = vpop.f32.mrf.mxu2 }
 0x4a5   : > { %3897 = vst [vmem:[%s5095_s11 + $0x90] sm:$0xff] %v3833_v14  ;;  %v3062_v1 = vadd.f32 %v2908_v36, %v2706_v9  ;;  %v4561_v36 = vld [vmem:[%s5533_s8 + $0x1d0] sm:$0xff] }
 0x4a6   : > { %v2555_v57 = vpop.f32.mrf.mxu1  ;;  %v3262_v54 = vpop.f32.mrf.mxu3  ;;  %3663 = vmatmul.f32.gmra.mxu0 %v4717_v61 }
 0x4a7   : > { %v3416_v3 = vadd.f32 %v3262_v54, %v3062_v1  ;;  %v2707_v12 = vadd.f32 %v2555_v57, %v6404_v52  ;;  %v4641_v57 = vld [vmem:[%s5533_s8 + $0x1d1] sm:$0xff] }
 0x4a9   : > { %v3770_v47 = vadd.f32 %v3616_v43, %v3416_v3  ;;  %2602 = vmatmul.f32.gmra.mxu1 %v4714_v38  ;;  %2958 = vmatmul.f32.gmra.mxu2 %v4558_v25  ;;  %v4721_v3 = vld [vmem:[%s5533_s8 + $0x1d2] sm:$0xff] }
 0x4ab   : > { %v3834_v5 = vmax.f32 %v3770_v47, 0.0  ;;  %3312 = vmatmul.f32.gmra.mxu3 %v4638_v59  ;;  %v3619_v32 = vpop.f32.mrf.mxu0 }
 0x4ac   : > { %v2911_v41 = vpop.f32.mrf.mxu2 }
 0x4ad   : > { %3898 = vst [vmem:[%s5095_s11 + $0x98] sm:$0xff] %v3834_v5  ;;  %v3063_v44 = vadd.f32 %v2911_v41, %v2707_v12 }
 0x4ae   : > { %v2558_v22 = vpop.f32.mrf.mxu1  ;;  %v3265_v26 = vpop.f32.mrf.mxu3  ;;  %3666 = vmatmul.f32.gmra.mxu0 %v4718_v10 }
 0x4af   : > { %v3417_v37 = vadd.f32 %v3265_v26, %v3063_v44  ;;  %v2708_v52 = vadd.f32 %v2558_v22, %v6418_v62  ;;  %v4642_v44 = vld [vmem:[%s5533_s8 + $0x1e1] sm:$0xff] }
 0x4b1   : > { %v3771_v38 = vadd.f32 %v3619_v32, %v3417_v37  ;;  %2605 = vmatmul.f32.gmra.mxu1 %v4715_v20  ;;  %2961 = vmatmul.f32.gmra.mxu2 %v4559_v28  ;;  %v4562_v32 = vld [vmem:[%s5533_s8 + $0x1e0] sm:$0xff] }
 0x4b2   : > { %v4722_v28 = vld [vmem:[%s5533_s8 + $0x1e2] sm:$0xff] }
 0x4b3   : > { %v3835_v4 = vmax.f32 %v3771_v38, 0.0  ;;  %3315 = vmatmul.f32.gmra.mxu3 %v4639_v49  ;;  %v3622_v35 = vpop.f32.mrf.mxu0 }
 0x4b4   : > { %v2914_v15 = vpop.f32.mrf.mxu2 }
 0x4b5   : > { %3899 = vst [vmem:[%s5095_s11 + $0xa0] sm:$0xff] %v3835_v4  ;;  %v3064_v8 = vadd.f32 %v2914_v15, %v2708_v52  ;;  %v4563_v4 = vld [vmem:[%s5533_s8 + $0x1e8] sm:$0xff] }
 0x4b6   : > { %v2561_v58 = vpop.f32.mrf.mxu1  ;;  %v3268_v45 = vpop.f32.mrf.mxu3  ;;  %3669 = vmatmul.f32.gmra.mxu0 %v4719_v13  ;;  %v4643_v15 = vld [vmem:[%s5533_s8 + $0x1e9] sm:$0xff] }
 0x4b7   : > { %v3418_v40 = vadd.f32 %v3268_v45, %v3064_v8  ;;  %v2709_v62 = vadd.f32 %v2561_v58, %v6429_v18  ;;  %v4723_v45 = vld [vmem:[%s5533_s8 + $0x1ea] sm:$0xff] }
 0x4b9   : > { %v3772_v20 = vadd.f32 %v3622_v35, %v3418_v40  ;;  %2608 = vmatmul.f32.gmra.mxu1 %v4716_v7  ;;  %2964 = vmatmul.f32.gmra.mxu2 %v4560_v34 }
 0x4bb   : > { %v3836_v2 = vmax.f32 %v3772_v20, 0.0  ;;  %3318 = vmatmul.f32.gmra.mxu3 %v4640_v30  ;;  %v3625_v33 = vpop.f32.mrf.mxu0 }
 0x4bc   : > { %v2917_v19 = vpop.f32.mrf.mxu2 }
 0x4bd   : > { %3900 = vst [vmem:[%s5095_s11 + $0xa8] sm:$0xff] %v3836_v2  ;;  %v3065_v9 = vadd.f32 %v2917_v19, %v2709_v62  ;;  %v4564_v62 = vld [vmem:[%s5533_s8 + $0x1f0] sm:$0xff] }
 0x4be   : > { %v2564_v14 = vpop.f32.mrf.mxu1  ;;  %v3271_v43 = vpop.f32.mrf.mxu3  ;;  %3672 = vmatmul.f32.gmra.mxu0 %v4720_v60 }
 0x4bf   : > { %v3419_v1 = vadd.f32 %v3271_v43, %v3065_v9  ;;  %v2710_v18 = vadd.f32 %v2564_v14, %v6440_v50  ;;  %v4724_v14 = vld [vmem:[%s5533_s8 + $0x1f2] sm:$0xff] }
 0x4c1   : > { %v3773_v7 = vadd.f32 %v3625_v33, %v3419_v1  ;;  %2611 = vmatmul.f32.gmra.mxu1 %v4717_v61  ;;  %2967 = vmatmul.f32.gmra.mxu2 %v4561_v36  ;;  %v4644_v33 = vld [vmem:[%s5533_s8 + $0x1f1] sm:$0xff] }
 0x4c3   : > { %v3837_v54 = vmax.f32 %v3773_v7, 0.0  ;;  %3321 = vmatmul.f32.gmra.mxu3 %v4641_v57  ;;  %v3628_v25 = vpop.f32.mrf.mxu0  ;;  %v4565_v7 = vld [vmem:[%s5533_s8 + $0x1f8] sm:$0xff] }
 0x4c4   : > { %v2920_v59 = vpop.f32.mrf.mxu2 }
 0x4c5   : > { %3901 = vst [vmem:[%s5095_s11 + $0xb0] sm:$0xff] %v3837_v54  ;;  %v3066_v47 = vadd.f32 %v2920_v59, %v2710_v18  ;;  %v4645_v54 = vld [vmem:[%s5533_s8 + $0x1f9] sm:$0xff] }
 0x4c6   : > { %v2567_v12 = vpop.f32.mrf.mxu1  ;;  %v3274_v5 = vpop.f32.mrf.mxu3  ;;  %3675 = vmatmul.f32.gmra.mxu0 %v4721_v3 }
 0x4c7   : > { %v3420_v41 = vadd.f32 %v3274_v5, %v3066_v47  ;;  %v2711_v50 = vadd.f32 %v2567_v12, %v6460_v6  ;;  %v4725_v47 = vld [vmem:[%s5533_s8 + $0x1fa] sm:$0xff] }
 0x4c9   : > { %v3774_v61 = vadd.f32 %v3628_v25, %v3420_v41  ;;  %2614 = vmatmul.f32.gmra.mxu1 %v4718_v10  ;;  %2970 = vmatmul.f32.gmra.mxu2 %v4562_v32 }
 0x4cb   : > { %v3838_v22 = vmax.f32 %v3774_v61, 0.0  ;;  %3324 = vmatmul.f32.gmra.mxu3 %v4642_v44  ;;  %v3631_v26 = vpop.f32.mrf.mxu0  ;;  %v4566_v44 = vld [vmem:[%s5533_s8 + $0x208] sm:$0xff] }
 0x4cc   : > { %v2923_v37 = vpop.f32.mrf.mxu2 }
 0x4cd   : > { %3902 = vst [vmem:[%s5095_s11 + $0xb8] sm:$0xff] %v3838_v22  ;;  %v3067_v49 = vadd.f32 %v2923_v37, %v2711_v50  ;;  %v4646_v50 = vld [vmem:[%s5533_s8 + $0x209] sm:$0xff] }
 0x4ce   : > { %v2570_v38 = vpop.f32.mrf.mxu1  ;;  %v3277_v52 = vpop.f32.mrf.mxu3  ;;  %3678 = vmatmul.f32.gmra.mxu0 %v4722_v28  ;;  %v4726_v37 = vld [vmem:[%s5533_s8 + $0x20a] sm:$0xff] }
 0x4cf   : > { %v3421_v35 = vadd.f32 %v3277_v52, %v3067_v49  ;;  %v2712_v6 = vadd.f32 %v2570_v38, %v6474_v0 }
 0x4d1   : > { %v3775_v10 = vadd.f32 %v3631_v26, %v3421_v35  ;;  %2617 = vmatmul.f32.gmra.mxu1 %v4719_v13  ;;  %2973 = vmatmul.f32.gmra.mxu2 %v4563_v4  ;;  %v4567_v35 = vld [vmem:[%s5533_s8 + $0x210] sm:$0xff] }
 0x4d3   : > { %v3839_v8 = vmax.f32 %v3775_v10, 0.0  ;;  %3327 = vmatmul.f32.gmra.mxu3 %v4643_v15  ;;  %v3634_v58 = vpop.f32.mrf.mxu0  ;;  %v4647_v10 = vld [vmem:[%s5533_s8 + $0x211] sm:$0xff] }
 0x4d4   : > { %v2926_v34 = vpop.f32.mrf.mxu2 }
 0x4d5   : > { %3903 = vst [vmem:[%s5095_s11 + $0xc0] sm:$0xff] %v3839_v8  ;;  %v3068_v40 = vadd.f32 %v2926_v34, %v2712_v6 }
 0x4d6   : > { %v2573_v30 = vpop.f32.mrf.mxu1  ;;  %v3280_v20 = vpop.f32.mrf.mxu3  ;;  %3681 = vmatmul.f32.gmra.mxu0 %v4723_v45 }
 0x4d7   : > { %v3422_v2 = vadd.f32 %v3280_v20, %v3068_v40  ;;  %v2713_v0 = vadd.f32 %v2573_v30, %v6485_v46 }
 0x4d9   : > { %v3776_v13 = vadd.f32 %v3634_v58, %v3422_v2  ;;  %2620 = vmatmul.f32.gmra.mxu1 %v4720_v60  ;;  %2976 = vmatmul.f32.gmra.mxu2 %v4564_v62  ;;  %v4727_v58 = vld [vmem:[%s5533_s8 + $0x212] sm:$0xff] }
 0x4da   : > { %v4568_v62 = vld [vmem:[%s5533_s8 + $0x218] sm:$0xff] }
 0x4db   : > { %v3840_v19 = vmax.f32 %v3776_v13, 0.0  ;;  %3330 = vmatmul.f32.gmra.mxu3 %v4644_v33  ;;  %v3637_v9 = vpop.f32.mrf.mxu0  ;;  %v4648_v33 = vld [vmem:[%s5533_s8 + $0x219] sm:$0xff] }
 0x4dc   : > { %v2929_v43 = vpop.f32.mrf.mxu2 }
 0x4dd   : > { %3904 = vst [vmem:[%s5095_s11 + $0xc8] sm:$0xff] %v3840_v19  ;;  %v3069_v36 = vadd.f32 %v2929_v43, %v2713_v0  ;;  %v4728_v19 = vld [vmem:[%s5533_s8 + $0x21a] sm:$0xff] }
 0x4de   : > { %v2576_v1 = vpop.f32.mrf.mxu1  ;;  %v3283_v57 = vpop.f32.mrf.mxu3  ;;  %3684 = vmatmul.f32.gmra.mxu0 %v4724_v14 }
 0x4df   : > { %v3423_v18 = vadd.f32 %v3283_v57, %v3069_v36  ;;  %v2714_v46 = vadd.f32 %v2576_v1, %v6496_v17  ;;  %v4569_v57 = vld [vmem:[%s5533_s8 + $0x220] sm:$0xff] }
 0x4e1   : > { %v3777_v60 = vadd.f32 %v3637_v9, %v3423_v18  ;;  %2623 = vmatmul.f32.gmra.mxu1 %v4721_v3  ;;  %2979 = vmatmul.f32.gmra.mxu2 %v4565_v7  ;;  %v4649_v18 = vld [vmem:[%s5533_s8 + $0x221] sm:$0xff] }
 0x4e3   : > { %v3841_v25 = vmax.f32 %v3777_v60, 0.0  ;;  %3333 = vmatmul.f32.gmra.mxu3 %v4645_v54  ;;  %v3640_v59 = vpop.f32.mrf.mxu0 }
 0x4e4   : > { %v2932_v12 = vpop.f32.mrf.mxu2 }
 0x4e5   : > { %3905 = vst [vmem:[%s5095_s11 + $0xd0] sm:$0xff] %v3841_v25  ;;  %v3070_v5 = vadd.f32 %v2932_v12, %v2714_v46  ;;  %v4729_v46 = vld [vmem:[%s5533_s8 + $0x222] sm:$0xff] }
 0x4e6   : > { %v2579_v32 = vpop.f32.mrf.mxu1  ;;  %v3286_v41 = vpop.f32.mrf.mxu3  ;;  %3687 = vmatmul.f32.gmra.mxu0 %v4725_v47 }
 0x4e7   : > { %v3424_v61 = vadd.f32 %v3286_v41, %v3070_v5  ;;  %v2715_v17 = vadd.f32 %v2579_v32, %v6521_v42  ;;  %v4570_v32 = vld [vmem:[%s5533_s8 + $0x230] sm:$0xff] }
 0x4e9   : > { %v3778_v3 = vadd.f32 %v3640_v59, %v3424_v61  ;;  %2626 = vmatmul.f32.gmra.mxu1 %v4722_v28  ;;  %2982 = vmatmul.f32.gmra.mxu2 %v4566_v44  ;;  %v4650_v44 = vld [vmem:[%s5533_s8 + $0x231] sm:$0xff] }
 0x4eb   : > { %v3842_v22 = vmax.f32 %v3778_v3, 0.0  ;;  %3336 = vmatmul.f32.gmra.mxu3 %v4646_v50  ;;  %v3643_v26 = vpop.f32.mrf.mxu0  ;;  %v4730_v3 = vld [vmem:[%s5533_s8 + $0x232] sm:$0xff] }
 0x4ec   : > { %v2935_v49 = vpop.f32.mrf.mxu2 }
 0x4ed   : > { %3906 = vst [vmem:[%s5095_s11 + $0xd8] sm:$0xff] %v3842_v22  ;;  %v3071_v38 = vadd.f32 %v2935_v49, %v2715_v17 }
 0x4ee   : > { %v2582_v52 = vpop.f32.mrf.mxu1  ;;  %v3289_v4 = vpop.f32.mrf.mxu3  ;;  %3690 = vmatmul.f32.gmra.mxu0 %v4726_v37 }
 0x4ef   : > { %v3425_v15 = vadd.f32 %v3289_v4, %v3071_v38  ;;  %v2716_v42 = vadd.f32 %v2582_v52, %v6535_v24  ;;  %v4571_v38 = vld [vmem:[%s5533_s8 + $0x238] sm:$0xff] }
 0x4f0   : > { %v4651_v4 = vld [vmem:[%s5533_s8 + $0x239] sm:$0xff] }
 0x4f1   : > { %v3779_v28 = vadd.f32 %v3643_v26, %v3425_v15  ;;  %2629 = vmatmul.f32.gmra.mxu1 %v4723_v45  ;;  %2985 = vmatmul.f32.gmra.mxu2 %v4567_v35 }
 0x4f3   : > { %v3843_v6 = vmax.f32 %v3779_v28, 0.0  ;;  %3339 = vmatmul.f32.gmra.mxu3 %v4647_v10  ;;  %v3646_v8 = vpop.f32.mrf.mxu0  ;;  %v4731_v10 = vld [vmem:[%s5533_s8 + $0x23a] sm:$0xff] }
 0x4f4   : > { %v2938_v34 = vpop.f32.mrf.mxu2 }
 0x4f5   : > { %3907 = vst [vmem:[%s5095_s11 + $0xe0] sm:$0xff] %v3843_v6  ;;  %v3072_v40 = vadd.f32 %v2938_v34, %v2716_v42  ;;  %v4572_v34 = vld [vmem:[%s5533_s8 + $0x240] sm:$0xff] }
 0x4f6   : > { %v2585_v30 = vpop.f32.mrf.mxu1  ;;  %v3292_v20 = vpop.f32.mrf.mxu3  ;;  %3693 = vmatmul.f32.gmra.mxu0 %v4727_v58 }
 0x4f7   : > { %v3426_v2 = vadd.f32 %v3292_v20, %v3072_v40  ;;  %v2717_v24 = vadd.f32 %v2585_v30, %v6546_v55  ;;  %v4652_v30 = vld [vmem:[%s5533_s8 + $0x241] sm:$0xff] }
 0x4f9   : > { %v3780_v45 = vadd.f32 %v3646_v8, %v3426_v2  ;;  %2632 = vmatmul.f32.gmra.mxu1 %v4724_v14  ;;  %2988 = vmatmul.f32.gmra.mxu2 %v4568_v62  ;;  %v4732_v2 = vld [vmem:[%s5533_s8 + $0x242] sm:$0xff] }
 0x4fb   : > { %v3844_v13 = vmax.f32 %v3780_v45, 0.0  ;;  %3342 = vmatmul.f32.gmra.mxu3 %v4648_v33  ;;  %v3649_v0 = vpop.f32.mrf.mxu0 }
 0x4fc   : > { %v2941_v9 = vpop.f32.mrf.mxu2 }
 0x4fd   : > { %3908 = vst [vmem:[%s5095_s11 + $0xe8] sm:$0xff] %v3844_v13  ;;  %v3073_v43 = vadd.f32 %v2941_v9, %v2717_v24 }
 0x4fe   : > { %v2588_v36 = vpop.f32.mrf.mxu1  ;;  %v3295_v1 = vpop.f32.mrf.mxu3  ;;  %3696 = vmatmul.f32.gmra.mxu0 %v4728_v19 }
 0x4ff   : > { %v3427_v7 = vadd.f32 %v3295_v1, %v3073_v43  ;;  %v2718_v55 = vadd.f32 %v2588_v36, %v6557_v53  ;;  %v4653_v43 = vld [vmem:[%s5533_s8 + $0x249] sm:$0xff] }
 0x501   : > { %v3781_v14 = vadd.f32 %v3649_v0, %v3427_v7  ;;  %2635 = vmatmul.f32.gmra.mxu1 %v4725_v47  ;;  %2991 = vmatmul.f32.gmra.mxu2 %v4569_v57  ;;  %v4573_v0 = vld [vmem:[%s5533_s8 + $0x248] sm:$0xff] }
 0x502   : > { %v4733_v57 = vld [vmem:[%s5533_s8 + $0x24a] sm:$0xff] }
 0x503   : > { %v3845_v54 = vmax.f32 %v3781_v14, 0.0  ;;  %3345 = vmatmul.f32.gmra.mxu3 %v4649_v18  ;;  %v3652_v60 = vpop.f32.mrf.mxu0 }
 0x504   : > { %v2944_v25 = vpop.f32.mrf.mxu2 }
 0x505   : > { %3909 = vst [vmem:[%s5095_s11 + $0xf0] sm:$0xff] %v3845_v54  ;;  %v3074_v59 = vadd.f32 %v2944_v25, %v2718_v55  ;;  %v4574_v54 = vld [vmem:[%s5533_s8 + $0x258] sm:$0xff] }
 0x506   : > { %v2591_v12 = vpop.f32.mrf.mxu1  ;;  %v3298_v5 = vpop.f32.mrf.mxu3  ;;  %3699 = vmatmul.f32.gmra.mxu0 %v4729_v46  ;;  %v4654_v25 = vld [vmem:[%s5533_s8 + $0x259] sm:$0xff] }
 0x507   : > { %v3428_v41 = vadd.f32 %v3298_v5, %v3074_v59  ;;  %v2719_v53 = vadd.f32 %v2591_v12, %v6577_v63  ;;  %v4734_v5 = vld [vmem:[%s5533_s8 + $0x25a] sm:$0xff] }
 0x509   : > { %v3782_v47 = vadd.f32 %v3652_v60, %v3428_v41  ;;  %2638 = vmatmul.f32.gmra.mxu1 %v4726_v37  ;;  %2994 = vmatmul.f32.gmra.mxu2 %v4570_v32 }
 0x50b   : > { %v3846_v61 = vmax.f32 %v3782_v47, 0.0  ;;  %3348 = vmatmul.f32.gmra.mxu3 %v4650_v44  ;;  %v3655_v50 = vpop.f32.mrf.mxu0 }
 0x50c   : > { %v2947_v17 = vpop.f32.mrf.mxu2 }
 0x50d   : > { %3910 = vst [vmem:[%s5095_s11 + $0xf8] sm:$0xff] %v3846_v61  ;;  %v3075_v22 = vadd.f32 %v2947_v17, %v2719_v53  ;;  %v4575_v53 = vld [vmem:[%s5533_s8 + $0x260] sm:$0xff] }
 0x50e   : > { %v2594_v26 = vpop.f32.mrf.mxu1  ;;  %v3301_v49 = vpop.f32.mrf.mxu3  ;;  %3702 = vmatmul.f32.gmra.mxu0 %v4730_v3 }
 0x50f   : > { %v3429_v52 = vadd.f32 %v3301_v49, %v3075_v22  ;;  %v2720_v63 = vadd.f32 %v2594_v26, %v6591_v51  ;;  %v4735_v26 = vld [vmem:[%s5533_s8 + $0x262] sm:$0xff] }
 0x511   : > { %v3783_v37 = vadd.f32 %v3655_v50, %v3429_v52  ;;  %2641 = vmatmul.f32.gmra.mxu1 %v4727_v58  ;;  %2997 = vmatmul.f32.gmra.mxu2 %v4571_v38  ;;  %v4655_v50 = vld [vmem:[%s5533_s8 + $0x261] sm:$0xff] }
 0x513   : > { %v3847_v35 = vmax.f32 %v3783_v37, 0.0  ;;  %3351 = vmatmul.f32.gmra.mxu3 %v4651_v4  ;;  %v3658_v15 = vpop.f32.mrf.mxu0  ;;  %v4576_v37 = vld [vmem:[%s5533_s8 + $0x268] sm:$0xff] }
 0x514   : > { %v2950_v28 = vpop.f32.mrf.mxu2 }
 0x515   : > { %3911 = vst [vmem:[%s5095_s11 + $0x100] sm:$0xff] %v3847_v35  ;;  %v3076_v42 = vadd.f32 %v2950_v28, %v2720_v63  ;;  %v4656_v35 = vld [vmem:[%s5533_s8 + $0x269] sm:$0xff] }
 0x516   : > { %v2597_v6 = vpop.f32.mrf.mxu1  ;;  %v3304_v8 = vpop.f32.mrf.mxu3  ;;  %3705 = vmatmul.f32.gmra.mxu0 %v4731_v10 }
 0x517   : > { %v3430_v40 = vadd.f32 %v3304_v8, %v3076_v42  ;;  %v2721_v51 = vadd.f32 %v2597_v6, %v6602_v21  ;;  %v4736_v42 = vld [vmem:[%s5533_s8 + $0x26a] sm:$0xff] }
 0x519   : > { %v3784_v58 = vadd.f32 %v3658_v15, %v3430_v40  ;;  %2644 = vmatmul.f32.gmra.mxu1 %v4728_v19  ;;  %3000 = vmatmul.f32.gmra.mxu2 %v4572_v34 }
 0x51b   : > { %v3848_v20 = vmax.f32 %v3784_v58, 0.0  ;;  %3354 = vmatmul.f32.gmra.mxu3 %v4652_v30  ;;  %v3661_v62 = vpop.f32.mrf.mxu0  ;;  %v4577_v30 = vld [vmem:[%s5533_s8 + $0x270] sm:$0xff] }
 0x51c   : > { %v2953_v33 = vpop.f32.mrf.mxu2 }
 0x51d   : > { %3912 = vst [vmem:[%s5095_s11 + $0x108] sm:$0xff] %v3848_v20  ;;  %v3077_v45 = vadd.f32 %v2953_v33, %v2721_v51  ;;  %v4657_v51 = vld [vmem:[%s5533_s8 + $0x271] sm:$0xff] }
 0x51e   : > { %v2600_v24 = vpop.f32.mrf.mxu1  ;;  %v3307_v13 = vpop.f32.mrf.mxu3  ;;  %3708 = vmatmul.f32.gmra.mxu0 %v4732_v2  ;;  %v4737_v33 = vld [vmem:[%s5533_s8 + $0x272] sm:$0xff] }
 0x51f   : > { %v3431_v9 = vadd.f32 %v3307_v13, %v3077_v45  ;;  %v2722_v21 = vadd.f32 %v2600_v24, %v6613_v39 }
 0x521   : > { %v3785_v19 = vadd.f32 %v3661_v62, %v3431_v9  ;;  %2647 = vmatmul.f32.gmra.mxu1 %v4729_v46  ;;  %3003 = vmatmul.f32.gmra.mxu2 %v4573_v0  ;;  %v4578_v9 = vld [vmem:[%s5533_s8 + $0x280] sm:$0xff] }
 0x523   : > { %v3849_v36 = vmax.f32 %v3785_v19, 0.0  ;;  %3357 = vmatmul.f32.gmra.mxu3 %v4653_v43  ;;  %v3664_v1 = vpop.f32.mrf.mxu0  ;;  %v4658_v19 = vld [vmem:[%s5533_s8 + $0x281] sm:$0xff] }
 0x524   : > { %v2956_v7 = vpop.f32.mrf.mxu2 }
 0x525   : > { %3913 = vst [vmem:[%s5095_s11 + $0x110] sm:$0xff] %v3849_v36  ;;  %v3078_v18 = vadd.f32 %v2956_v7, %v2722_v21 }
 0x526   : > { %v2603_v14 = vpop.f32.mrf.mxu1  ;;  %v3310_v55 = vpop.f32.mrf.mxu3  ;;  %3711 = vmatmul.f32.gmra.mxu0 %v4733_v57 }
 0x527   : > { %v3432_v60 = vadd.f32 %v3310_v55, %v3078_v18  ;;  %v2723_v39 = vadd.f32 %v2603_v14, %v6633_v16 }
 0x529   : > { %v3786_v46 = vadd.f32 %v3664_v1, %v3432_v60  ;;  %2650 = vmatmul.f32.gmra.mxu1 %v4730_v3  ;;  %3006 = vmatmul.f32.gmra.mxu2 %v4574_v54  ;;  %v4579_v54 = vld [vmem:[%s5533_s8 + $0x288] sm:$0xff] }
 0x52b   : > { %v3850_v59 = vmax.f32 %v3786_v46, 0.0  ;;  %3360 = vmatmul.f32.gmra.mxu3 %v4654_v25  ;;  %v3667_v12 = vpop.f32.mrf.mxu0  ;;  %v4659_v25 = vld [vmem:[%s5533_s8 + $0x289] sm:$0xff] }
 0x52c   : > { %v2959_v32 = vpop.f32.mrf.mxu2 }
 0x52d   : > { %3914 = vst [vmem:[%s5095_s11 + $0x118] sm:$0xff] %v3850_v59  ;;  %v3079_v41 = vadd.f32 %v2959_v32, %v2723_v39 }
 0x52e   : > { %v2606_v44 = vpop.f32.mrf.mxu1  ;;  %v3313_v47 = vpop.f32.mrf.mxu3  ;;  %3714 = vmatmul.f32.gmra.mxu0 %v4734_v5 }
 0x52f   : > { %v3433_v61 = vadd.f32 %v3313_v47, %v3079_v41  ;;  %v2724_v16 = vadd.f32 %v2606_v44, %v6647_v29 }
 0x531   : > { %v3787_v3 = vadd.f32 %v3667_v12, %v3433_v61  ;;  %2653 = vmatmul.f32.gmra.mxu1 %v4731_v10  ;;  %3009 = vmatmul.f32.gmra.mxu2 %v4575_v53  ;;  %v4580_v53 = vld [vmem:[%s5533_s8 + $0x290] sm:$0xff] }
 0x533   : > { %v3851_v17 = vmax.f32 %v3787_v3, 0.0  ;;  %3363 = vmatmul.f32.gmra.mxu3 %v4655_v50  ;;  %v3670_v22 = vpop.f32.mrf.mxu0  ;;  %v4660_v50 = vld [vmem:[%s5533_s8 + $0x291] sm:$0xff] }
 0x534   : > { %v2962_v49 = vpop.f32.mrf.mxu2 }
 0x535   : > { %3915 = vst [vmem:[%s5095_s11 + $0x120] sm:$0xff] %v3851_v17  ;;  %v3080_v38 = vadd.f32 %v2962_v49, %v2724_v16  ;;  %v7258_v16 = vld [vmem:[#allocation18_spill] sm:$0xff] }
 0x536   : > { %v2609_v52 = vpop.f32.mrf.mxu1  ;;  %v3316_v4 = vpop.f32.mrf.mxu3  ;;  %3717 = vmatmul.f32.gmra.mxu0 %v4735_v26  ;;  %v4740_v49 = vld [vmem:[%s5533_s8 + $0x292] sm:$0xff] }
 0x537   : > { %v3434_v63 = vadd.f32 %v3316_v4, %v3080_v38  ;;  %v2725_v29 = vadd.f32 %v2609_v52, %v6658_v56 }
 0x539   : > { %v3788_v15 = vadd.f32 %v3670_v22, %v3434_v63  ;;  %2656 = vmatmul.f32.gmra.mxu1 %v4732_v2  ;;  %3012 = vmatmul.f32.gmra.mxu2 %v4576_v37  ;;  %v4581_v63 = vld [vmem:[%s5533_s8 + $0x298] sm:$0xff] }
 0x53b   : > { %v3852_v10 = vmax.f32 %v3788_v15, 0.0  ;;  %3366 = vmatmul.f32.gmra.mxu3 %v4656_v35  ;;  %v3673_v28 = vpop.f32.mrf.mxu0  ;;  %v4661_v15 = vld [vmem:[%s5533_s8 + $0x299] sm:$0xff] }
 0x53c   : > { %v2965_v6 = vpop.f32.mrf.mxu2 }
 0x53d   : > { %3916 = vst [vmem:[%s5095_s11 + $0x128] sm:$0xff] %v3852_v10  ;;  %v3081_v8 = vadd.f32 %v2965_v6, %v2725_v29  ;;  %v7259_v10 = vld [vmem:[#allocation20_spill] sm:$0xff] }
 0x53e   : > { %v2612_v34 = vpop.f32.mrf.mxu1  ;;  %v3319_v40 = vpop.f32.mrf.mxu3  ;;  %3720 = vmatmul.f32.gmra.mxu0 %v4736_v42 }
 0x53f   : > { %v3435_v58 = vadd.f32 %v3319_v40, %v3081_v8  ;;  %v2726_v56 = vadd.f32 %v2612_v34, %v6669_v11  ;;  %v4741_v8 = vld [vmem:[%s5533_s8 + $0x29a] sm:$0xff] }
 0x541   : > { %v3789_v20 = vadd.f32 %v3673_v28, %v3435_v58  ;;  %2659 = vmatmul.f32.gmra.mxu1 %v4733_v57  ;;  %3015 = vmatmul.f32.gmra.mxu2 %v4577_v30  ;;  %v4738_v57 = vld [vmem:[%s5533_s8 + $0x282] sm:$0xff] }
 0x543   : > { %v3853_v62 = vmax.f32 %v3789_v20, 0.0  ;;  %3369 = vmatmul.f32.gmra.mxu3 %v4657_v51  ;;  %v3676_v2 = vpop.f32.mrf.mxu0  ;;  %v4582_v51 = vld [vmem:[%s5533_s8 + $0x2a8] sm:$0xff] }
 0x544   : > { %v2968_v45 = vpop.f32.mrf.mxu2 }
 0x545   : > { %3917 = vst [vmem:[%s5095_s11 + $0x130] sm:$0xff] %v3853_v62  ;;  %v3082_v24 = vadd.f32 %v2968_v45, %v2726_v56  ;;  %v4662_v56 = vld [vmem:[%s5533_s8 + $0x2a9] sm:$0xff] }
 0x546   : > { %v2615_v13 = vpop.f32.mrf.mxu1  ;;  %v3322_v0 = vpop.f32.mrf.mxu3  ;;  %3723 = vmatmul.f32.gmra.mxu0 %v4737_v33 }
 0x547   : > { %v3436_v43 = vadd.f32 %v3322_v0, %v3082_v24  ;;  %v2727_v11 = vadd.f32 %v2615_v13, %v6689_v27  ;;  %v7257_v27 = vld [vmem:[#allocation16_spill] sm:$0xff] }
 0x548   : > { %v4742_v13 = vld [vmem:[%s5533_s8 + $0x2aa] sm:$0xff] }
 0x549   : > { %v3790_v21 = vadd.f32 %v3676_v2, %v3436_v43  ;;  %2662 = vmatmul.f32.gmra.mxu1 %v4734_v5  ;;  %3018 = vmatmul.f32.gmra.mxu2 %v4578_v9  ;;  %v4739_v5 = vld [vmem:[%s5533_s8 + $0x28a] sm:$0xff] }
 0x54a   : > { %v7260_v2 = vld [vmem:[#allocation22_spill] sm:$0xff] }
 0x54b   : > { %v3854_v36 = vmax.f32 %v3790_v21, 0.0  ;;  %3372 = vmatmul.f32.gmra.mxu3 %v4658_v19  ;;  %v3679_v1 = vpop.f32.mrf.mxu0  ;;  %v4583_v21 = vld [vmem:[%s5533_s8 + $0x2b0] sm:$0xff] }
 0x54c   : > { %v2971_v7 = vpop.f32.mrf.mxu2 }
 0x54d   : > { %3918 = vst [vmem:[%s5095_s11 + $0x138] sm:$0xff] %v3854_v36  ;;  %v3083_v18 = vadd.f32 %v2971_v7, %v2727_v11  ;;  %v4663_v36 = vld [vmem:[%s5533_s8 + $0x2b1] sm:$0xff] }
 0x54e   : > { %v2618_v14 = vpop.f32.mrf.mxu1  ;;  %v3325_v55 = vpop.f32.mrf.mxu3  ;;  %3726 = vmatmul.f32.gmra.mxu0 %v4738_v57 }
 0x54f   : > { %v3437_v60 = vadd.f32 %v3325_v55, %v3083_v18  ;;  %v2728_v39 = vadd.f32 %v2618_v14, %v7257_v27  ;;  %v4743_v55 = vld [vmem:[%s5533_s8 + $0x2b2] sm:$0xff] }
 0x550   : > { %v4584_v27 = vld [vmem:[%s5533_s8 + $0x2b8] sm:$0xff] }
 0x551   : > { %v3791_v46 = vadd.f32 %v3679_v1, %v3437_v60  ;;  %2665 = vmatmul.f32.gmra.mxu1 %v4735_v26  ;;  %3021 = vmatmul.f32.gmra.mxu2 %v4579_v54 }
 0x553   : > { %v3855_v59 = vmax.f32 %v3791_v46, 0.0  ;;  %3375 = vmatmul.f32.gmra.mxu3 %v4659_v25  ;;  %v3682_v12 = vpop.f32.mrf.mxu0 }
 0x554   : > { %v2974_v32 = vpop.f32.mrf.mxu2 }
 0x555   : > { %3919 = vst [vmem:[%s5095_s11 + $0x140] sm:$0xff] %v3855_v59  ;;  %v3084_v41 = vadd.f32 %v2974_v32, %v2728_v39  ;;  %v4664_v59 = vld [vmem:[%s5533_s8 + $0x2b9] sm:$0xff] }
 0x556   : > { %v2621_v44 = vpop.f32.mrf.mxu1  ;;  %v3328_v47 = vpop.f32.mrf.mxu3  ;;  %3729 = vmatmul.f32.gmra.mxu0 %v4739_v5 }
 0x557   : > { %v3438_v61 = vadd.f32 %v3328_v47, %v3084_v41  ;;  %v2729_v17 = vadd.f32 %v2621_v44, %v7258_v16  ;;  %v4744_v47 = vld [vmem:[%s5533_s8 + $0x2ba] sm:$0xff] }
 0x558   : > { %v4585_v16 = vld [vmem:[%s5533_s8 + $0x2c0] sm:$0xff] }
 0x559   : > { %v3792_v3 = vadd.f32 %v3682_v12, %v3438_v61  ;;  %2668 = vmatmul.f32.gmra.mxu1 %v4736_v42  ;;  %3024 = vmatmul.f32.gmra.mxu2 %v4580_v53 }
 0x55b   : > { %v3856_v22 = vmax.f32 %v3792_v3, 0.0  ;;  %3378 = vmatmul.f32.gmra.mxu3 %v4660_v50  ;;  %v3685_v26 = vpop.f32.mrf.mxu0 }
 0x55c   : > { %v2977_v38 = vpop.f32.mrf.mxu2 }
 0x55d   : > { %3920 = vst [vmem:[%s5095_s11 + $0x148] sm:$0xff] %v3856_v22  ;;  %v3085_v52 = vadd.f32 %v2977_v38, %v2729_v17  ;;  %v4665_v22 = vld [vmem:[%s5533_s8 + $0x2c1] sm:$0xff] }
 0x55e   : > { %v2624_v4 = vpop.f32.mrf.mxu1  ;;  %v3331_v37 = vpop.f32.mrf.mxu3  ;;  %3732 = vmatmul.f32.gmra.mxu0 %v4740_v49 }
 0x55f   : > { %v3439_v35 = vadd.f32 %v3331_v37, %v3085_v52  ;;  %v2730_v28 = vadd.f32 %v2624_v4, %v7259_v10  ;;  %v4745_v37 = vld [vmem:[%s5533_s8 + $0x2c2] sm:$0xff]  ;;  %s4771_s8 = sshll.u32 %s4976_s15, 6 }
 0x560   : > { %s3958_s7 = sadd.s32 %s4771_s8, %s4765_s10  ;;  %s4916_s8 = scalar_lea.hbm %s7179_s3, 2048 }
 0x561   : > { %v3793_v29 = vadd.f32 %v3685_v26, %v3439_v35  ;;  %2671 = vmatmul.f32.gmra.mxu1 %v4737_v33  ;;  %3027 = vmatmul.f32.gmra.mxu2 %v4581_v63  ;;  %s4766_s9 = sshll.u32 %s3958_s7, 3 }
 0x562   : > { %s3960_s16 = scalar_lea.hbm %s7179_s3, %s4766_s9 }
 0x563   : > { %v3857_v42 = vmax.f32 %v3793_v29, 0.0  ;;  %3381 = vmatmul.f32.gmra.mxu3 %v4661_v15  ;;  %v3688_v6 = vpop.f32.mrf.mxu0  ;;  %s3963_s24 = sshll.u32 %s3960_s16, 4  ;;  %s3964_s24 = int_to_ptr.hbm [resolvable:$true] %s3963_s24 }
 0x564   : > { %v2980_v34 = vpop.f32.mrf.mxu2  ;;  %s4910_s29 = sshra.s32 %s3964_s24, 4  ;;  %s4911_s29 = int_to_ptr.hbm [resolvable:$true] %s4910_s29 }
 0x565   : > { %3921 = vst [vmem:[%s5095_s11 + $0x150] sm:$0xff] %v3857_v42  ;;  %v3086_v40 = vadd.f32 %v2980_v34, %v2730_v28  ;;  %v7264_v42 = vld [vmem:[#allocation30_spill] sm:$0xff]  ;;  %s4912_s4 = scalar_lea.hbm %s4911_s29, 512  ;;  %p4917_p9 = scmp.lt.s32.totalorder %s4911_s29, %s7179_s3 }
 0x566   : > { %v2627_v30 = vpop.f32.mrf.mxu1  ;;  %v3334_v58 = vpop.f32.mrf.mxu3  ;;  %3735 = vmatmul.f32.gmra.mxu0 %v4741_v8  ;;  %p4913_p5 = scmp.ne.s32.totalorder %s4911_s29, %s4912_s4  ;;  %p4918_p10 = scmp.lt.s32.totalorder %s4916_s8, %s4912_s4 }
 0x567   : > { %v3440_v20 = vadd.f32 %v3334_v58, %v3086_v40  ;;  %v2731_v33 = vadd.f32 %v2627_v30, %v7260_v2 }
 0x568   : > { %p4914_p6 = pnand %p4913_p5, %p5067_p3  ;;  %p4919_p11 = por %p4918_p10, %p4917_p9 }
 0x569   : > { %v3794_v62 = vadd.f32 %v3688_v6, %v3440_v20  ;;  %2674 = vmatmul.f32.gmra.mxu1 %v4738_v57  ;;  %3030 = vmatmul.f32.gmra.mxu2 %v4582_v51  ;;  %v7261_v57 = vld [vmem:[#allocation24_spill] sm:$0xff] }
 0x56a   : > { %p4915_p7 = pneg %p4914_p6 }
 0x56b   : > { %v3858_v45 = vmax.f32 %v3794_v62, 0.0  ;;  %3384 = vmatmul.f32.gmra.mxu3 %v4662_v56  ;;  %v3691_v24 = vpop.f32.mrf.mxu0  ;;  %v7265_v62 = vld [vmem:[#allocation32_spill] sm:$0xff] }
 0x56c   : > { %v2983_v0 = vpop.f32.mrf.mxu2  ;;  %p4920_p12 = pnand %p4919_p11, %p4915_p7 }
 0x56d   : > { %3922 = vst [vmem:[%s5095_s11 + $0x158] sm:$0xff] %v3858_v45  ;;  %v3087_v9 = vadd.f32 %v2983_v0, %v2731_v33 }
 0x56e   : > { %v2630_v43 = vpop.f32.mrf.mxu1  ;;  %v3337_v19 = vpop.f32.mrf.mxu3  ;;  %3738 = vmatmul.f32.gmra.mxu0 %v4742_v13 }
 0x56f   : > { %v3441_v11 = vadd.f32 %v3337_v19, %v3087_v9  ;;  %v2732_v7 = vadd.f32 %v2630_v43, %v7261_v57 }
 0x571   : > { %v3795_v1 = vadd.f32 %v3691_v24, %v3441_v11  ;;  %2677 = vmatmul.f32.gmra.mxu1 %v4739_v5  ;;  %3033 = vmatmul.f32.gmra.mxu2 %v4583_v21  ;;  %v7262_v5 = vld [vmem:[#allocation26_spill] sm:$0xff] }
 0x572   : > { %v7266_v21 = vld [vmem:[#allocation34_spill] sm:$0xff] }
 0x573   : > { %v3859_v18 = vmax.f32 %v3795_v1, 0.0  ;;  %3387 = vmatmul.f32.gmra.mxu3 %v4663_v36  ;;  %v3694_v14 = vpop.f32.mrf.mxu0 }
 0x574   : > { %v2986_v54 = vpop.f32.mrf.mxu2 }
 0x575   : > { %3923 = vst [vmem:[%s5095_s11 + $0x160] sm:$0xff] %v3859_v18  ;;  %v3088_v60 = vadd.f32 %v2986_v54, %v2732_v7 }
 0x576   : > { %v2633_v25 = vpop.f32.mrf.mxu1  ;;  %v3340_v46 = vpop.f32.mrf.mxu3  ;;  %3741 = vmatmul.f32.gmra.mxu0 %v4743_v55 }
 0x577   : > { %v3442_v39 = vadd.f32 %v3340_v46, %v3088_v60  ;;  %v2733_v32 = vadd.f32 %v2633_v25, %v7262_v5  ;;  %v7267_v60 = vld [vmem:[#allocation10_spill] sm:$0xff] }
 0x579   : > { %v3796_v12 = vadd.f32 %v3694_v14, %v3442_v39  ;;  %2680 = vmatmul.f32.gmra.mxu1 %v4740_v49  ;;  %3036 = vmatmul.f32.gmra.mxu2 %v4584_v27  ;;  %v7263_v49 = vld [vmem:[#allocation28_spill] sm:$0xff] }
 0x57b   : > { %v3860_v41 = vmax.f32 %v3796_v12, 0.0  ;;  %3390 = vmatmul.f32.gmra.mxu3 %v4664_v59  ;;  %v3697_v44 = vpop.f32.mrf.mxu0 }
 0x57c   : > { %v2989_v53 = vpop.f32.mrf.mxu2 }
 0x57d   : > { %3924 = vst [vmem:[%s5095_s11 + $0x168] sm:$0xff] %v3860_v41  ;;  %v3089_v61 = vadd.f32 %v2989_v53, %v2733_v32 }
 0x57e   : > { %v2636_v50 = vpop.f32.mrf.mxu1  ;;  %v3343_v3 = vpop.f32.mrf.mxu3  ;;  %3744 = vmatmul.f32.gmra.mxu0 %v4744_v47 }
 0x57f   : > { %v3443_v17 = vadd.f32 %v3343_v3, %v3089_v61  ;;  %v2734_v38 = vadd.f32 %v2636_v50, %v7263_v49  ;;  %v7269_v49 = vld [vmem:[#allocation12_spill] sm:$0xff] }
 0x581   : > { %v3797_v26 = vadd.f32 %v3697_v44, %v3443_v17  ;;  %2683 = vmatmul.f32.gmra.mxu1 %v4741_v8  ;;  %3039 = vmatmul.f32.gmra.mxu2 %v4585_v16  ;;  %v7268_v44 = vld [vmem:[#allocation11_spill] sm:$0xff] }
 0x583   : > { %v3861_v52 = vmax.f32 %v3797_v26, 0.0  ;;  %3393 = vmatmul.f32.gmra.mxu3 %v4665_v22  ;;  %v3700_v4 = vpop.f32.mrf.mxu0 }
 0x584   : > { %v2992_v63 = vpop.f32.mrf.mxu2 }
 0x585   : > { %3925 = vst [vmem:[%s5095_s11 + $0x170] sm:$0xff] %v3861_v52  ;;  %v3090_v35 = vadd.f32 %v2992_v63, %v2734_v38 }
 0x586   : > { %v2639_v15 = vpop.f32.mrf.mxu1  ;;  %v3346_v29 = vpop.f32.mrf.mxu3  ;;  %3747 = vmatmul.f32.gmra.mxu0 %v4745_v37 }
 0x587   : > { %v3444_v10 = vadd.f32 %v3346_v29, %v3090_v35  ;;  %v2735_v6 = vadd.f32 %v2639_v15, %v7264_v42 }
 0x589   : > { %v3798_v28 = vadd.f32 %v3700_v4, %v3444_v10 }
 0x58b   : > { %v3862_v8 = vmax.f32 %v3798_v28, 0.0  ;;  %v3703_v34 = vpop.f32.mrf.mxu0  ;;  %v7270_v28 = vld [vmem:[#allocation13_spill] sm:$0xff] }
 0x58c   : > { %v2995_v40 = vpop.f32.mrf.mxu2 }
 0x58d   : > { %3926 = vst [vmem:[%s5095_s11 + $0x178] sm:$0xff] %v3862_v8  ;;  %v3091_v30 = vadd.f32 %v2995_v40, %v2735_v6 }
 0x58e   : > { %v2642_v58 = vpop.f32.mrf.mxu1  ;;  %v3349_v51 = vpop.f32.mrf.mxu3 }
 0x58f   : > { %v3445_v20 = vadd.f32 %v3349_v51, %v3091_v30  ;;  %v2736_v2 = vadd.f32 %v2642_v58, %v7265_v62 }
 0x591   : > { %v3799_v56 = vadd.f32 %v3703_v34, %v3445_v20 }
 0x593   : > { %v3863_v33 = vmax.f32 %v3799_v56, 0.0  ;;  %v3706_v45 = vpop.f32.mrf.mxu0  ;;  %v7271_v56 = vld [vmem:[#allocation14_spill] sm:$0xff] }
 0x594   : > { %v2998_v24 = vpop.f32.mrf.mxu2 }
 0x595   : > { %3927 = vst [vmem:[%s5095_s11 + $0x180] sm:$0xff] %v3863_v33  ;;  %v3092_v13 = vadd.f32 %v2998_v24, %v2736_v2 }
 0x596   : > { %v2645_v0 = vpop.f32.mrf.mxu1  ;;  %v3352_v9 = vpop.f32.mrf.mxu3 }
 0x597   : > { %v3446_v43 = vadd.f32 %v3352_v9, %v3092_v13  ;;  %v2737_v11 = vadd.f32 %v2645_v0, %v7266_v21 }
 0x599   : > { %v3800_v19 = vadd.f32 %v3706_v45, %v3446_v43 }
 0x59b   : > { %v3864_v36 = vmax.f32 %v3800_v19, 0.0  ;;  %v3709_v1 = vpop.f32.mrf.mxu0  ;;  %v7272_v19 = vld [vmem:[#allocation15_spill] sm:$0xff] }
 0x59c   : > { %v3001_v57 = vpop.f32.mrf.mxu2 }
 0x59d   : > { %3928 = vst [vmem:[%s5095_s11 + $0x188] sm:$0xff] %v3864_v36  ;;  %v3093_v7 = vadd.f32 %v3001_v57, %v2737_v11 }
 0x59e   : > { %v2648_v18 = vpop.f32.mrf.mxu1  ;;  %v3355_v14 = vpop.f32.mrf.mxu3 }
 0x59f   : > { %v3447_v55 = vadd.f32 %v3355_v14, %v3093_v7  ;;  %v2738_v25 = vadd.f32 %v2648_v18, %v7267_v60 }
 0x5a1   : > { %v3801_v54 = vadd.f32 %v3709_v1, %v3447_v55 }
 0x5a3   : > { %v3865_v46 = vmax.f32 %v3801_v54, 0.0  ;;  %v3712_v27 = vpop.f32.mrf.mxu0  ;;  %v7273_v54 = vld [vmem:[#allocation17_spill] sm:$0xff] }
 0x5a4   : > { %v3004_v39 = vpop.f32.mrf.mxu2 }
 0x5a5   : > { %3929 = vst [vmem:[%s5095_s11 + $0x190] sm:$0xff] %v3865_v46  ;;  %v3094_v59 = vadd.f32 %v3004_v39, %v2738_v25 }
 0x5a6   : > { %v2651_v12 = vpop.f32.mrf.mxu1  ;;  %v3358_v5 = vpop.f32.mrf.mxu3 }
 0x5a7   : > { %v3448_v32 = vadd.f32 %v3358_v5, %v3094_v59  ;;  %v2739_v47 = vadd.f32 %v2651_v12, %v7268_v44 }
 0x5a9   : > { %v3802_v41 = vadd.f32 %v3712_v27, %v3448_v32 }
 0x5ab   : > { %v3866_v53 = vmax.f32 %v3802_v41, 0.0  ;;  %v3715_v61 = vpop.f32.mrf.mxu0  ;;  %v7274_v41 = vld [vmem:[#allocation19_spill] sm:$0xff] }
 0x5ac   : > { %v3007_v50 = vpop.f32.mrf.mxu2 }
 0x5ad   : > { %3930 = vst [vmem:[%s5095_s11 + $0x198] sm:$0xff] %v3866_v53  ;;  %v3095_v3 = vadd.f32 %v3007_v50, %v2739_v47 }
 0x5ae   : > { %v2654_v16 = vpop.f32.mrf.mxu1  ;;  %v3361_v17 = vpop.f32.mrf.mxu3 }
 0x5af   : > { %v3449_v22 = vadd.f32 %v3361_v17, %v3095_v3  ;;  %v2740_v38 = vadd.f32 %v2654_v16, %v7269_v49 }
 0x5b1   : > { %v3803_v26 = vadd.f32 %v3715_v61, %v3449_v22 }
 0x5b3   : > { %v3867_v52 = vmax.f32 %v3803_v26, 0.0  ;;  %v3718_v4 = vpop.f32.mrf.mxu0  ;;  %v7275_v26 = vld [vmem:[#allocation21_spill] sm:$0xff] }
 0x5b4   : > { %v3010_v37 = vpop.f32.mrf.mxu2 }
 0x5b5   : > { %3931 = vst [vmem:[%s5095_s11 + $0x1a0] sm:$0xff] %v3867_v52  ;;  %v3096_v63 = vadd.f32 %v3010_v37, %v2740_v38 }
 0x5b6   : > { %v2657_v35 = vpop.f32.mrf.mxu1  ;;  %v3364_v15 = vpop.f32.mrf.mxu3 }
 0x5b7   : > { %v3450_v29 = vadd.f32 %v3364_v15, %v3096_v63  ;;  %v2741_v42 = vadd.f32 %v2657_v35, %v7270_v28 }
 0x5b9   : > { %v3804_v10 = vadd.f32 %v3718_v4, %v3450_v29 }
 0x5bb   : > { %v3868_v6 = vmax.f32 %v3804_v10, 0.0  ;;  %v3721_v8 = vpop.f32.mrf.mxu0  ;;  %v7276_v10 = vld [vmem:[#allocation23_spill] sm:$0xff] }
 0x5bc   : > { %v3013_v34 = vpop.f32.mrf.mxu2 }
 0x5bd   : > { %3932 = vst [vmem:[%s5095_s11 + $0x1a8] sm:$0xff] %v3868_v6  ;;  %v3097_v40 = vadd.f32 %v3013_v34, %v2741_v42 }
 0x5be   : > { %v2660_v30 = vpop.f32.mrf.mxu1  ;;  %v3367_v58 = vpop.f32.mrf.mxu3 }
 0x5bf   : > { %v3451_v51 = vadd.f32 %v3367_v58, %v3097_v40  ;;  %v2742_v62 = vadd.f32 %v2660_v30, %v7271_v56 }
 0x5c1   : > { %v3805_v20 = vadd.f32 %v3721_v8, %v3451_v51 }
 0x5c3   : > { %v3869_v2 = vmax.f32 %v3805_v20, 0.0  ;;  %v3724_v33 = vpop.f32.mrf.mxu0 }
 0x5c4   : > { %v3016_v45 = vpop.f32.mrf.mxu2 }
 0x5c5   : > { %3933 = vst [vmem:[%s5095_s11 + $0x1b0] sm:$0xff] %v3869_v2  ;;  %v3098_v24 = vadd.f32 %v3016_v45, %v2742_v62 }
 0x5c6   : > { %v2663_v13 = vpop.f32.mrf.mxu1  ;;  %v3370_v0 = vpop.f32.mrf.mxu3 }
 0x5c7   : > { %v3452_v9 = vadd.f32 %v3370_v0, %v3098_v24  ;;  %v2743_v21 = vadd.f32 %v2663_v13, %v7272_v19 }
 0x5c9   : > { %v3806_v43 = vadd.f32 %v3724_v33, %v3452_v9 }
 0x5cb   : > { %v3870_v11 = vmax.f32 %v3806_v43, 0.0  ;;  %v3727_v36 = vpop.f32.mrf.mxu0 }
 0x5cc   : > { %v3019_v1 = vpop.f32.mrf.mxu2 }
 0x5cd   : > { %3934 = vst [vmem:[%s5095_s11 + $0x1b8] sm:$0xff] %v3870_v11  ;;  %v3099_v57 = vadd.f32 %v3019_v1, %v2743_v21 }
 0x5ce   : > { %v2666_v7 = vpop.f32.mrf.mxu1  ;;  %v3373_v18 = vpop.f32.mrf.mxu3 }
 0x5cf   : > { %v3453_v14 = vadd.f32 %v3373_v18, %v3099_v57  ;;  %v2744_v60 = vadd.f32 %v2666_v7, %v7273_v54 }
 0x5d1   : > { %v3807_v55 = vadd.f32 %v3727_v36, %v3453_v14 }
 0x5d3   : > { %v3871_v25 = vmax.f32 %v3807_v55, 0.0  ;;  %v3730_v46 = vpop.f32.mrf.mxu0 }
 0x5d4   : > { %v3022_v27 = vpop.f32.mrf.mxu2 }
 0x5d5   : > { %3935 = vst [vmem:[%s5095_s11 + $0x1c0] sm:$0xff] %v3871_v25  ;;  %v3100_v39 = vadd.f32 %v3022_v27, %v2744_v60 }
 0x5d6   : > { %v2669_v59 = vpop.f32.mrf.mxu1  ;;  %v3376_v12 = vpop.f32.mrf.mxu3 }
 0x5d7   : > { %v3454_v5 = vadd.f32 %v3376_v12, %v3100_v39  ;;  %v2745_v44 = vadd.f32 %v2669_v59, %v7274_v41 }
 0x5d9   : > { %v3808_v32 = vadd.f32 %v3730_v46, %v3454_v5 }
 0x5db   : > { %v3872_v47 = vmax.f32 %v3808_v32, 0.0  ;;  %v3733_v53 = vpop.f32.mrf.mxu0 }
 0x5dc   : > { %v3025_v61 = vpop.f32.mrf.mxu2 }
 0x5dd   : > { %3936 = vst [vmem:[%s5095_s11 + $0x1c8] sm:$0xff] %v3872_v47  ;;  %v3101_v50 = vadd.f32 %v3025_v61, %v2745_v44 }
 0x5de   : > { %v2672_v3 = vpop.f32.mrf.mxu1  ;;  %v3379_v16 = vpop.f32.mrf.mxu3 }
 0x5df   : > { %v3455_v17 = vadd.f32 %v3379_v16, %v3101_v50  ;;  %v2746_v49 = vadd.f32 %v2672_v3, %v7275_v26 }
 0x5e1   : > { %v3809_v22 = vadd.f32 %v3733_v53, %v3455_v17 }
 0x5e3   : > { %v3873_v38 = vmax.f32 %v3809_v22, 0.0  ;;  %v3736_v52 = vpop.f32.mrf.mxu0 }
 0x5e4   : > { %v3028_v4 = vpop.f32.mrf.mxu2 }
 0x5e5   : > { %3937 = vst [vmem:[%s5095_s11 + $0x1d0] sm:$0xff] %v3873_v38  ;;  %v3102_v37 = vadd.f32 %v3028_v4, %v2746_v49 }
 0x5e6   : > { %v2675_v63 = vpop.f32.mrf.mxu1  ;;  %v3382_v35 = vpop.f32.mrf.mxu3 }
 0x5e7   : > { %v3456_v15 = vadd.f32 %v3382_v35, %v3102_v37  ;;  %v2747_v28 = vadd.f32 %v2675_v63, %v7276_v10 }
 0x5e9   : > { %v3810_v29 = vadd.f32 %v3736_v52, %v3456_v15 }
 0x5eb   : > { %v3874_v42 = vmax.f32 %v3810_v29, 0.0  ;;  %v3739_v6 = vpop.f32.mrf.mxu0 }
 0x5ec   : > { %v3031_v8 = vpop.f32.mrf.mxu2 }
 0x5ed   : > { %3938 = vst [vmem:[%s5095_s11 + $0x1d8] sm:$0xff] %v3874_v42  ;;  %v3103_v34 = vadd.f32 %v3031_v8, %v2747_v28 }
 0x5ee   : > { %v2678_v40 = vpop.f32.mrf.mxu1  ;;  %v3385_v30 = vpop.f32.mrf.mxu3 }
 0x5ef   : > { %v3457_v58 = vadd.f32 %v3385_v30, %v3103_v34  ;;  %v2748_v20 = vadd.f32 %v2678_v40, %v6847_v48 }
 0x5f1   : > { %v3811_v51 = vadd.f32 %v3739_v6, %v3457_v58 }
 0x5f3   : > { %v3875_v56 = vmax.f32 %v3811_v51, 0.0  ;;  %v3742_v62 = vpop.f32.mrf.mxu0 }
 0x5f4   : > { %v3034_v2 = vpop.f32.mrf.mxu2 }
 0x5f5   : > { %3939 = vst [vmem:[%s5095_s11 + $0x1e0] sm:$0xff] %v3875_v56  ;;  %v3104_v33 = vadd.f32 %v3034_v2, %v2748_v20 }
 0x5f6   : > { %v2681_v45 = vpop.f32.mrf.mxu1  ;;  %v3388_v24 = vpop.f32.mrf.mxu3 }
 0x5f7   : > { %v3458_v13 = vadd.f32 %v3388_v24, %v3104_v33  ;;  %v2749_v9 = vadd.f32 %v2681_v45, %v6853_v23 }
 0x5f9   : > { %v3812_v0 = vadd.f32 %v3742_v62, %v3458_v13 }
 0x5fb   : > { %v3876_v43 = vmax.f32 %v3812_v0, 0.0  ;;  %v3745_v21 = vpop.f32.mrf.mxu0 }
 0x5fc   : > { %v3037_v19 = vpop.f32.mrf.mxu2 }
 0x5fd   : > { %3940 = vst [vmem:[%s5095_s11 + $0x1e8] sm:$0xff] %v3876_v43  ;;  %v3105_v48 = vadd.f32 %v3037_v19, %v2749_v9 }
 0x5fe   : > { %v3391_v11 = vpop.f32.mrf.mxu3  ;;  %v2684_v1 = vpop.f32.mrf.mxu1 }
 0x5ff   : > { %v3459_v36 = vadd.f32 %v3391_v11, %v3105_v48  ;;  %v2750_v7 = vadd.f32 %v2684_v1, %v6858_v31 }
 0x601   : > { %v3813_v57 = vadd.f32 %v3745_v21, %v3459_v36 }
 0x603   : > { %v3877_v23 = vmax.f32 %v3813_v57, 0.0  ;;  %v3748_v54 = vpop.f32.mrf.mxu0 }
 0x604   : > { %v3040_v18 = vpop.f32.mrf.mxu2 }
 0x605   : > { %3941 = vst [vmem:[%s5095_s11 + $0x1f0] sm:$0xff] %v3877_v23  ;;  %v3106_v14 = vadd.f32 %v3040_v18, %v2750_v7 }
 0x606   : > { %v3394_v55 = vpop.f32.mrf.mxu3 }
 0x607   : > { %v3460_v60 = vadd.f32 %v3394_v55, %v3106_v14 }
 0x609   : > { %v3814_v25 = vadd.f32 %v3748_v54, %v3460_v60 }
 0x60b   : > { %v3878_v46 = vmax.f32 %v3814_v25, 0.0 }
 0x60d   : > { %3942 = vst [vmem:[%s5095_s11 + $0x1f8] sm:$0xff] %v3878_v46 }
 0x60e   : > { %4923 = shalt.err (!%p4920_p12)
}
 0x60f   : > { %s4994_s11 = smov 128   ;;  %s4995_s9 = smov 8  }
 0x610   : > { %4820 = dma.vmem_to_hbm [thread:$0]  (%p5067_p3), %s3962_s21, 8192, %s3964_s24, %s3944_s28, %s4994_s11, %s4994_s11, %s4995_s9  }
 0x611 PF: > { %p4826_p13 = scmp.ge.s32.totalorder %s4992_s19, 2  ;;  %s3978_s15 = sand.u32 1, %s4964_s12  }
 0x612   : > { %s3979_s20 = scalar_lea.sflag [#allocation5], %s3978_s15 }
 0x613   : > { %p4823_p0 = pnand %p4826_p13, %p5076_p8 }
 0x615   : > { %p4824_p1 = pneg %p4823_p0 }
 0x617   : > { %4959 = dma.done.wait (%p4824_p1), %s3979_s20, 8192  }
 0x618   : > { %4961 = vsyncadd (%p4824_p1), %s3979_s20, 4294959104  ;;  %s16_s19 = sadd.s32 1, %s4992_s19   ;;  %s7278_s12 = smov %s4968_s13 }
 0x619   : > { %p13_p2 = scmp.ge.s32.totalorder %s16_s19, 6   ;;  %s7279_s13 = smov %s4972_s14 }
 0x61a   : > { %s7280_s14 = smov %s5085_s30  ;;  %s7281_s15 = smov %s4984_s17 }
 0x61b   : > { %s7282_s16 = smov %s4988_s18  ;;  %s7283_s17 = smov %s7286_s22 }
 0x61c   : > { %s7284_s18 = smov %s7290_s23  ;;  %15 = sbr.rel (!%p13_p2) target bundleno = 5 (0x5), region = 151 }
 0x621   :  { %3985 = vsyncpa [#allocation5], 1 }
 0x622   :  { %3987 = vsyncpa [#allocation5 + $0x1], 1 }
 0x623   :  { %3988 = vsyncmov [#allocation3] }
 0x626   :  { %s3989_s25 = vpop.sfrf %3988 }
 0x627   :  { %p4769_p3 = scmp.ne.s32.totalorder %s3989_s25, 0 }
 0x629   :  { %3993 = shalt.err (%p4769_p3)  }
 0x62a   :  { %3995 = vsyncmov [#allocation3 + $0x1] }
 0x62d   :  { %s3996_s26 = vpop.sfrf %3995 }
 0x62e   :  { %p4770_p8 = scmp.ne.s32.totalorder %s3996_s26, 0 }
 0x630   :  { %4000 = shalt.err (%p4770_p8)  }

</bundles_post_ra>
